<compile_context>
chip_gen: v7x
topology: tpu7x:2x2x1
jax: 0.10.0
libtpu: 0.0.40
codegen_flags: <defaults>
</compile_context>

<pallas_src>
import functools

import jax
import jax.numpy as jnp
from jax import lax
from jax.experimental import pallas as pl
from jax.experimental.pallas import tpu as pltpu

LANE = 128
NEG_INF = -1e30  # bias fill for padded logit lanes


def _round_up(x, m):
    return (x + m - 1) // m * m


def _tpu_generation():
    try:
        kind = jax.devices()[0].device_kind.lower()
    except Exception:
        return None
    for g in (7, 6, 5, 4, 3, 2):
        if f"v{g}" in kind:
            return g
    return None


def _vmem_limit_bytes():
    cap = None
    try:
        cap = getattr(pltpu.get_tpu_info(), "vmem_capacity_bytes", None)
    except Exception:
        cap = None
    if not cap:
        cap = 64 * 1024 * 1024          # conservative fallback (v7x-sized)
    return int(0.85 * cap)              # leave headroom for compiler scratch


# ------------------------------------------------------------------ kernel ----

def _fused_stone_age_kernel(x_ref, a_ref, w_in_ref, b_in_ref, wl_ref, bl_ref,
                            w_out_ref, b_out_ref, out_ref,
                            h_a, h_b, acc_ref,
                            *, bounding_parameter, num_layers, tm, s_pad):
    t = pl.program_id(0)                  # 0: input layer, 1..L: GNN layers (+output at L)
    j = pl.program_id(1)                  # destination-node tile
    row0 = pl.multiple_of(j * tm, tm)
    rows = pl.ds(row0, tm)

    # iota computed once per grid step (reused by both one-hot branches)
    col = lax.broadcasted_iota(jnp.int32, (tm, s_pad), 1)

    def onehot_first_argmax(logits):
        # one-hot of the FIRST maximum along lanes (matches torch argmax)
        m = jnp.max(logits, axis=-1, keepdims=True)
        masked = jnp.where(logits == m, col, jnp.int32(2 ** 30))
        idx = jnp.min(masked, axis=-1, keepdims=True)
        return (col == idx).astype(jnp.float32)

    def out_contrib(h_f32):
        # skip-connection output accumulation: h_t @ W_out[slab t]
        return jnp.dot(h_f32, w_out_ref[...], preferred_element_type=jnp.float32)

    # ---- t == 0 : InputLayer -> one_hot(argmax(x @ W_in + b_in)) ------------
    @pl.when(t == 0)
    def _():
        logits = jnp.dot(x_ref[...], w_in_ref[...],
                         preferred_element_type=jnp.float32) + b_in_ref[...]
        h = onehot_first_argmax(logits)
        h_a[rows, :] = h.astype(h_a.dtype)
        acc_ref[rows, :] = out_contrib(h) + b_out_ref[...]

    # ---- t == 1..L : StoneAgeGNNLayer (ping-pong, no dynamic slab index) ----
    def gnn_layer(h_prev_ref, h_cur_ref):
        a = a_ref[...]
        if a.dtype != jnp.bfloat16:
            # int8 storage (HBM-traffic compression); exact small-int cast to bf16
            a = a.astype(jnp.float32).astype(jnp.bfloat16)
        # 'add' aggregation over all source nodes; exact counts/one-hots, f32 acc
        agg = jnp.dot(a, h_prev_ref[...], preferred_element_type=jnp.float32)
        clamped = jnp.clip(agg, 0.0, bounding_parameter)
        h_self = h_prev_ref[rows, :].astype(jnp.float32)
        # split dots instead of concatenating [self | agg] (no VMEM intermediate)
        logits = (jnp.dot(h_self, wl_ref[0], preferred_element_type=jnp.float32)
                  + jnp.dot(clamped, wl_ref[1], preferred_element_type=jnp.float32)
                  + bl_ref[...])
        h = onehot_first_argmax(logits)
        h_cur_ref[rows, :] = h.astype(h_cur_ref.dtype)
        acc_ref[rows, :] += out_contrib(h)

    is_layer = t >= 1                      # grid guarantees t <= num_layers

    @pl.when(jnp.logical_and(is_layer, (t % 2) == 1))
    def _():
        gnn_layer(h_a, h_b)

    @pl.when(jnp.logical_and(is_layer, (t % 2) == 0))
    def _():
        gnn_layer(h_b, h_a)

    # ---- t == L : PoolingLayer -> log_softmax(accumulated skip logits) ------
    # (runs in the same grid step as the last GNN layer, after its acc update)
    @pl.when(t == num_layers)
    def _():
        logits = acc_ref[rows, :]
        m = jnp.max(logits, axis=-1, keepdims=True)
        lse = m + jnp.log(jnp.sum(jnp.exp(logits - m), axis=-1, keepdims=True))
        out_ref[...] = logits - lse


# ----------------------------------------------------------------- wrapper ----

def init_params(key, in_channels, state_size, out_channels, num_layers):
    """Synthetic torch.nn.Linear params: weights stored [in, out] (W^T), bias [out]."""
    def linear(k, fan_in, fan_out):
        kw, kb = jax.random.split(k)
        bound = float(fan_in) ** -0.5
        w = jax.random.uniform(kw, (fan_in, fan_out), jnp.float32, -bound, bound)
        b = jax.random.uniform(kb, (fan_out,), jnp.float32, -bound, bound)
        return w, b

    keys = jax.random.split(key, num_layers + 2)
    return {
        "input": linear(keys[0], in_channels, state_size),
        "layers": [linear(keys[1 + i], 2 * state_size, state_size)
                   for i in range(num_layers)],
        "output": linear(keys[-1], (num_layers + 1) * state_size, out_channels),
    }


def stone_age_gnn_forward(params, x, edge_index, *, bounding_parameter):
    """Pallas implementation of StoneAgeGNN.forward (eval mode, config in header)."""
    n, c = x.shape
    w_in, b_in = params["input"]
    s = w_in.shape[1]
    num_layers = len(params["layers"])
    assert num_layers >= 1, "StoneAgeGNN kernel expects at least one GNN layer"
    w_out_raw, b_out_raw = params["output"]
    o = w_out_raw.shape[1]

    gen = _tpu_generation()
    base_tm = 256 if (gen is not None and gen >= 6) else 128   # fill 256-wide MXU
    tm = max(LANE, min(base_tm, _round_up(n, LANE)))           # don't blow up tiny graphs
    n_pad = _round_up(n, tm)
    c_pad = _round_up(c, LANE)
    s_pad = _round_up(s, LANE)
    o_pad = _round_up(o, LANE)

    # ---------------- pad inputs (once, in the wrapper) ----------------------
    x_p = jnp.zeros((n_pad, c_pad), jnp.float32).at[:n, :c].set(
        x.astype(jnp.float32))

    # PyG 'add' aggregation with flow source->target: agg[dst] += h[src]
    src, dst = edge_index[0], edge_index[1]
    adj = jnp.zeros((n_pad, n_pad), jnp.float32).at[dst, src].add(1.0)
    max_mult = float(jnp.max(adj))
    if max_mult <= 127.0:
        adj = adj.astype(jnp.int8)         # exact counts; half the bf16 HBM stream
    else:
        adj = adj.astype(jnp.bfloat16)     # exact for edge multiplicities <= 256

    # ---------------- pad params ---------------------------------------------
    w_in_p = jnp.zeros((c_pad, s_pad), jnp.float32).at[:c, :s].set(w_in)
    b_in_p = jnp.full((1, s_pad), NEG_INF, jnp.float32).at[0, :s].set(b_in)

    # layer weights stacked as [L, 2, S_pad, S_pad]: slab 0 = self half, 1 = agg half
    wl_p = jnp.zeros((num_layers, 2, s_pad, s_pad), jnp.float32)
    bl_p = jnp.full((num_layers, 1, s_pad), NEG_INF, jnp.float32)
    for li, (w, b) in enumerate(params["layers"]):
        wl_p = wl_p.at[li, 0, :s, :s].set(w[:s])
        wl_p = wl_p.at[li, 1, :s, :s].set(w[s:2 * s])
        bl_p = bl_p.at[li, 0, :s].set(b)

    # output weights stacked per skip slab: [L+1, S_pad, O_pad]
    w_out_p = jnp.zeros((num_layers + 1, s_pad, o_pad), jnp.float32)
    for l in range(num_layers + 1):
        w_out_p = w_out_p.at[l, :s, :o].set(w_out_raw[l * s:(l + 1) * s])
    b_out_p = jnp.full((1, o_pad), NEG_INF, jnp.float32).at[0, :o].set(b_out_raw)

    # ---------------- pallas_call ---------------------------------------------
    num_tiles = n_pad // tm
    grid = (num_layers + 1, num_tiles)
    last_t = num_layers
    jmax = num_tiles - 1

    in_specs = [
        # node features: only needed at t == 0 (pinned to the resident block after)
        pl.BlockSpec((tm, c_pad), lambda t, j: (jnp.where(t == 0, j, jmax), 0)),
        # adjacency destination-row panel: needed at t >= 1 (pinned to (0,0) at t==0,
        # which is exactly the first panel t==1 needs -> no dead DMA)
        pl.BlockSpec((tm, n_pad), lambda t, j: (jnp.where(t >= 1, j, 0), 0)),
        # input-layer weights / bias (resident)
        pl.BlockSpec((c_pad, s_pad), lambda t, j: (0, 0)),
        pl.BlockSpec((1, s_pad), lambda t, j: (0, 0)),
        # per-GNN-layer weights / bias, streamed per layer step (squeezed leading dim)
        pl.BlockSpec((None, 2, s_pad, s_pad),
                     lambda t, j: (jnp.maximum(t - 1, 0), 0, 0, 0)),
        pl.BlockSpec((None, 1, s_pad),
                     lambda t, j: (jnp.maximum(t - 1, 0), 0, 0)),
        # output-layer weight slab for the state produced at phase t
        pl.BlockSpec((None, s_pad, o_pad), lambda t, j: (t, 0, 0)),
        pl.BlockSpec((1, o_pad), lambda t, j: (0, 0)),
    ]
    # Output block index only varies during the writing phase (t == L); before that
    # it is pinned to block (0,0), which is written at (t==L, j==0) before any flush.
    out_specs = pl.BlockSpec((tm, o_pad),
                             lambda t, j: (jnp.where(t == last_t, j, 0), 0))

    kernel = functools.partial(
        _fused_stone_age_kernel,
        bounding_parameter=float(bounding_parameter),
        num_layers=num_layers, tm=tm, s_pad=s_pad)

    out_p = pl.pallas_call(
        kernel,
        grid_spec=pltpu.PrefetchScalarGridSpec(
            num_scalar_prefetch=0,
            grid=grid,
            in_specs=in_specs,
            out_specs=out_specs,
            scratch_shapes=[
                pltpu.VMEM((n_pad, s_pad), jnp.bfloat16),   # h_a (ping)
                pltpu.VMEM((n_pad, s_pad), jnp.bfloat16),   # h_b (pong)
                pltpu.VMEM((n_pad, o_pad), jnp.float32),    # skip-logit accumulator
            ],
        ),
        out_shape=jax.ShapeDtypeStruct((n_pad, o_pad), jnp.float32),
        compiler_params=pltpu.CompilerParams(
            dimension_semantics=("arbitrary", "arbitrary"),
            vmem_limit_bytes=_vmem_limit_bytes(),
        ),
    )(x_p, adj, w_in_p, b_in_p, wl_p, bl_p, w_out_p, b_out_p)

    return out_p[:n, :o]


# ------------------------------------------------------------ pure-JAX ref ----

def _ref_forward(params, x, edge_index, *, bounding_parameter):
    n = x.shape[0]
    x = x.astype(jnp.float32)
    src, dst = edge_index[0], edge_index[1]
    adj = jnp.zeros((n, n), jnp.float32).at[dst, src].add(1.0)

    def onehot(l):
        return jax.nn.one_hot(jnp.argmax(l, axis=-1), l.shape[-1], dtype=l.dtype)

    w_in, b_in = params["input"]
    h = onehot(x @ w_in + b_in)
    xs = [h]
    for (w, b) in params["layers"]:
        agg = jnp.clip(adj @ h, 0.0, float(bounding_parameter))
        combined = jnp.concatenate([h, agg], axis=1)
        h = onehot(combined @ w + b)
        xs.append(h)
    x_cat = jnp.concatenate(xs, axis=1)
    w_out, b_out = params["output"]
    return jax.nn.log_softmax(x_cat @ w_out + b_out, axis=-1)


# --------------------------------------------------------------------- main ---

if __name__ == "__main__":
    NUM_NODES = 16
    IN_CHANNELS = 4
    STATE_SIZE = 8
    OUT_CHANNELS = 3
    NUM_LAYERS = 2
    BOUNDING_PARAMETER = 5
    NUM_EDGES = 40

    key = jax.random.PRNGKey(0)
    k_x, k_e, k_p = jax.random.split(key, 3)

    x = jax.random.normal(k_x, (NUM_NODES, IN_CHANNELS), jnp.float32)
    edge_index = jax.random.randint(k_e, (2, NUM_EDGES), 0, NUM_NODES, jnp.int32)
    params = init_params(k_p, IN_CHANNELS, STATE_SIZE, OUT_CHANNELS, NUM_LAYERS)

    out = stone_age_gnn_forward(params, x, edge_index,
                                bounding_parameter=BOUNDING_PARAMETER)
    out = jax.block_until_ready(out)

    ref = _ref_forward(params, x, edge_index,
                       bounding_parameter=BOUNDING_PARAMETER)
    assert out.shape == (NUM_NODES, OUT_CHANNELS)
    assert jnp.allclose(out, ref, atol=1e-4, rtol=1e-4), "mismatch vs JAX reference"

    print("KERNEL_OK")
</pallas_src>

<mosaic_0001>
module attributes {stable_mosaic.version = 11 : i64} {
  func.func @_fused_stone_age_kernel(%arg0: i32, %arg1: i32, %arg2: memref<128x128xf32, #tpu.memory_space<vmem>>, %arg3: memref<128x128xi8, #tpu.memory_space<vmem>>, %arg4: memref<128x128xf32, #tpu.memory_space<vmem>>, %arg5: memref<1x128xf32, #tpu.memory_space<vmem>>, %arg6: memref<1x2x128x128xf32, #tpu.memory_space<vmem>>, %arg7: memref<1x1x128xf32, #tpu.memory_space<vmem>>, %arg8: memref<1x128x128xf32, #tpu.memory_space<vmem>>, %arg9: memref<1x128xf32, #tpu.memory_space<vmem>>, %arg10: memref<128x128xf32, #tpu.memory_space<vmem>>, %arg11: memref<128x128xbf16, #tpu.memory_space<vmem>>, %arg12: memref<128x128xbf16, #tpu.memory_space<vmem>>, %arg13: memref<128x128xf32, #tpu.memory_space<vmem>>) attributes {dimension_semantics = [#tpu.dimension_semantics<arbitrary>, #tpu.dimension_semantics<arbitrary>], iteration_bounds = array<i64: 3, 1>, scalar_prefetch = 0 : i64, scratch_operands = 3 : i64, tpu.core_type = #tpu.core_type<tc>, window_params = [{transform_indices = @transform_0, window_bounds = array<i64: 128, 128>}, {transform_indices = @transform_1, window_bounds = array<i64: 128, 128>}, {pipeline_mode = #tpu.pipeline_mode<synchronous>, transform_indices = @transform_2, window_bounds = array<i64: 128, 128>}, {pipeline_mode = #tpu.pipeline_mode<synchronous>, transform_indices = @transform_3, window_bounds = array<i64: 1, 128>}, {transform_indices = @transform_4, window_bounds = array<i64: 1, 2, 128, 128>}, {transform_indices = @transform_5, window_bounds = array<i64: 1, 1, 128>}, {transform_indices = @transform_6, window_bounds = array<i64: 1, 128, 128>}, {pipeline_mode = #tpu.pipeline_mode<synchronous>, transform_indices = @transform_7, window_bounds = array<i64: 1, 128>}, {transform_indices = @transform_8, window_bounds = array<i64: 128, 128>}]} {
    %c128_i32 = arith.constant 128 : i32
    %0 = arith.muli %arg1, %c128_i32 : i32
    %1 = tpu.assume_multiple %0, 128 : i32
    %2 = tpu.iota {dimensions = array<i32: 1>} : vector<128x128xi32>
    %c0_i32 = arith.constant 0 : i32
    %3 = arith.cmpi eq, %arg0, %c0_i32 : i32
    %4 = arith.extui %3 : i1 to i32
    %c0_i32_0 = arith.constant 0 : i32
    %5 = arith.cmpi ne, %4, %c0_i32_0 : i32
    scf.if %5 {
      %c0 = arith.constant 0 : index
      %c0_18 = arith.constant 0 : index
      %38 = vector.load %arg2[%c0, %c0_18] : memref<128x128xf32, #tpu.memory_space<vmem>>, vector<128x128xf32>
      %c0_19 = arith.constant 0 : index
      %c0_20 = arith.constant 0 : index
      %39 = vector.load %arg4[%c0_19, %c0_20] : memref<128x128xf32, #tpu.memory_space<vmem>>, vector<128x128xf32>
      %cst = arith.constant dense<0.000000e+00> : vector<128x128xf32>
      %40 = tpu.matmul %38, %39, %cst {dimension_numbers = #tpu.dot_dimension_numbers<[1], [0], [0], [1], [0, 0, 1, 1], [], []>} : vector<128x128xf32>, vector<128x128xf32>, vector<128x128xf32> -> vector<128x128xf32>
      %c0_21 = arith.constant 0 : index
      %c0_22 = arith.constant 0 : index
      %41 = vector.load %arg5[%c0_21, %c0_22] : memref<1x128xf32, #tpu.memory_space<vmem>>, vector<1x128xf32>
      %42 = vector.broadcast %41 : vector<1x128xf32> to vector<128x128xf32>
      %43 = arith.addf %40, %42 : vector<128x128xf32>
      %cst_23 = arith.constant dense<0xFF800000> : vector<128xf32>
      %44 = vector.multi_reduction <maximumf>, %43, %cst_23 [1] : vector<128x128xf32> to vector<128xf32>
      %45 = vector.shape_cast %44 : vector<128xf32> to vector<128x1xf32>
      %46 = vector.broadcast %45 : vector<128x1xf32> to vector<128x128xf32>
      %47 = arith.cmpf oeq, %43, %46 : vector<128x128xf32>
      %c1073741824_i32 = arith.constant 1073741824 : i32
      %48 = vector.broadcast %c1073741824_i32 : i32 to vector<128x128xi32>
      %49 = arith.select %47, %2, %48 : vector<128x128xi1>, vector<128x128xi32>
      %cst_24 = arith.constant dense<2147483647> : vector<128xi32>
      %50 = vector.multi_reduction <minsi>, %49, %cst_24 [1] : vector<128x128xi32> to vector<128xi32>
      %51 = vector.shape_cast %50 : vector<128xi32> to vector<128x1xi32>
      %52 = vector.broadcast %51 : vector<128x1xi32> to vector<128x128xi32>
      %53 = arith.cmpi eq, %2, %52 : vector<128x128xi32>
      %54 = arith.extui %53 : vector<128x128xi1> to vector<128x128xi32>
      %55 = arith.sitofp %54 : vector<128x128xi32> to vector<128x128xf32>
      %56 = arith.truncf %55 : vector<128x128xf32> to vector<128x128xbf16>
      %57 = arith.index_cast %1 : i32 to index
      %c0_25 = arith.constant 0 : index
      %58 = vector.load %arg11[%57, %c0_25] : memref<128x128xbf16, #tpu.memory_space<vmem>>, vector<128x128xbf16>
      tpu.vector_store %arg11[%57, %c0_25], %56 {strides = array<i32>} : memref<128x128xbf16, #tpu.memory_space<vmem>>, vector<128x128xbf16>,
      %c0_26 = arith.constant 0 : index
      %c0_27 = arith.constant 0 : index
      %c0_28 = arith.constant 0 : index
      %59 = vector.load %arg8[%c0_26, %c0_27, %c0_28] : memref<1x128x128xf32, #tpu.memory_space<vmem>>, vector<1x128x128xf32>
      %60 = vector.shape_cast %59 : vector<1x128x128xf32> to vector<128x128xf32>
      %cst_29 = arith.constant dense<0.000000e+00> : vector<128x128xf32>
      %61 = tpu.matmul %55, %60, %cst_29 {dimension_numbers = #tpu.dot_dimension_numbers<[1], [0], [0], [1], [0, 0, 1, 1], [], []>} : vector<128x128xf32>, vector<128x128xf32>, vector<128x128xf32> -> vector<128x128xf32>
      %c0_30 = arith.constant 0 : index
      %c0_31 = arith.constant 0 : index
      %62 = vector.load %arg9[%c0_30, %c0_31] : memref<1x128xf32, #tpu.memory_space<vmem>>, vector<1x128xf32>
      %63 = vector.broadcast %62 : vector<1x128xf32> to vector<128x128xf32>
      %64 = arith.addf %61, %63 : vector<128x128xf32>
      %65 = arith.index_cast %1 : i32 to index
      %c0_32 = arith.constant 0 : index
      %66 = vector.load %arg13[%65, %c0_32] : memref<128x128xf32, #tpu.memory_space<vmem>>, vector<128x128xf32>
      tpu.vector_store %arg13[%65, %c0_32], %64 {strides = array<i32>} : memref<128x128xf32, #tpu.memory_space<vmem>>, vector<128x128xf32>,
    } else {
    }
    %c1_i32 = arith.constant 1 : i32
    %6 = arith.cmpi sge, %arg0, %c1_i32 : i32
    %c2_i32 = arith.constant 2 : i32
    %c0_i32_1 = arith.constant 0 : i32
    %7 = arith.cmpi eq, %c2_i32, %c0_i32_1 : i32
    %c1_i32_2 = arith.constant 1 : i32
    %8 = arith.select %7, %c1_i32_2, %c2_i32 : i32
    %9 = arith.remsi %arg0, %8 : i32
    %c0_i32_3 = arith.constant 0 : i32
    %10 = arith.cmpi ne, %9, %c0_i32_3 : i32
    %c0_i32_4 = arith.constant 0 : i32
    %11 = arith.cmpi slt, %9, %c0_i32_4 : i32
    %c0_i32_5 = arith.constant 0 : i32
    %12 = arith.cmpi slt, %8, %c0_i32_5 : i32
    %13 = arith.xori %11, %12 : i1
    %14 = arith.andi %13, %10 : i1
    %15 = arith.addi %9, %8 : i32
    %16 = arith.select %14, %15, %9 : i32
    %c1_i32_6 = arith.constant 1 : i32
    %17 = arith.cmpi eq, %16, %c1_i32_6 : i32
    %18 = arith.andi %6, %17 : i1
    %19 = arith.extui %18 : i1 to i32
    %c0_i32_7 = arith.constant 0 : i32
    %20 = arith.cmpi ne, %19, %c0_i32_7 : i32
    scf.if %20 {
      %c0 = arith.constant 0 : index
      %c0_18 = arith.constant 0 : index
      %38 = vector.load %arg3[%c0, %c0_18] : memref<128x128xi8, #tpu.memory_space<vmem>>, vector<128x128xi8>
      %39 = arith.sitofp %38 : vector<128x128xi8> to vector<128x128xf32>
      %40 = arith.truncf %39 : vector<128x128xf32> to vector<128x128xbf16>
      %c0_19 = arith.constant 0 : index
      %c0_20 = arith.constant 0 : index
      %41 = vector.load %arg11[%c0_19, %c0_20] : memref<128x128xbf16, #tpu.memory_space<vmem>>, vector<128x128xbf16>
      %cst = arith.constant dense<0.000000e+00> : vector<128x128xf32>
      %42 = tpu.matmul %40, %41, %cst {dimension_numbers = #tpu.dot_dimension_numbers<[1], [0], [0], [1], [0, 0, 1, 1], [], []>} : vector<128x128xbf16>, vector<128x128xbf16>, vector<128x128xf32> -> vector<128x128xf32>
      %cst_21 = arith.constant 0.000000e+00 : f32
      %cst_22 = arith.constant 5.000000e+00 : f32
      %43 = vector.broadcast %cst_21 : f32 to vector<128x128xf32>
      %44 = arith.maximumf %43, %42 : vector<128x128xf32>
      %45 = vector.broadcast %cst_22 : f32 to vector<128x128xf32>
      %46 = arith.minimumf %45, %44 : vector<128x128xf32>
      %47 = arith.index_cast %1 : i32 to index
      %c0_23 = arith.constant 0 : index
      %48 = vector.load %arg11[%47, %c0_23] : memref<128x128xbf16, #tpu.memory_space<vmem>>, vector<128x128xbf16>
      %49 = arith.extf %48 : vector<128x128xbf16> to vector<128x128xf32>
      %c0_24 = arith.constant 0 : index
      %c0_25 = arith.constant 0 : index
      %c0_26 = arith.constant 0 : index
      %c0_27 = arith.constant 0 : index
      %50 = vector.load %arg6[%c0_24, %c0_25, %c0_26, %c0_27] : memref<1x2x128x128xf32, #tpu.memory_space<vmem>>, vector<1x1x128x128xf32>
      %51 = vector.shape_cast %50 : vector<1x1x128x128xf32> to vector<128x128xf32>
      %cst_28 = arith.constant dense<0.000000e+00> : vector<128x128xf32>
      %52 = tpu.matmul %49, %51, %cst_28 {dimension_numbers = #tpu.dot_dimension_numbers<[1], [0], [0], [1], [0, 0, 1, 1], [], []>} : vector<128x128xf32>, vector<128x128xf32>, vector<128x128xf32> -> vector<128x128xf32>
      %c0_29 = arith.constant 0 : index
      %c1 = arith.constant 1 : index
      %c0_30 = arith.constant 0 : index
      %c0_31 = arith.constant 0 : index
      %53 = vector.load %arg6[%c0_29, %c1, %c0_30, %c0_31] : memref<1x2x128x128xf32, #tpu.memory_space<vmem>>, vector<1x1x128x128xf32>
      %54 = vector.shape_cast %53 : vector<1x1x128x128xf32> to vector<128x128xf32>
      %cst_32 = arith.constant dense<0.000000e+00> : vector<128x128xf32>
      %55 = tpu.matmul %46, %54, %cst_32 {dimension_numbers = #tpu.dot_dimension_numbers<[1], [0], [0], [1], [0, 0, 1, 1], [], []>} : vector<128x128xf32>, vector<128x128xf32>, vector<128x128xf32> -> vector<128x128xf32>
      %56 = arith.addf %52, %55 : vector<128x128xf32>
      %c0_33 = arith.constant 0 : index
      %c0_34 = arith.constant 0 : index
      %c0_35 = arith.constant 0 : index
      %57 = vector.load %arg7[%c0_33, %c0_34, %c0_35] : memref<1x1x128xf32, #tpu.memory_space<vmem>>, vector<1x1x128xf32>
      %58 = vector.shape_cast %57 : vector<1x1x128xf32> to vector<1x128xf32>
      %59 = vector.broadcast %58 : vector<1x128xf32> to vector<128x128xf32>
      %60 = arith.addf %56, %59 : vector<128x128xf32>
      %cst_36 = arith.constant dense<0xFF800000> : vector<128xf32>
      %61 = vector.multi_reduction <maximumf>, %60, %cst_36 [1] : vector<128x128xf32> to vector<128xf32>
      %62 = vector.shape_cast %61 : vector<128xf32> to vector<128x1xf32>
      %63 = vector.broadcast %62 : vector<128x1xf32> to vector<128x128xf32>
      %64 = arith.cmpf oeq, %60, %63 : vector<128x128xf32>
      %c1073741824_i32 = arith.constant 1073741824 : i32
      %65 = vector.broadcast %c1073741824_i32 : i32 to vector<128x128xi32>
      %66 = arith.select %64, %2, %65 : vector<128x128xi1>, vector<128x128xi32>
      %cst_37 = arith.constant dense<2147483647> : vector<128xi32>
      %67 = vector.multi_reduction <minsi>, %66, %cst_37 [1] : vector<128x128xi32> to vector<128xi32>
      %68 = vector.shape_cast %67 : vector<128xi32> to vector<128x1xi32>
      %69 = vector.broadcast %68 : vector<128x1xi32> to vector<128x128xi32>
      %70 = arith.cmpi eq, %2, %69 : vector<128x128xi32>
      %71 = arith.extui %70 : vector<128x128xi1> to vector<128x128xi32>
      %72 = arith.sitofp %71 : vector<128x128xi32> to vector<128x128xf32>
      %73 = arith.truncf %72 : vector<128x128xf32> to vector<128x128xbf16>
      %74 = arith.index_cast %1 : i32 to index
      %c0_38 = arith.constant 0 : index
      %75 = vector.load %arg12[%74, %c0_38] : memref<128x128xbf16, #tpu.memory_space<vmem>>, vector<128x128xbf16>
      tpu.vector_store %arg12[%74, %c0_38], %73 {strides = array<i32>} : memref<128x128xbf16, #tpu.memory_space<vmem>>, vector<128x128xbf16>,
      %76 = arith.index_cast %1 : i32 to index
      %c0_39 = arith.constant 0 : index
      %77 = vector.load %arg13[%76, %c0_39] : memref<128x128xf32, #tpu.memory_space<vmem>>, vector<128x128xf32>
      %c0_40 = arith.constant 0 : index
      %c0_41 = arith.constant 0 : index
      %c0_42 = arith.constant 0 : index
      %78 = vector.load %arg8[%c0_40, %c0_41, %c0_42] : memref<1x128x128xf32, #tpu.memory_space<vmem>>, vector<1x128x128xf32>
      %79 = vector.shape_cast %78 : vector<1x128x128xf32> to vector<128x128xf32>
      %cst_43 = arith.constant dense<0.000000e+00> : vector<128x128xf32>
      %80 = tpu.matmul %72, %79, %cst_43 {dimension_numbers = #tpu.dot_dimension_numbers<[1], [0], [0], [1], [0, 0, 1, 1], [], []>} : vector<128x128xf32>, vector<128x128xf32>, vector<128x128xf32> -> vector<128x128xf32>
      %81 = arith.addf %77, %80 : vector<128x128xf32>
      %82 = arith.index_cast %1 : i32 to index
      %c0_44 = arith.constant 0 : index
      %83 = vector.load %arg13[%82, %c0_44] : memref<128x128xf32, #tpu.memory_space<vmem>>, vector<128x128xf32>
      tpu.vector_store %arg13[%82, %c0_44], %81 {strides = array<i32>} : memref<128x128xf32, #tpu.memory_space<vmem>>, vector<128x128xf32>,
    } else {
    }
    %c2_i32_8 = arith.constant 2 : i32
    %c0_i32_9 = arith.constant 0 : i32
    %21 = arith.cmpi eq, %c2_i32_8, %c0_i32_9 : i32
    %c1_i32_10 = arith.constant 1 : i32
    %22 = arith.select %21, %c1_i32_10, %c2_i32_8 : i32
    %23 = arith.remsi %arg0, %22 : i32
    %c0_i32_11 = arith.constant 0 : i32
    %24 = arith.cmpi ne, %23, %c0_i32_11 : i32
    %c0_i32_12 = arith.constant 0 : i32
    %25 = arith.cmpi slt, %23, %c0_i32_12 : i32
    %c0_i32_13 = arith.constant 0 : i32
    %26 = arith.cmpi slt, %22, %c0_i32_13 : i32
    %27 = arith.xori %25, %26 : i1
    %28 = arith.andi %27, %24 : i1
    %29 = arith.addi %23, %22 : i32
    %30 = arith.select %28, %29, %23 : i32
    %c0_i32_14 = arith.constant 0 : i32
    %31 = arith.cmpi eq, %30, %c0_i32_14 : i32
    %32 = arith.andi %6, %31 : i1
    %33 = arith.extui %32 : i1 to i32
    %c0_i32_15 = arith.constant 0 : i32
    %34 = arith.cmpi ne, %33, %c0_i32_15 : i32
    scf.if %34 {
      %c0 = arith.constant 0 : index
      %c0_18 = arith.constant 0 : index
      %38 = vector.load %arg3[%c0, %c0_18] : memref<128x128xi8, #tpu.memory_space<vmem>>, vector<128x128xi8>
      %39 = arith.sitofp %38 : vector<128x128xi8> to vector<128x128xf32>
      %40 = arith.truncf %39 : vector<128x128xf32> to vector<128x128xbf16>
      %c0_19 = arith.constant 0 : index
      %c0_20 = arith.constant 0 : index
      %41 = vector.load %arg12[%c0_19, %c0_20] : memref<128x128xbf16, #tpu.memory_space<vmem>>, vector<128x128xbf16>
      %cst = arith.constant dense<0.000000e+00> : vector<128x128xf32>
      %42 = tpu.matmul %40, %41, %cst {dimension_numbers = #tpu.dot_dimension_numbers<[1], [0], [0], [1], [0, 0, 1, 1], [], []>} : vector<128x128xbf16>, vector<128x128xbf16>, vector<128x128xf32> -> vector<128x128xf32>
      %cst_21 = arith.constant 0.000000e+00 : f32
      %cst_22 = arith.constant 5.000000e+00 : f32
      %43 = vector.broadcast %cst_21 : f32 to vector<128x128xf32>
      %44 = arith.maximumf %43, %42 : vector<128x128xf32>
      %45 = vector.broadcast %cst_22 : f32 to vector<128x128xf32>
      %46 = arith.minimumf %45, %44 : vector<128x128xf32>
      %47 = arith.index_cast %1 : i32 to index
      %c0_23 = arith.constant 0 : index
      %48 = vector.load %arg12[%47, %c0_23] : memref<128x128xbf16, #tpu.memory_space<vmem>>, vector<128x128xbf16>
      %49 = arith.extf %48 : vector<128x128xbf16> to vector<128x128xf32>
      %c0_24 = arith.constant 0 : index
      %c0_25 = arith.constant 0 : index
      %c0_26 = arith.constant 0 : index
      %c0_27 = arith.constant 0 : index
      %50 = vector.load %arg6[%c0_24, %c0_25, %c0_26, %c0_27] : memref<1x2x128x128xf32, #tpu.memory_space<vmem>>, vector<1x1x128x128xf32>
      %51 = vector.shape_cast %50 : vector<1x1x128x128xf32> to vector<128x128xf32>
      %cst_28 = arith.constant dense<0.000000e+00> : vector<128x128xf32>
      %52 = tpu.matmul %49, %51, %cst_28 {dimension_numbers = #tpu.dot_dimension_numbers<[1], [0], [0], [1], [0, 0, 1, 1], [], []>} : vector<128x128xf32>, vector<128x128xf32>, vector<128x128xf32> -> vector<128x128xf32>
      %c0_29 = arith.constant 0 : index
      %c1 = arith.constant 1 : index
      %c0_30 = arith.constant 0 : index
      %c0_31 = arith.constant 0 : index
      %53 = vector.load %arg6[%c0_29, %c1, %c0_30, %c0_31] : memref<1x2x128x128xf32, #tpu.memory_space<vmem>>, vector<1x1x128x128xf32>
      %54 = vector.shape_cast %53 : vector<1x1x128x128xf32> to vector<128x128xf32>
      %cst_32 = arith.constant dense<0.000000e+00> : vector<128x128xf32>
      %55 = tpu.matmul %46, %54, %cst_32 {dimension_numbers = #tpu.dot_dimension_numbers<[1], [0], [0], [1], [0, 0, 1, 1], [], []>} : vector<128x128xf32>, vector<128x128xf32>, vector<128x128xf32> -> vector<128x128xf32>
      %56 = arith.addf %52, %55 : vector<128x128xf32>
      %c0_33 = arith.constant 0 : index
      %c0_34 = arith.constant 0 : index
      %c0_35 = arith.constant 0 : index
      %57 = vector.load %arg7[%c0_33, %c0_34, %c0_35] : memref<1x1x128xf32, #tpu.memory_space<vmem>>, vector<1x1x128xf32>
      %58 = vector.shape_cast %57 : vector<1x1x128xf32> to vector<1x128xf32>
      %59 = vector.broadcast %58 : vector<1x128xf32> to vector<128x128xf32>
      %60 = arith.addf %56, %59 : vector<128x128xf32>
      %cst_36 = arith.constant dense<0xFF800000> : vector<128xf32>
      %61 = vector.multi_reduction <maximumf>, %60, %cst_36 [1] : vector<128x128xf32> to vector<128xf32>
      %62 = vector.shape_cast %61 : vector<128xf32> to vector<128x1xf32>
      %63 = vector.broadcast %62 : vector<128x1xf32> to vector<128x128xf32>
      %64 = arith.cmpf oeq, %60, %63 : vector<128x128xf32>
      %c1073741824_i32 = arith.constant 1073741824 : i32
      %65 = vector.broadcast %c1073741824_i32 : i32 to vector<128x128xi32>
      %66 = arith.select %64, %2, %65 : vector<128x128xi1>, vector<128x128xi32>
      %cst_37 = arith.constant dense<2147483647> : vector<128xi32>
      %67 = vector.multi_reduction <minsi>, %66, %cst_37 [1] : vector<128x128xi32> to vector<128xi32>
      %68 = vector.shape_cast %67 : vector<128xi32> to vector<128x1xi32>
      %69 = vector.broadcast %68 : vector<128x1xi32> to vector<128x128xi32>
      %70 = arith.cmpi eq, %2, %69 : vector<128x128xi32>
      %71 = arith.extui %70 : vector<128x128xi1> to vector<128x128xi32>
      %72 = arith.sitofp %71 : vector<128x128xi32> to vector<128x128xf32>
      %73 = arith.truncf %72 : vector<128x128xf32> to vector<128x128xbf16>
      %74 = arith.index_cast %1 : i32 to index
      %c0_38 = arith.constant 0 : index
      %75 = vector.load %arg11[%74, %c0_38] : memref<128x128xbf16, #tpu.memory_space<vmem>>, vector<128x128xbf16>
      tpu.vector_store %arg11[%74, %c0_38], %73 {strides = array<i32>} : memref<128x128xbf16, #tpu.memory_space<vmem>>, vector<128x128xbf16>,
      %76 = arith.index_cast %1 : i32 to index
      %c0_39 = arith.constant 0 : index
      %77 = vector.load %arg13[%76, %c0_39] : memref<128x128xf32, #tpu.memory_space<vmem>>, vector<128x128xf32>
      %c0_40 = arith.constant 0 : index
      %c0_41 = arith.constant 0 : index
      %c0_42 = arith.constant 0 : index
      %78 = vector.load %arg8[%c0_40, %c0_41, %c0_42] : memref<1x128x128xf32, #tpu.memory_space<vmem>>, vector<1x128x128xf32>
      %79 = vector.shape_cast %78 : vector<1x128x128xf32> to vector<128x128xf32>
      %cst_43 = arith.constant dense<0.000000e+00> : vector<128x128xf32>
      %80 = tpu.matmul %72, %79, %cst_43 {dimension_numbers = #tpu.dot_dimension_numbers<[1], [0], [0], [1], [0, 0, 1, 1], [], []>} : vector<128x128xf32>, vector<128x128xf32>, vector<128x128xf32> -> vector<128x128xf32>
      %81 = arith.addf %77, %80 : vector<128x128xf32>
      %82 = arith.index_cast %1 : i32 to index
      %c0_44 = arith.constant 0 : index
      %83 = vector.load %arg13[%82, %c0_44] : memref<128x128xf32, #tpu.memory_space<vmem>>, vector<128x128xf32>
      tpu.vector_store %arg13[%82, %c0_44], %81 {strides = array<i32>} : memref<128x128xf32, #tpu.memory_space<vmem>>, vector<128x128xf32>,
    } else {
    }
    %c2_i32_16 = arith.constant 2 : i32
    %35 = arith.cmpi eq, %arg0, %c2_i32_16 : i32
    %36 = arith.extui %35 : i1 to i32
    %c0_i32_17 = arith.constant 0 : i32
    %37 = arith.cmpi ne, %36, %c0_i32_17 : i32
    scf.if %37 {
      %38 = arith.index_cast %1 : i32 to index
      %c0 = arith.constant 0 : index
      %39 = vector.load %arg13[%38, %c0] : memref<128x128xf32, #tpu.memory_space<vmem>>, vector<128x128xf32>
      %cst = arith.constant dense<0xFF800000> : vector<128xf32>
      %40 = vector.multi_reduction <maximumf>, %39, %cst [1] : vector<128x128xf32> to vector<128xf32>
      %41 = vector.shape_cast %40 : vector<128xf32> to vector<128x1xf32>
      %42 = vector.broadcast %41 : vector<128x1xf32> to vector<128x128xf32>
      %43 = arith.subf %39, %42 : vector<128x128xf32>
      %44 = math.exp %43 : vector<128x128xf32>
      %cst_18 = arith.constant dense<0.000000e+00> : vector<128xf32>
      %45 = vector.multi_reduction <add>, %44, %cst_18 [1] : vector<128x128xf32> to vector<128xf32>
      %46 = vector.shape_cast %45 : vector<128xf32> to vector<128x1xf32>
      %47 = math.log %46 : vector<128x1xf32>
      %48 = arith.addf %41, %47 : vector<128x1xf32>
      %49 = vector.broadcast %48 : vector<128x1xf32> to vector<128x128xf32>
      %50 = arith.subf %39, %49 : vector<128x128xf32>
      %c0_19 = arith.constant 0 : index
      %c0_20 = arith.constant 0 : index
      %51 = vector.load %arg10[%c0_19, %c0_20] : memref<128x128xf32, #tpu.memory_space<vmem>>, vector<128x128xf32>
      tpu.vector_store %arg10[%c0_19, %c0_20], %50 {strides = array<i32>} : memref<128x128xf32, #tpu.memory_space<vmem>>, vector<128x128xf32>,
    } else {
    }
    return
  }
  func.func @transform_0(%arg0: i32, %arg1: i32) -> (i32, i32) {
    %c0_i32 = arith.constant 0 : i32
    %0 = arith.cmpi eq, %arg0, %c0_i32 : i32
    %c0_i32_0 = arith.constant 0 : i32
    %1 = arith.select %0, %arg1, %c0_i32_0 : i32
    %c0_i32_1 = arith.constant 0 : i32
    %c0_i32_2 = arith.constant 0 : i32
    return %1, %c0_i32_1 : i32, i32
  }
  func.func @transform_1(%arg0: i32, %arg1: i32) -> (i32, i32) {
    %c1_i32 = arith.constant 1 : i32
    %0 = arith.cmpi sge, %arg0, %c1_i32 : i32
    %c0_i32 = arith.constant 0 : i32
    %1 = arith.select %0, %arg1, %c0_i32 : i32
    %c0_i32_0 = arith.constant 0 : i32
    %c0_i32_1 = arith.constant 0 : i32
    return %1, %c0_i32_0 : i32, i32
  }
  func.func @transform_2(%arg0: i32, %arg1: i32) -> (i32, i32) {
    %c0_i32 = arith.constant 0 : i32
    %c0_i32_0 = arith.constant 0 : i32
    %c0_i32_1 = arith.constant 0 : i32
    return %c0_i32, %c0_i32_0 : i32, i32
  }
  func.func @transform_3(%arg0: i32, %arg1: i32) -> (i32, i32) {
    %c0_i32 = arith.constant 0 : i32
    %c0_i32_0 = arith.constant 0 : i32
    %c0_i32_1 = arith.constant 0 : i32
    return %c0_i32, %c0_i32_0 : i32, i32
  }
  func.func @transform_4(%arg0: i32, %arg1: i32) -> (i32, i32, i32, i32) {
    %c1_i32 = arith.constant 1 : i32
    %0 = arith.subi %arg0, %c1_i32 : i32
    %c0_i32 = arith.constant 0 : i32
    %1 = arith.maxsi %0, %c0_i32 : i32
    %c0_i32_0 = arith.constant 0 : i32
    %c0_i32_1 = arith.constant 0 : i32
    %c0_i32_2 = arith.constant 0 : i32
    %c0_i32_3 = arith.constant 0 : i32
    return %1, %c0_i32_0, %c0_i32_1, %c0_i32_2 : i32, i32, i32, i32
  }
  func.func @transform_5(%arg0: i32, %arg1: i32) -> (i32, i32, i32) {
    %c1_i32 = arith.constant 1 : i32
    %0 = arith.subi %arg0, %c1_i32 : i32
    %c0_i32 = arith.constant 0 : i32
    %1 = arith.maxsi %0, %c0_i32 : i32
    %c0_i32_0 = arith.constant 0 : i32
    %c0_i32_1 = arith.constant 0 : i32
    %c0_i32_2 = arith.constant 0 : i32
    return %1, %c0_i32_0, %c0_i32_1 : i32, i32, i32
  }
  func.func @transform_6(%arg0: i32, %arg1: i32) -> (i32, i32, i32) {
    %c0_i32 = arith.constant 0 : i32
    %c0_i32_0 = arith.constant 0 : i32
    %c0_i32_1 = arith.constant 0 : i32
    return %arg0, %c0_i32, %c0_i32_0 : i32, i32, i32
  }
  func.func @transform_7(%arg0: i32, %arg1: i32) -> (i32, i32) {
    %c0_i32 = arith.constant 0 : i32
    %c0_i32_0 = arith.constant 0 : i32
    %c0_i32_1 = arith.constant 0 : i32
    return %c0_i32, %c0_i32_0 : i32, i32
  }
  func.func @transform_8(%arg0: i32, %arg1: i32) -> (i32, i32) {
    %c2_i32 = arith.constant 2 : i32
    %0 = arith.cmpi eq, %arg0, %c2_i32 : i32
    %c0_i32 = arith.constant 0 : i32
    %1 = arith.select %0, %arg1, %c0_i32 : i32
    %c0_i32_0 = arith.constant 0 : i32
    %c0_i32_1 = arith.constant 0 : i32
    return %1, %c0_i32_0 : i32, i32
  }
}

</mosaic_0001>

<bundles_post_ra>
// kernel: tpu_custom_call.1
= control target key start
LH: loop header
LB: loop body
LE: loop exit
PB: predicated region body
PF: predicated region fallthrough
CT: control target
= control target key end

     0   :  { %s7366_s0 = inlined_call_operand.hbm [shape: f32[128,128], index: 0, kind: input, shape index: {}]   ;;  %s7367_s1 = inlined_call_operand.hbm [shape: s8[128,128], index: 1, kind: input, shape index: {}]   ;;  %s7368_s2 = inlined_call_operand.hbm [shape: f32[128,128], index: 2, kind: input, shape index: {}]   ;;  %s7369_s3 = inlined_call_operand.vmem [shape: f32[1,128], index: 3, kind: input, shape index: {}]   ;;  %s7370_s4 = inlined_call_operand.hbm [shape: f32[2,2,128,128], index: 4, kind: input, shape index: {}]   ;;  %s7371_s5 = inlined_call_operand.vmem [shape: f32[2,1,128], index: 5, kind: input, shape index: {}]   ;;  %s7372_s6 = inlined_call_operand.hbm [shape: f32[3,128,128], index: 6, kind: input, shape index: {}]   ;;  %s7373_s7 = inlined_call_operand.vmem [shape: f32[1,128], index: 7, kind: input, shape index: {}]   ;;  %s7374_s8 = inlined_call_operand.hbm [shape: f32[128,128], index: 8, kind: output, shape index: {}]  }
   0x1   :  { %7389 = sst [smem:[#allocation24_spill]] %s7368_s2 }
   0x2   :  { %7390 = sst [smem:[#allocation25_spill]] %s7369_s3 }
   0x3   :  { %7391 = sst [smem:[#allocation26_spill]] %s7370_s4 }
   0x4   :  { %7392 = sst [smem:[#allocation27_spill]] %s7373_s7 }
   0x5   :  { %7393 = sst [smem:[#allocation28_spill]] %s7374_s8 }
   0x6   :  { %13 = vsyncpa [#allocation6], 0 }
   0x7   :  { %15 = vsyncpa [#allocation6 + $0x1], 0 }
   0x8   :  { %16 = vsyncpa [#allocation9], 0 }
   0x9   :  { %18 = vsyncpa [#allocation9 + $0x1], 0 }
   0xa   :  { %19 = vsyncpa [#allocation12], 0 }
   0xb   :  { %21 = vsyncpa [#allocation12 + $0x1], 0 }
   0xc   :  { %22 = vsyncpa [#allocation7], 0 }
   0xd   :  { %24 = vsyncpa [#allocation7 + $0x1], 0  ;;  %s5672_s27 = smov 0   ;;  %s5674_s28 = smov 0  }
   0xe   :  { %s5676_s29 = smov 0   ;;  %s5678_s30 = smov 0  }
   0xf   :  { %s5680_s9 = smov 0   ;;  %s5682_s10 = smov 0  }
  0x10   :  { %s5684_s11 = smov 0   ;;  %s5686_s12 = smov 0  }
  0x11   :  { %s5688_s13 = smov 0  }
  0x12 LB: > { %7394 = sst [smem:[#allocation21_spill]] %s5597_s10  ;;  %s5714_s14 = sadd.s32 4294967295, %s5609_s13   ;;  %s5609_s13 = sphi %s5688_s13, %s30_s13   ;;  %s5605_s12 = sphi %s5686_s12, %s7438_s12   ;;  %s5601_s11 = sphi %s5684_s11, %s7437_s11   ;;  %s5597_s10 = sphi %s5682_s10, %s7430_s10   ;;  %s5593_s9 = sphi %s5680_s9, %s7436_s9   ;;  %s5589_s30 = sphi %s5678_s30, %s7435_s30   ;;  %s5585_s29 = sphi %s5676_s29, %s7434_s29   ;;  %s5581_s28 = sphi %s5674_s28, %s7433_s28   ;;  %s5577_s27 = sphi %s5672_s27, %s7432_s27  }
  0x13   : > { %p170_p0 = scmp.ne.s32.totalorder %s5593_s9, %s5589_s30  ;;  %p7375_p1 = scmp.eq.s32.totalorder %s5714_s14, 0 }
  0x14   : > { %p228_p2 = scmp.ne.s32.totalorder %s5581_s28, %s5577_s27  ;;  %p3887_p3 = scmp.ge.s32.totalorder %s5609_s13, 1 }
  0x15   : > { %p5723_p4 = por %p7375_p1, %p170_p0  ;;  %p290_p5 = scmp.lt.s32.totalorder %s5609_s13, 4 }
  0x16   : > { %p5730_p6 = por %p228_p2, %p7375_p1  ;;  %s5611_s19 = smov [#allocation10]  }
  0x17   : > { %s7395_s16 = scalar_select %p5723_p4, 1, 0 }
  0x18   : > { %s7396_s17 = scalar_select %p5730_p6, 1, 0 }
  0x19   : > { %p5734_p7 = pnand %p3887_p3, %p290_p5  ;;  %s302_s20 = sshll.u32 %s5611_s19, 4  ;;  %s303_s20 = int_to_ptr.vmem [resolvable:$true] %s302_s20 }
  0x1a   : > { %s7399_s2 = sld [smem:[#allocation24_spill]] }
  0x1b   : > { %s7397_s18 = scalar_select %p5734_p7, 1, 0 }
  0x1c   : > { %p5164_p8 = pneg %p5734_p7 }
  0x1e   : > { %p5742_p9 = pnand %p5164_p8, %p7375_p1 }
  0x20   : > { %s5345_s24 = scalar_lea.hbm %s7399_s2, 2048  ;;  %p5347_p11 = pneg %p5742_p9 }
  0x21   : > { %p5346_p10 = scmp.ne.s32.totalorder %s7399_s2, %s5345_s24  ;;  %p5352_p0 = scmp.lt.u32.totalorder %s5345_s24, %s7399_s2 }
  0x23   : > { %p5348_p12 = pnand %p5347_p11, %p5346_p10 }
  0x25   : > { %p5349_p13 = pneg %p5348_p12 }
  0x27   : > { %p5354_p2 = pnand %p5352_p0, %p5349_p13 }
  0x29   : > { %5357 = shalt.err (!%p5354_p2)
}
  0x2a   : > { %s5358_s19 = scalar_lea.vmem %s303_s20, 2048  ;;  %p5366_p1 = scmp.lt.s32.totalorder %s303_s20, %s303_s20 }
  0x2b   : > { %p5359_p3 = scmp.ne.s32.totalorder %s303_s20, %s5358_s19  ;;  %p5367_p6 = scmp.lt.s32.totalorder %s5358_s19, %s5358_s19 }
  0x2d   : > { %p5361_p5 = pnand %p5359_p3, %p5347_p11  ;;  %p5368_p4 = por %p5367_p6, %p5366_p1 }
  0x2f   : > { %p5362_p8 = pneg %p5361_p5 }
  0x31   : > { %p5369_p7 = pnand %p5368_p4, %p5362_p8 }
  0x33   : > { %5372 = shalt.err (!%p5369_p7)
}
  0x34   : > { %s7379_s22 = smov 128   ;;  %s7381_s23 = smov 8  }
  0x35   : > { %5167 = dma.hbm_to_vmem [thread:$0]  (!%p5742_p9), %s7399_s2, 2048, %s303_s20, [#allocation9], %s7379_s22, %s7379_s22, %s7381_s23  }
  0x36   : > { %s42_s26 = sadd.s32 1, %s5605_s12  ;;  %s3883_s27 = sadd.s32 4294967295, %s5605_s12 }
  0x37   : > { %p44_p1 = scmp.ge.s32.totalorder %s42_s26, 3  ;;  %p149_p4 = scmp.gt.s32.totalorder %s3883_s27, 0 }
  0x38   : > { %s157_s30 = sadd.s32 1, %s5597_s10  ;;  %p164_p6 = scmp.ne.s32.totalorder %s5597_s10, %s5593_s9 }
  0x39   : > { %s7440_s26 = smov (%p44_p1, %s42_s26), 0  ;;  %s7442_s27 = smov (!%p149_p4, %s3883_s27), 0 }
  0x3a   : > { %7400 = sst [smem:[#allocation22_spill]] %s7440_s26  ;;  %s3884_s21 = sadd.s32 4294967295, %s7440_s26 }
  0x3b   : > { %p152_p7 = scmp.gt.s32.totalorder %s3884_s21, 0  ;;  %p7386_p10 = scmp.eq.s32.totalorder %s5609_s13, 0 }
  0x3c   : > { %s212_s19 = ssub.s32 %s5605_s12, %s7440_s26  ;;  %p7385_p9 = scmp.lt.s32.totalorder %s5609_s13, 3 }
  0x3d   : > { %s7444_s21 = smov (!%p152_p7, %s3884_s21), 0  ;;  %p166_p11 = por %p7386_p10, %p164_p6 }
  0x3e   : > { %p5779_p12 = scmp.eq.s32.totalorder %s212_s19, 0  ;;  %s154_s24 = ssub.s32 %s7442_s27, %s7444_s21 }
  0x3f   : > { %s7387_s25 = sand.u32 1, %s5609_s13   ;;  %p155_p13 = scmp.eq.s32.totalorder %s154_s24, 0 }
  0x40   : > { %s7401_s20 = scalar_select %p5779_p12, 1, 0 }
  0x41   : > { %s370_s15 = sand.u32 1, %s5597_s10   ;;  %s4052_s22 = sshll.u32 %s7442_s27, 12 }
  0x42   : > { %s5786_s23 = scalar_select %p155_p13, %s5597_s10, %s157_s30  }
  0x43   : > { %s3892_s2 = sshll.u32 %s370_s15, 8  ;;  %s7403_s4 = sld [smem:[#allocation26_spill]] }
  0x44   : > { %7402 = sst [smem:[#allocation23_spill]] %s5786_s23  ;;  %p5795_p0 = pnand %p7385_p9, %p166_p11 }
  0x45   : > { %s372_s27 = scalar_lea.vmem [#allocation11], %s3892_s2  ;;  %s5803_s15 = scalar_lea.sflag [#allocation12], %s7387_s25 }
  0x46   : > { %s382_s30 = sshll.u32 %s372_s27, 4  ;;  %p5375_p3 = pneg %p5795_p0  ;;  %s5799_s30 = int_to_ptr.vmem [resolvable:$true] %s382_s30 }
  0x49   : > { %s5791_s26 = scalar_lea.hbm %s7403_s4, %s4052_s22  ;;  %s5378_s21 = scalar_lea.hbm %s7403_s4, 8192 }
  0x4a   : > { %s5373_s7 = scalar_lea.hbm %s5791_s26, 4096  ;;  %p5379_p1 = scmp.lt.u32.totalorder %s5791_s26, %s7403_s4 }
  0x4b   : > { %p5374_p2 = scmp.ne.s32.totalorder %s5791_s26, %s5373_s7  ;;  %p5380_p4 = scmp.lt.u32.totalorder %s5378_s21, %s5373_s7 }
  0x4c   : > { %p5382_p7 = scmp.lt.u32.totalorder %s5373_s7, %s5791_s26 }
  0x4d   : > { %p5376_p5 = pnand %p5375_p3, %p5374_p2  ;;  %p5381_p6 = por %p5380_p4, %p5379_p1 }
  0x4f   : > { %p5377_p8 = pneg %p5376_p5  ;;  %p5383_p11 = por %p5382_p7, %p5381_p6 }
  0x51   : > { %p5384_p13 = pnand %p5383_p11, %p5377_p8 }
  0x53   : > { %5387 = shalt.err (!%p5384_p13)
}
  0x54   : > { %s5388_s27 = scalar_lea.vmem %s5799_s30, 4096  ;;  %s5614_s8 = smov [#allocation11]  }
  0x55   : > { %p5389_p2 = scmp.ne.s32.totalorder %s5799_s30, %s5388_s27  ;;  %s5393_s22 = sshll.u32 %s5614_s8, 4  ;;  %s5394_s22 = int_to_ptr.vmem [resolvable:$false] %s5393_s22 }
  0x56   : > { %s5395_s24 = scalar_lea.vmem %s5394_s22, 8192  ;;  %p5396_p10 = scmp.lt.s32.totalorder %s5799_s30, %s5394_s22 }
  0x57   : > { %p5391_p5 = pnand %p5389_p2, %p5375_p3  ;;  %p5397_p1 = scmp.lt.s32.totalorder %s5395_s24, %s5388_s27 }
  0x59   : > { %p5392_p9 = pneg %p5391_p5  ;;  %p5398_p4 = por %p5397_p1, %p5396_p10 }
  0x5b   : > { %p5399_p6 = pnand %p5398_p4, %p5392_p9 }
  0x5d   : > { %5402 = shalt.err (!%p5399_p6)
}
  0x5e   : > { %s7405_s7 = smov 8   ;;  %s7406_s21 = smov 128  }
  0x5f   : > { %5177 = dma.hbm_to_vmem [thread:$0]  (!%p5795_p0), %s5791_s26, 4096, %s5799_s30, %s5803_s15, %s7406_s21, %s7406_s21, %s7405_s7  }
  0x60   : > { %s5615_s2 = smov [#allocation5]   ;;  %p7407_p3 = scmp.eq.s32.totalorder %s5609_s13, 0 }
  0x61   : > { %s335_s8 = sshll.u32 %s5615_s2, 4  ;;  %p7408_p8 = scmp.lt.s32.totalorder %s5609_s13, 3  ;;  %s336_s8 = int_to_ptr.vmem [resolvable:$true] %s335_s8 }
  0x62   : > { %s5403_s24 = scalar_lea.hbm %s7366_s0, 2048 }
  0x63   : > { %p5838_p7 = pnand %p7408_p8, %p7407_p3  ;;  %p5404_p10 = scmp.ne.s32.totalorder %s7366_s0, %s5403_s24 }
  0x64   : > { %p5410_p13 = scmp.lt.u32.totalorder %s5403_s24, %s7366_s0 }
  0x65   : > { %p5405_p9 = pneg %p5838_p7 }
  0x67   : > { %p5406_p0 = pnand %p5405_p9, %p5404_p10 }
  0x69   : > { %p5407_p11 = pneg %p5406_p0 }
  0x6b   : > { %p5412_p2 = pnand %p5410_p13, %p5407_p11 }
  0x6d   : > { %5415 = shalt.err (!%p5412_p2)
}
  0x6e   : > { %s5416_s2 = scalar_lea.vmem %s336_s8, 2048  ;;  %s5423_s4 = scalar_lea.vmem %s336_s8, 4096 }
  0x6f   : > { %p5417_p5 = scmp.ne.s32.totalorder %s336_s8, %s5416_s2  ;;  %p5424_p6 = scmp.lt.s32.totalorder %s336_s8, %s336_s8 }
  0x70   : > { %p5425_p3 = scmp.lt.s32.totalorder %s5423_s4, %s5416_s2 }
  0x71   : > { %p5419_p1 = pnand %p5417_p5, %p5405_p9 }
  0x72   : > { %p5426_p8 = por %p5425_p3, %p5424_p6 }
  0x73   : > { %p5420_p4 = pneg %p5419_p1 }
  0x75   : > { %p5427_p12 = pnand %p5426_p8, %p5420_p4 }
  0x77   : > { %5430 = shalt.err (!%p5427_p12)
}
  0x78   : > { %5171 = dma.hbm_to_vmem [thread:$0]  (!%p5838_p7), %s7366_s0, 2048, %s336_s8, [#allocation6], %s7406_s21, %s7406_s21, %s7405_s7  }
  0x79   : > { %s5616_s22 = smov [#allocation8]   ;;  %s7410_s26 = sand.u32 1, %s5609_s13  }
  0x7a   : > { %s358_s24 = sshll.u32 %s5616_s22, 4  ;;  %s346_s30 = scalar_lea.sflag [#allocation9], %s7410_s26  ;;  %s359_s24 = int_to_ptr.vmem [resolvable:$true] %s358_s24 }
  0x7b   : > { %s5431_s23 = scalar_lea.hbm %s7367_s1, 512 }
  0x7c   : > { %p5432_p12 = scmp.ne.s32.totalorder %s7367_s1, %s5431_s23  ;;  %p5438_p11 = scmp.lt.u32.totalorder %s5431_s23, %s7367_s1 }
  0x7e   : > { %p5434_p10 = pnand %p5432_p12, %p5405_p9 }
  0x80   : > { %p5435_p0 = pneg %p5434_p10 }
  0x82   : > { %p5440_p13 = pnand %p5438_p11, %p5435_p0 }
  0x84   : > { %5443 = shalt.err (!%p5440_p13)
}
  0x85   : > { %s5444_s8 = scalar_lea.vmem %s359_s24, 512  ;;  %s5451_s22 = scalar_lea.vmem %s359_s24, 1024 }
  0x86   : > { %p5445_p2 = scmp.ne.s32.totalorder %s359_s24, %s5444_s8  ;;  %p5452_p4 = scmp.lt.s32.totalorder %s359_s24, %s359_s24 }
  0x87   : > { %p5453_p6 = scmp.lt.s32.totalorder %s5451_s22, %s5444_s8 }
  0x88   : > { %p5447_p5 = pnand %p5445_p2, %p5405_p9 }
  0x89   : > { %p5454_p3 = por %p5453_p6, %p5452_p4 }
  0x8a   : > { %p5448_p1 = pneg %p5447_p5 }
  0x8c   : > { %p5455_p8 = pnand %p5454_p3, %p5448_p1 }
  0x8e   : > { %5458 = shalt.err (!%p5455_p8)
}
  0x8f   : > { %5174 = dma.hbm_to_vmem [thread:$0]  (!%p5838_p7), %s7367_s1, 512, %s359_s24, %s346_s30, %s7406_s21, %s7406_s21, %s7405_s7  }
  0x90   : > { %s215_s23 = sadd.s32 1, %s5585_s29  ;;  %p222_p9 = scmp.ne.s32.totalorder %s5585_s29, %s5581_s28 }
  0x91   : > { %p7411_p12 = scmp.ne.s32.totalorder %s7401_s20, 0  ;;  %p7412_p10 = scmp.eq.s32.totalorder %s5609_s13, 0 }
  0x92   : > { %s406_s26 = sand.u32 1, %s5585_s29   ;;  %s4053_s4 = sshll.u32 %s5605_s12, 11 }
  0x93   : > { %s5898_s27 = scalar_select %p7411_p12, %s5585_s29, %s215_s23  }
  0x94   : > { %p224_p0 = por %p222_p9, %p7412_p10  ;;  %s3896_s2 = sshll.u32 %s406_s26, 7 }
  0x95   : > { %s5907_s8 = scalar_lea.hbm %s7372_s6, %s4053_s4  ;;  %s408_s24 = scalar_lea.vmem [#allocation13], %s3896_s2 }
  0x96   : > { %s415_s30 = sshll.u32 %s408_s24, 4  ;;  %p7413_p7 = scmp.lt.s32.totalorder %s5609_s13, 3  ;;  %s5915_s30 = int_to_ptr.vmem [resolvable:$true] %s415_s30 }
  0x97   : > { %s5459_s22 = scalar_lea.hbm %s5907_s8, 2048  ;;  %s5464_s23 = scalar_lea.hbm %s7372_s6, 6144 }
  0x98   : > { %p5911_p11 = pnand %p7413_p7, %p224_p0  ;;  %p5460_p13 = scmp.ne.s32.totalorder %s5907_s8, %s5459_s22 }
  0x99   : > { %p5465_p4 = scmp.lt.u32.totalorder %s5907_s8, %s7372_s6  ;;  %p5466_p6 = scmp.lt.u32.totalorder %s5464_s23, %s5459_s22 }
  0x9a   : > { %p5461_p2 = pneg %p5911_p11  ;;  %p5468_p8 = scmp.lt.u32.totalorder %s5459_s22, %s5907_s8 }
  0x9b   : > { %p5467_p3 = por %p5466_p6, %p5465_p4 }
  0x9c   : > { %p5462_p5 = pnand %p5461_p2, %p5460_p13 }
  0x9d   : > { %p5469_p9 = por %p5468_p8, %p5467_p3 }
  0x9e   : > { %p5463_p1 = pneg %p5462_p5 }
  0xa0   : > { %p5470_p12 = pnand %p5469_p9, %p5463_p1 }
  0xa2   : > { %5473 = shalt.err (!%p5470_p12)
}
  0xa3   : > { %s5474_s4 = scalar_lea.vmem %s5915_s30, 2048  ;;  %s5617_s25 = smov [#allocation13]  }
  0xa4   : > { %p5475_p10 = scmp.ne.s32.totalorder %s5915_s30, %s5474_s4  ;;  %s5479_s19 = sshll.u32 %s5617_s25, 4  ;;  %s5480_s19 = int_to_ptr.vmem [resolvable:$false] %s5479_s19 }
  0xa5   : > { %s5481_s24 = scalar_lea.vmem %s5480_s19, 4096  ;;  %p5482_p13 = scmp.lt.s32.totalorder %s5915_s30, %s5480_s19 }
  0xa6   : > { %p5477_p0 = pnand %p5475_p10, %p5461_p2  ;;  %p5483_p5 = scmp.lt.s32.totalorder %s5481_s24, %s5474_s4 }
  0xa8   : > { %p5478_p7 = pneg %p5477_p0  ;;  %p5484_p4 = por %p5483_p5, %p5482_p13 }
  0xaa   : > { %p5485_p6 = pnand %p5484_p4, %p5478_p7 }
  0xac   : > { %5488 = shalt.err (!%p5485_p6)
}
  0xad   : > { %5180 = dma.hbm_to_vmem [thread:$0]  (!%p5911_p11), %s5907_s8, 2048, %s5915_s30, %s5803_s15, %s7406_s21, %s7406_s21, %s7405_s7  }
  0xae   : > { %p7415_p2 = scmp.ne.s32.totalorder %s7397_s18, 0 }
  0xaf   : > { %p7416_p1 = scmp.eq.s32.totalorder (!%p7415_p2), %s5714_s14, 0 }
  0xb0   : > { %427 = sbr.rel (%p7415_p2) target bundleno = 3903 (0xf3f), region = 52 }
  0xb7   : > { %5552 = dma.done.wait (%p7416_p1), [#allocation6], 2048   ;;  %p7417_p3 = pmov %p7416_p1 }
  0xb8   : > { %s438_s22 = sand.u32 1, %s5714_s14   ;;  %p7418_p8 = pmov %p7416_p1 }
  0xb9   : > { %5554 = vsyncadd (%p7417_p3), [#allocation6], 4294965248  ;;  %s439_s20 = scalar_lea.sflag [#allocation9], %s438_s22 }
  0xba   : > { %5556 = dma.done.wait (%p7418_p8), %s439_s20, 512   ;;  %p7419_p9 = pmov %p7416_p1 }
  0xbb   : > { %p7420_p11 = pmov %p7416_p1 }
  0xbc   : > { %5558 = vsyncadd (%p7419_p9), %s439_s20, 4294966784 }
  0xbd   : > { %5560 = dma.done.wait (%p7420_p11), [#allocation9], 2048   ;;  %p7421_p12 = pmov %p7416_p1 }
  0xbe   : > { %s453_s18 = sand.u32 1, %s5593_s9   ;;  %s452_s7 = scalar_lea.sflag [#allocation12], %s438_s22 }
  0xbf   : > { %5562 = vsyncadd (%p7421_p12), [#allocation9], 4294965248  ;;  %s3903_s15 = sshll.u32 %s453_s18, 8  ;;  %p7422_p10 = scmp.ne.s32.totalorder %s7395_s16, 0 }
  0xc0   : > { %s5962_s21 = scalar_lea.vmem [#allocation11], %s3903_s15 }
  0xc1   : > { %5564 = dma.done.wait (%p7422_p10), %s452_s7, 4096  }
  0xc2   : > { %5566 = vsyncadd (%p7422_p10), %s452_s7, 4294963200  ;;  %s462_s8 = sand.u32 1, %s5581_s28   ;;  %p7423_p0 = scmp.ne.s32.totalorder %s7396_s17, 0 }
  0xc3   : > { %s3904_s30 = sshll.u32 %s462_s8, 7 }
  0xc4   : > { %s5969_s3 = scalar_lea.vmem [#allocation13], %s3904_s30 }
  0xc5   : > { %5568 = dma.done.wait (%p7423_p0), %s452_s7, 2048  }
  0xc6   : > { %5570 = vsyncadd (%p7423_p0), %s452_s7, 4294965248  ;;  %s3905_s10 = sadd.s32 4294967295, %s5601_s11  ;;  %v541_v0 = vlaneseq  ;;  %p3911_p5 = scmp.ne.s32.totalorder %s5601_s11, 0 }
  0xc7   : > { %p528_p7 = scmp.gt.s32.totalorder %s3905_s10, 0  ;;  %p3906_p13 = scmp.lt.s32.totalorder %s3905_s10, 1  ;;  %v563_v2 = vld [vmem:[#allocation10] sm:$0xff] (!%p3911_p5)  ;;  %v564_v3 = vld [vmem:[#allocation10 + $0x8] sm:$0xff] (!%p3911_p5)  ;;  %v565_v4 = vld [vmem:[#allocation10 + $0x10] sm:$0xff] (!%p3911_p5) }
  0xc8   : > { %v5976_v1 = vand.u32 127, %v541_v0  ;;  %546 = sbr.rel (%p3911_p5) target bundleno = 1136 (0x470), region = 76  ;;  %v4856_v5 = vpack.c.bf16 (!%p3911_p5), %v564_v3, %v563_v2  ;;  %v566_v6 = vld [vmem:[#allocation10 + $0x18] sm:$0xff] (!%p3911_p5)  ;;  %v567_v8 = vld [vmem:[#allocation10 + $0x20] sm:$0xff] (!%p3911_p5)  ;;  %v568_v9 = vld [vmem:[#allocation10 + $0x28] sm:$0xff] (!%p3911_p5)  ;;  %s7424_s4 = sld [smem:[#allocation25_spill]] (!%p3911_p5) }
  0xc9   : > { %s7446_s10 = smov (!%p528_p7, %s3905_s10), 0  ;;  %v4860_v7 = vpack.c.bf16 (!%p3911_p5), %v566_v6, %v565_v4  ;;  %v4864_v10 = vpack.c.bf16 (!%p3911_p5), %v568_v9, %v567_v8  ;;  %v547_v11 = vld [vmem:[#allocation5] sm:$0xff] (!%p3911_p5)  ;;  %v569_v12 = vld [vmem:[#allocation10 + $0x30] sm:$0xff] (!%p3911_p5)  ;;  %v570_v13 = vld [vmem:[#allocation10 + $0x38] sm:$0xff] (!%p3911_p5)  ;;  %s7425_s24 = sld [smem:[#allocation27_spill]] (!%p3911_p5) }
  0xca   : > { %s7448_s10 = smov (!%p3906_p13, %s7446_s10), 1  ;;  %4857 = vmatprep.subr.bf16.mxu0 (!%p3911_p5), %v4856_v5  ;;  %4376 = vmatprep.mubr.f32.mxu0 (!%p3911_p5), %v547_v11  ;;  %v4868_v14 = vpack.c.bf16 (!%p3911_p5), %v570_v13, %v569_v12  ;;  %v571_v15 = vld [vmem:[#allocation10 + $0x40] sm:$0xff] (!%p3911_p5)  ;;  %v572_v16 = vld [vmem:[#allocation10 + $0x48] sm:$0xff] (!%p3911_p5)  ;;  %v573_v18 = vld [vmem:[#allocation10 + $0x50] sm:$0xff] (!%p3911_p5) }
  0xcb   : > { %s5981_s26 = scalar_lea.vmem %s7371_s5, %s7448_s10  ;;  %4859 = vmatpush3.bf16.msra.mxu0 (!%p3911_p5), %v4856_v5  ;;  %v4872_v17 = vpack.c.bf16 (!%p3911_p5), %v572_v16, %v571_v15  ;;  %v574_v19 = vld [vmem:[#allocation10 + $0x58] sm:$0xff] (!%p3911_p5)  ;;  %v575_v21 = vld [vmem:[#allocation10 + $0x60] sm:$0xff] (!%p3911_p5)  ;;  %v576_v22 = vld [vmem:[#allocation10 + $0x68] sm:$0xff] (!%p3911_p5) }
  0xcc   : > { %4861 = vmatprep.subr.bf16.mxu0 (!%p3911_p5), %v4860_v7  ;;  %v4876_v20 = vpack.c.bf16 (!%p3911_p5), %v574_v19, %v573_v18  ;;  %v4880_v23 = vpack.c.bf16 (!%p3911_p5), %v576_v22, %v575_v21  ;;  %v577_v24 = vld [vmem:[#allocation10 + $0x70] sm:$0xff] (!%p3911_p5)  ;;  %v578_v25 = vld [vmem:[#allocation10 + $0x78] sm:$0xff] (!%p3911_p5)  ;;  %v548_v27 = vld [vmem:[#allocation5 + $0x8] sm:$0xff] (!%p3911_p5) }
  0xcd   : > { %v4884_v26 = vpack.c.bf16 (!%p3911_p5), %v578_v25, %v577_v24  ;;  %v549_v28 = vld [vmem:[#allocation5 + $0x10] sm:$0xff] (!%p3911_p5)  ;;  %v550_v29 = vld [vmem:[#allocation5 + $0x18] sm:$0xff] (!%p3911_p5)  ;;  %v551_v30 = vld [vmem:[#allocation5 + $0x20] sm:$0xff] (!%p3911_p5) }
  0xce   : > { %v552_v31 = vld [vmem:[#allocation5 + $0x28] sm:$0xff] (!%p3911_p5)  ;;  %v553_v32 = vld [vmem:[#allocation5 + $0x30] sm:$0xff] (!%p3911_p5)  ;;  %v554_v33 = vld [vmem:[#allocation5 + $0x38] sm:$0xff] (!%p3911_p5) }
  0xcf   : > { %4863 = vmatpush3.bf16.msra.mxu0 %v4860_v7  ;;  %v555_v34 = vld [vmem:[#allocation5 + $0x40] sm:$0xff]  ;;  %v556_v35 = vld [vmem:[#allocation5 + $0x48] sm:$0xff]  ;;  %v557_v36 = vld [vmem:[#allocation5 + $0x50] sm:$0xff] }
  0xd0   : > { %4865 = vmatprep.subr.bf16.mxu0 %v4864_v10  ;;  %v558_v37 = vld [vmem:[#allocation5 + $0x58] sm:$0xff]  ;;  %v559_v38 = vld [vmem:[#allocation5 + $0x60] sm:$0xff]  ;;  %v560_v39 = vld [vmem:[#allocation5 + $0x68] sm:$0xff] }
  0xd1   : > { %v561_v40 = vld [vmem:[#allocation5 + $0x70] sm:$0xff]  ;;  %v562_v41 = vld [vmem:[#allocation5 + $0x78] sm:$0xff]  ;;  %v3912_v42 = vld [vmem:[%s7424_s4] ss:$0 sm:$0xff] }
  0xd3   : > { %4867 = vmatpush3.bf16.msra.mxu0 %v4864_v10 }
  0xd4   : > { %4869 = vmatprep.subr.bf16.mxu0 %v4868_v14 }
  0xd7   : > { %4871 = vmatpush3.bf16.msra.mxu0 %v4868_v14 }
  0xd8   : > { %4873 = vmatprep.subr.bf16.mxu0 %v4872_v17 }
  0xdb   : > { %4875 = vmatpush3.bf16.msra.mxu0 %v4872_v17 }
  0xdc   : > { %4877 = vmatprep.subr.bf16.mxu0 %v4876_v20 }
  0xdf   : > { %4879 = vmatpush3.bf16.msra.mxu0 %v4876_v20 }
  0xe0   : > { %4881 = vmatprep.subr.bf16.mxu0 %v4880_v23 }
  0xe3   : > { %4883 = vmatpush3.bf16.msra.mxu0 %v4880_v23 }
  0xe4   : > { %4885 = vmatprep.subr.bf16.mxu0 %v4884_v26 }
  0xe7   : > { %4887 = vmatpush3.bf16.msra.mxu0 %v4884_v26 }
  0xea   : > { %4377 = vmatmul.mubr.f32.vlgmr.msra.gmra.mrb[0].mxu0 %v548_v27 }
  0xeb   : > { %4379 = vmatprep.mubr.f32.mxu0 %v549_v28 }
  0xee   : > { %4380 = vmatmul.mubr.f32.gmra.mrb[2].mxu0 %v550_v29 }
  0xef   : > { %4382 = vmatprep.mubr.f32.mxu0 %v551_v30 }
  0xf2   : > { %4383 = vmatmul.mubr.f32.gmra.mrb[4].mxu0 %v552_v31 }
  0xf3   : > { %4385 = vmatprep.mubr.f32.mxu0 %v553_v32 }
  0xf6   : > { %4386 = vmatmul.mubr.f32.gmra.mrb[6].mxu0 %v554_v33 }
  0xf7   : > { %4388 = vmatprep.mubr.f32.mxu0 %v555_v34 }
  0xfa   : > { %4389 = vmatmul.mubr.f32.gmra.mrb[8].mxu0 %v556_v35 }
  0xfb   : > { %4391 = vmatprep.mubr.f32.mxu0 %v557_v36 }
  0xfe   : > { %4392 = vmatmul.mubr.f32.gmra.mrb[10].mxu0 %v558_v37 }
  0xff   : > { %4394 = vmatprep.mubr.f32.mxu0 %v559_v38 }
 0x102   : > { %4395 = vmatmul.mubr.f32.gmra.mrb[12].mxu0 %v560_v39 }
 0x103   : > { %4397 = vmatprep.mubr.f32.mxu0 %v561_v40 }
 0x106   : > { %4398 = vmatmul.mubr.f32.gmra.mrb[14].mxu0 %v562_v41 }
 0x1bd   : > { %v4378_v43 = vpop.f32.mrb[0].mxu0 }
 0x1be   : > { %v652_v44 = vpop.f32.mrb[1].mxu0  ;;  %v658_v48 = vadd.f32 %v4378_v43, %v3912_v42 }
 0x1bf   : > { %v653_v45 = vadd.f32 %v3912_v42, %v652_v44 }
 0x1c1   : > { %v4381_v46 = vpop.f32.mrb[2].mxu0  ;;  %731 = vmax.xlane.f32.xlu0 %v653_v45 }
 0x1c2   : > { %v662_v47 = vpop.f32.mrb[3].mxu0  ;;  %v668_v52 = vadd.f32 %v4381_v46, %v3912_v42 }
 0x1c3   : > { %v663_v49 = vadd.f32 %v3912_v42, %v662_v47 }
 0x1c5   : > { %v4384_v50 = vpop.f32.mrb[4].mxu0  ;;  %735 = vmax.xlane.f32.xlu1 %v663_v49  ;;  %733 = vmax.xlane.f32.xlu0 %v658_v48 }
 0x1c6   : > { %v672_v51 = vpop.f32.mrb[5].mxu0  ;;  %v678_v56 = vadd.f32 %v4384_v50, %v3912_v42 }
 0x1c7   : > { %v673_v53 = vadd.f32 %v3912_v42, %v672_v51 }
 0x1c9   : > { %v4387_v54 = vpop.f32.mrb[6].mxu0  ;;  %737 = vmax.xlane.f32.xlu1 %v668_v52  ;;  %739 = vmax.xlane.f32.xlu0 %v673_v53 }
 0x1ca   : > { %v682_v55 = vpop.f32.mrb[7].mxu0  ;;  %v5987_v60 = vadd.f32 %v4387_v54, %v3912_v42 }
 0x1cb   : > { %v683_v57 = vadd.f32 %v3912_v42, %v682_v55 }
 0x1cd   : > { %v4390_v58 = vpop.f32.mrb[8].mxu0  ;;  %741 = vmax.xlane.f32.xlu1 %v678_v56  ;;  %743 = vmax.xlane.f32.xlu0 %v683_v57 }
 0x1ce   : > { %v692_v59 = vpop.f32.mrb[9].mxu0  ;;  %v5993_v0 = vadd.f32 %v4390_v58, %v3912_v42 }
 0x1cf   : > { %v5989_v61 = vadd.f32 %v3912_v42, %v692_v59 }
 0x1d1   : > { %v4393_v62 = vpop.f32.mrb[10].mxu0  ;;  %745 = vmax.xlane.f32.xlu1 %v5987_v60  ;;  %747 = vmax.xlane.f32.xlu0 %v5989_v61 }
 0x1d2   : > { %v702_v63 = vpop.f32.mrb[11].mxu0  ;;  %v5999_v5 = vadd.f32 %v4393_v62, %v3912_v42 }
 0x1d3   : > { %v5995_v2 = vadd.f32 %v3912_v42, %v702_v63 }
 0x1d5   : > { %v4396_v3 = vpop.f32.mrb[12].mxu0  ;;  %749 = vmax.xlane.f32.xlu1 %v5993_v0  ;;  %751 = vmax.xlane.f32.xlu0 %v5995_v2 }
 0x1d6   : > { %v712_v4 = vpop.f32.mrb[13].mxu0  ;;  %v6005_v9 = vadd.f32 %v4396_v3, %v3912_v42 }
 0x1d7   : > { %v6001_v6 = vadd.f32 %v3912_v42, %v712_v4 }
 0x1d9   : > { %v4399_v7 = vpop.f32.mrb[14].mxu0  ;;  %753 = vmax.xlane.f32.xlu1 %v5999_v5  ;;  %755 = vmax.xlane.f32.xlu0 %v6001_v6 }
 0x1da   : > { %v722_v8 = vpop.f32.mrb[15].mxu0  ;;  %v6011_v11 = vadd.f32 %v4399_v7, %v3912_v42 }
 0x1db   : > { %v6007_v10 = vadd.f32 %v3912_v42, %v722_v8 }
 0x1dd   : > { %757 = vmax.xlane.f32.xlu1 %v6005_v9  ;;  %759 = vmax.xlane.f32.xlu0 %v6007_v10 }
 0x1e1   : > { %761 = vmax.xlane.f32.xlu1 %v6011_v11 }
 0x24e   : > { %v732_v12 = vpop.xlane.xlu0 %731 }
 0x24f   : > { %vm763_vm0 = vcmp.eq.f32.partialorder %v653_v45, %v732_v12 }
 0x250   : > { %v6015_v13 = vsel %vm763_vm0, %v5976_v1, 1073741824 }
 0x251   : > { %v796_v14 = vshra.s32 %v6015_v13, 16 }
 0x252   : > { %v736_v15 = vpop.xlane.xlu1 %735  ;;  %v734_v16 = vpop.xlane.xlu0 %733 }
 0x253   : > { %vm765_vm1 = vcmp.eq.f32.partialorder %v663_v49, %v736_v15  ;;  %vm764_vm2 = vcmp.eq.f32.partialorder %v658_v48, %v734_v16  ;;  %v6018_v17 = vcvt.s32.f32 %v796_v14  ;;  %v1088_v15 = vld [vmem:[%s5969_s3 + $0x8] sm:$0xff]  ;;  %v1089_v16 = vld [vmem:[%s5969_s3 + $0x10] sm:$0xff] }
 0x254   : > { %v6021_v18 = vsel %vm765_vm1, %v5976_v1, 1073741824  ;;  %v6024_v19 = vsel %vm764_vm2, %v5976_v1, 1073741824 }
 0x255   : > { %v824_v20 = vshra.s32 %v6021_v18, 16  ;;  %v810_v21 = vshra.s32 %v6024_v19, 16  ;;  %799 = vmin.xlane.f32.xlu0 %v6018_v17 }
 0x256   : > { %v738_v22 = vpop.xlane.xlu1 %737  ;;  %v740_v23 = vpop.xlane.xlu0 %739 }
 0x257   : > { %vm766_vm3 = vcmp.eq.f32.partialorder %v668_v52, %v738_v22  ;;  %vm767_vm4 = vcmp.eq.f32.partialorder %v673_v53, %v740_v23  ;;  %v6035_v26 = vcvt.s32.f32 %v824_v20  ;;  %v6037_v27 = vcvt.s32.f32 %v810_v21  ;;  %v1090_v21 = vld [vmem:[%s5969_s3 + $0x18] sm:$0xff]  ;;  %v1091_v23 = vld [vmem:[%s5969_s3 + $0x20] sm:$0xff] }
 0x258   : > { %v6030_v24 = vsel %vm766_vm3, %v5976_v1, 1073741824  ;;  %v6033_v25 = vsel %vm767_vm4, %v5976_v1, 1073741824  ;;  %v4892_v22 = vpack.c.bf16 %v1090_v21, %v1089_v16 }
 0x259   : > { %v838_v28 = vshra.s32 %v6030_v24, 16  ;;  %v852_v29 = vshra.s32 %v6033_v25, 16  ;;  %827 = vmin.xlane.f32.xlu0 %v6035_v26  ;;  %813 = vmin.xlane.f32.xlu1 %v6037_v27 }
 0x25a   : > { %v742_v30 = vpop.xlane.xlu1 %741  ;;  %v744_v31 = vpop.xlane.xlu0 %743 }
 0x25b   : > { %vm768_vm5 = vcmp.eq.f32.partialorder %v678_v56, %v742_v30  ;;  %vm769_vm6 = vcmp.eq.f32.partialorder %v683_v57, %v744_v31  ;;  %v6049_v34 = vcvt.s32.f32 %v838_v28  ;;  %v6051_v35 = vcvt.s32.f32 %v852_v29  ;;  %v1092_v28 = vld [vmem:[%s5969_s3 + $0x28] sm:$0xff]  ;;  %v1093_v30 = vld [vmem:[%s5969_s3 + $0x30] sm:$0xff]  ;;  %v1094_v31 = vld [vmem:[%s5969_s3 + $0x38] sm:$0xff] }
 0x25c   : > { %v6044_v32 = vsel %vm768_vm5, %v5976_v1, 1073741824  ;;  %v6047_v33 = vsel %vm769_vm6, %v5976_v1, 1073741824  ;;  %v4896_v29 = vpack.c.bf16 %v1092_v28, %v1091_v23  ;;  %v1099_v23 = vld [vmem:[%s5969_s3 + $0x60] sm:$0xff] }
 0x25d   : > { %v866_v36 = vshra.s32 %v6044_v32, 16  ;;  %v880_v37 = vshra.s32 %v6047_v33, 16  ;;  %841 = vmin.xlane.f32.xlu1 %v6049_v34  ;;  %855 = vmin.xlane.f32.xlu0 %v6051_v35 }
 0x25e   : > { %v746_v38 = vpop.xlane.xlu1 %745  ;;  %v748_v39 = vpop.xlane.xlu0 %747 }
 0x25f   : > { %vm770_vm7 = vcmp.eq.f32.partialorder %v5987_v60, %v746_v38  ;;  %vm771_vm8 = vcmp.eq.f32.partialorder %v5989_v61, %v748_v39  ;;  %v6065_v42 = vcvt.s32.f32 %v866_v36  ;;  %v6067_v43 = vcvt.s32.f32 %v880_v37  ;;  %v1095_v37 = vld [vmem:[%s5969_s3 + $0x40] sm:$0xff]  ;;  %v1096_v38 = vld [vmem:[%s5969_s3 + $0x48] sm:$0xff] }
 0x260   : > { %v6060_v40 = vsel %vm770_vm7, %v5976_v1, 1073741824  ;;  %v6063_v41 = vsel %vm771_vm8, %v5976_v1, 1073741824  ;;  %v4900_v36 = vpack.c.bf16 %v1094_v31, %v1093_v30  ;;  %v4904_v39 = vpack.c.bf16 %v1096_v38, %v1095_v37  ;;  %v1101_v37 = vld [vmem:[%s5969_s3 + $0x70] sm:$0xff]  ;;  %v1102_v38 = vld [vmem:[%s5969_s3 + $0x78] sm:$0xff] }
 0x261   : > { %v894_v44 = vshra.s32 %v6060_v40, 16  ;;  %v908_v45 = vshra.s32 %v6063_v41, 16  ;;  %869 = vmin.xlane.f32.xlu1 %v6065_v42  ;;  %883 = vmin.xlane.f32.xlu0 %v6067_v43  ;;  %v907_v16 = vand.u32 65535, %v6063_v41 }
 0x262   : > { %v750_v46 = vpop.xlane.xlu1 %749  ;;  %v752_v47 = vpop.xlane.xlu0 %751 }
 0x263   : > { %vm772_vm9 = vcmp.eq.f32.partialorder %v5993_v0, %v750_v46  ;;  %vm773_vm10 = vcmp.eq.f32.partialorder %v5995_v2, %v752_v47  ;;  %v6081_v50 = vcvt.s32.f32 %v894_v44  ;;  %v6083_v51 = vcvt.s32.f32 %v908_v45  ;;  %v1097_v44 = vld [vmem:[%s5969_s3 + $0x50] sm:$0xff]  ;;  %v1098_v45 = vld [vmem:[%s5969_s3 + $0x58] sm:$0xff] }
 0x264   : > { %v6076_v48 = vsel %vm772_vm9, %v5976_v1, 1073741824  ;;  %v6079_v49 = vsel %vm773_vm10, %v5976_v1, 1073741824  ;;  %v4908_v46 = vpack.c.bf16 %v1098_v45, %v1097_v44  ;;  %v795_v47 = vand.u32 65535, %v6015_v13 }
 0x265   : > { %v922_v52 = vshra.s32 %v6076_v48, 16  ;;  %v936_v53 = vshra.s32 %v6079_v49, 16  ;;  %897 = vmin.xlane.f32.xlu1 %v6081_v50  ;;  %911 = vmin.xlane.f32.xlu0 %v6083_v51  ;;  %v909_v28 = vcvt.s32.f32 %v907_v16 }
 0x266   : > { %v754_v54 = vpop.xlane.xlu1 %753  ;;  %v756_v55 = vpop.xlane.xlu0 %755 }
 0x267   : > { %vm774_vm11 = vcmp.eq.f32.partialorder %v5999_v5, %v754_v54  ;;  %vm775_vm12 = vcmp.eq.f32.partialorder %v6001_v6, %v756_v55  ;;  %v6097_v58 = vcvt.s32.f32 %v922_v52  ;;  %v6099_v59 = vcvt.s32.f32 %v936_v53 }
 0x268   : > { %v6092_v56 = vsel %vm774_vm11, %v5976_v1, 1073741824  ;;  %v6095_v57 = vsel %vm775_vm12, %v5976_v1, 1073741824  ;;  %v797_v52 = vcvt.s32.f32 %v795_v47  ;;  %v823_v54 = vand.u32 65535, %v6021_v18 }
 0x269   : > { %v950_v60 = vshra.s32 %v6092_v56, 16  ;;  %v964_v61 = vshra.s32 %v6095_v57, 16  ;;  %925 = vmin.xlane.f32.xlu1 %v6097_v58  ;;  %939 = vmin.xlane.f32.xlu0 %v6099_v59  ;;  %v809_v55 = vand.u32 65535, %v6024_v19  ;;  %v963_v44 = vand.u32 65535, %v6095_v57 }
 0x26a   : > { %v758_v62 = vpop.xlane.xlu1 %757  ;;  %v760_v63 = vpop.xlane.xlu0 %759 }
 0x26b   : > { %vm776_vm13 = vcmp.eq.f32.partialorder %v6005_v9, %v758_v62  ;;  %vm777_vm14 = vcmp.eq.f32.partialorder %v6007_v10, %v760_v63  ;;  %v6113_v3 = vcvt.s32.f32 %v950_v60  ;;  %v6115_v4 = vcvt.s32.f32 %v964_v61 }
 0x26c   : > { %v6108_v0 = vsel %vm776_vm13, %v5976_v1, 1073741824  ;;  %v6111_v2 = vsel %vm777_vm14, %v5976_v1, 1073741824  ;;  %v825_v61 = vcvt.s32.f32 %v823_v54  ;;  %v811_v62 = vcvt.s32.f32 %v809_v55 }
 0x26d   : > { %v978_v5 = vshra.s32 %v6108_v0, 16  ;;  %v992_v6 = vshra.s32 %v6111_v2, 16  ;;  %953 = vmin.xlane.f32.xlu1 %v6113_v3  ;;  %967 = vmin.xlane.f32.xlu0 %v6115_v4  ;;  %v837_v63 = vand.u32 65535, %v6030_v24  ;;  %v865_v24 = vand.u32 65535, %v6044_v32 }
 0x26e   : > { %v762_v7 = vpop.xlane.xlu1 %761  ;;  %v977_v57 = vand.u32 65535, %v6108_v0  ;;  %v991_v54 = vand.u32 65535, %v6111_v2 }
 0x26f   : > { %vm778_vm15 = vcmp.eq.f32.partialorder %v6011_v11, %v762_v7  ;;  %v6122_v8 = vcvt.s32.f32 %v978_v5  ;;  %v6127_v10 = vcvt.s32.f32 %v992_v6  ;;  %v1087_v11 = vld [vmem:[%s5969_s3] sm:$0xff]  ;;  %v851_v5 = vand.u32 65535, %v6033_v25 }
 0x270   : > { %v6125_v9 = vsel %vm778_vm15, %v5976_v1, 1073741824  ;;  %v4888_v20 = vpack.c.bf16 %v1088_v15, %v1087_v11  ;;  %v839_v19 = vcvt.s32.f32 %v837_v63  ;;  %v879_v25 = vand.u32 65535, %v6047_v33 }
 0x271   : > { %v1006_v12 = vshra.s32 %v6125_v9, 16  ;;  %981 = vmin.xlane.f32.xlu1 %v6122_v8  ;;  %995 = vmin.xlane.f32.xlu0 %v6127_v10  ;;  %v853_v7 = vcvt.s32.f32 %v851_v5  ;;  %v867_v15 = vcvt.s32.f32 %v865_v24  ;;  %v893_v33 = vand.u32 65535, %v6060_v40  ;;  %v1100_v40 = vld [vmem:[%s5969_s3 + $0x68] sm:$0xff] }
 0x272   : > { %4889 = vmatprep.subr.bf16.mxu1 %v4888_v20  ;;  %v881_v32 = vcvt.s32.f32 %v879_v25  ;;  %v4912_v31 = vpack.c.bf16 %v1100_v40, %v1099_v23  ;;  %v1005_v0 = vand.u32 65535, %v6125_v9 }
 0x273   : > { %v6132_v14 = vcvt.s32.f32 %v1006_v12  ;;  %4891 = vmatpush3.bf16.msra.mxu1 %v4888_v20  ;;  %v895_v41 = vcvt.s32.f32 %v893_v33 }
 0x274   : > { %4893 = vmatprep.subr.bf16.mxu1 %v4892_v22  ;;  %v1007_v5 = vcvt.s32.f32 %v1005_v0 }
 0x275   : > { %1009 = vmin.xlane.f32.xlu1 %v6132_v14 }
 0x277   : > { %4895 = vmatpush3.bf16.msra.mxu1 %v4892_v22  ;;  %v921_v22 = vand.u32 65535, %v6076_v48 }
 0x278   : > { %4897 = vmatprep.subr.bf16.mxu1 %v4896_v29 }
 0x27b   : > { %4899 = vmatpush3.bf16.msra.mxu1 %v4896_v29  ;;  %v935_v29 = vand.u32 65535, %v6079_v49 }
 0x27c   : > { %4901 = vmatprep.subr.bf16.mxu1 %v4900_v36 }
 0x27d   : > { %v937_v49 = vcvt.s32.f32 %v935_v29  ;;  %v5619_v29 = vmov 0.0  }
 0x27f   : > { %4903 = vmatpush3.bf16.msra.mxu1 %v4900_v36  ;;  %v923_v36 = vcvt.s32.f32 %v921_v22 }
 0x280   : > { %4905 = vmatprep.subr.bf16.mxu1 %v4904_v39 }
 0x283   : > { %4907 = vmatpush3.bf16.msra.mxu1 %v4904_v39  ;;  %v949_v39 = vand.u32 65535, %v6092_v56 }
 0x284   : > { %4909 = vmatprep.subr.bf16.mxu1 %v4908_v46 }
 0x285   : > { %v951_v56 = vcvt.s32.f32 %v949_v39 }
 0x287   : > { %4911 = vmatpush3.bf16.msra.mxu1 %v4908_v46 }
 0x288   : > { %4913 = vmatprep.subr.bf16.mxu1 %v4912_v31 }
 0x28b   : > { %4915 = vmatpush3.bf16.msra.mxu1 %v4912_v31 }
 0x2e2   : > { %v6148_v53 = vpop.xlane.xlu0 %799 }
 0x2e3   : > { %vm801_vm0 = vcmp.eq.f32.partialorder %v6018_v17, %v6148_v53 }
 0x2e4   : > { %v802_v60 = vsel %vm801_vm0, %v797_v52, inf  ;;  %v965_v52 = vcvt.s32.f32 %v963_v44 }
 0x2e5   : > { %803 = vmin.xlane.f32.xlu0 %v802_v60 }
 0x2e6   : > { %v6156_v6 = vpop.xlane.xlu1 %813  ;;  %v6158_v13 = vpop.xlane.xlu0 %827 }
 0x2e7   : > { %vm815_vm1 = vcmp.eq.f32.partialorder %v6037_v27, %v6156_v6  ;;  %vm829_vm2 = vcmp.eq.f32.partialorder %v6035_v26, %v6158_v13  ;;  %v820_v24 = vcvt.f32.s32 %v6156_v6 }
 0x2e8   : > { %v816_v18 = vsel %vm815_vm1, %v811_v62, inf  ;;  %v830_v17 = vsel %vm829_vm2, %v825_v61, inf  ;;  %v979_v61 = vcvt.s32.f32 %v977_v57  ;;  %v993_v62 = vcvt.s32.f32 %v991_v54 }
 0x2e9   : > { %817 = vmin.xlane.f32.xlu1 %v816_v18  ;;  %831 = vmin.xlane.f32.xlu0 %v830_v17  ;;  %v806_v17 = vcvt.f32.s32 %v6148_v53 }
 0x2ea   : > { %v6166_v12 = vpop.xlane.xlu1 %841  ;;  %v6168_v11 = vpop.xlane.xlu0 %855 }
 0x2eb   : > { %vm843_vm3 = vcmp.eq.f32.partialorder %v6049_v34, %v6166_v12  ;;  %vm857_vm4 = vcmp.eq.f32.partialorder %v6051_v35, %v6168_v11 }
 0x2ec   : > { %v844_v26 = vsel %vm843_vm3, %v839_v19, inf  ;;  %v858_v27 = vsel %vm857_vm4, %v853_v7, inf  ;;  %v807_v7 = vshll.u32 %v806_v17, 16 }
 0x2ed   : > { %845 = vmin.xlane.f32.xlu1 %v844_v26  ;;  %859 = vmin.xlane.f32.xlu0 %v858_v27  ;;  %v848_v26 = vcvt.f32.s32 %v6166_v12  ;;  %v862_v27 = vcvt.f32.s32 %v6168_v11 }
 0x2ee   : > { %v6176_v20 = vpop.xlane.xlu1 %869  ;;  %v6178_v21 = vpop.xlane.xlu0 %883 }
 0x2ef   : > { %vm871_vm5 = vcmp.eq.f32.partialorder %v6065_v42, %v6176_v20  ;;  %vm885_vm6 = vcmp.eq.f32.partialorder %v6067_v43, %v6178_v21  ;;  %v863_v22 = vshll.u32 %v862_v27, 16  ;;  %v876_v12 = vcvt.f32.s32 %v6176_v20 }
 0x2f0   : > { %v872_v34 = vsel %vm871_vm5, %v867_v15, inf  ;;  %v886_v35 = vsel %vm885_vm6, %v881_v32, inf  ;;  %v890_v11 = vcvt.f32.s32 %v6178_v21 }
 0x2f1   : > { %873 = vmin.xlane.f32.xlu1 %v872_v34  ;;  %887 = vmin.xlane.f32.xlu0 %v886_v35  ;;  %v5618_v34 = vmov 1.0   ;;  %v849_v35 = vshll.u32 %v848_v26, 16 }
 0x2f2   : > { %v6188_v30 = vpop.xlane.xlu1 %897  ;;  %v6190_v42 = vpop.xlane.xlu0 %911 }
 0x2f3   : > { %vm899_vm7 = vcmp.eq.f32.partialorder %v6081_v50, %v6188_v30  ;;  %vm913_vm8 = vcmp.eq.f32.partialorder %v6083_v51, %v6190_v42  ;;  %v4916_v50 = vpack.c.bf16 %v1102_v38, %v1101_v37  ;;  %v891_v37 = vshll.u32 %v890_v11, 16 }
 0x2f4   : > { %v900_v43 = vsel %vm899_vm7, %v895_v41, inf  ;;  %v914_v48 = vsel %vm913_vm8, %v909_v28, inf  ;;  %v904_v38 = vcvt.f32.s32 %v6188_v30 }
 0x2f5   : > { %901 = vmin.xlane.f32.xlu1 %v900_v43  ;;  %915 = vmin.xlane.f32.xlu0 %v914_v48 }
 0x2f6   : > { %v6200_v45 = vpop.xlane.xlu1 %925  ;;  %v6202_v46 = vpop.xlane.xlu0 %939  ;;  %4917 = vmatprep.subr.bf16.mxu1 %v4916_v50  ;;  %v905_v57 = vshll.u32 %v904_v38, 16 }
 0x2f7   : > { %vm927_vm9 = vcmp.eq.f32.partialorder %v6097_v58, %v6200_v45  ;;  %vm941_vm10 = vcmp.eq.f32.partialorder %v6099_v59, %v6202_v46  ;;  %4919 = vmatpush3.bf16.msra.mxu1 %v4916_v50 }
 0x2f8   : > { %v928_v51 = vsel %vm927_vm9, %v923_v36, inf  ;;  %v942_v47 = vsel %vm941_vm10, %v937_v49, inf  ;;  %v877_v36 = vshll.u32 %v876_v12, 16  ;;  %v918_v49 = vcvt.f32.s32 %v6190_v42 }
 0x2f9   : > { %929 = vmin.xlane.f32.xlu1 %v928_v51  ;;  %943 = vmin.xlane.f32.xlu0 %v942_v47 }
 0x2fa   : > { %v6210_v55 = vpop.xlane.xlu1 %953  ;;  %v6212_v60 = vpop.xlane.xlu0 %967  ;;  %v919_v54 = vshll.u32 %v918_v49, 16 }
 0x2fb   : > { %vm955_vm11 = vcmp.eq.f32.partialorder %v6113_v3, %v6210_v55  ;;  %vm969_vm12 = vcmp.eq.f32.partialorder %v6115_v4, %v6212_v60 }
 0x2fc   : > { %v956_v58 = vsel %vm955_vm11, %v951_v56, inf  ;;  %v970_v59 = vsel %vm969_vm12, %v965_v52, inf }
 0x2fd   : > { %957 = vmin.xlane.f32.xlu1 %v956_v58  ;;  %971 = vmin.xlane.f32.xlu0 %v970_v59  ;;  %v932_v58 = vcvt.f32.s32 %v6200_v45  ;;  %v946_v59 = vcvt.f32.s32 %v6202_v46 }
 0x2fe   : > { %v6219_v2 = vpop.xlane.xlu1 %981  ;;  %v6221_v63 = vpop.xlane.xlu0 %995 }
 0x2ff   : > { %vm983_vm13 = vcmp.eq.f32.partialorder %v6122_v8, %v6219_v2  ;;  %vm997_vm14 = vcmp.eq.f32.partialorder %v6127_v10, %v6221_v63  ;;  %v834_v10 = vcvt.f32.s32 %v6158_v13  ;;  %v933_v17 = vshll.u32 %v932_v58, 16 }
 0x300   : > { %v984_v3 = vsel %vm983_vm13, %v979_v61, inf  ;;  %v998_v4 = vsel %vm997_vm14, %v993_v62, inf }
 0x301   : > { %985 = vmin.xlane.f32.xlu1 %v984_v3  ;;  %999 = vmin.xlane.f32.xlu0 %v998_v4  ;;  %v835_v33 = vshll.u32 %v834_v10, 16 }
 0x302   : > { %v6227_v18 = vpop.xlane.xlu1 %1009 }
 0x303   : > { %vm1011_vm15 = vcmp.eq.f32.partialorder %v6132_v14, %v6227_v18  ;;  %v821_v14 = vshll.u32 %v820_v24, 16 }
 0x304   : > { %v1012_v9 = vsel %vm1011_vm15, %v1007_v5, inf }
 0x305   : > { %1013 = vmin.xlane.f32.xlu1 %v1012_v9 }
 0x372   : > { %v804_v19 = vpop.xlane.xlu0 %803 }
 0x373   : > { %v805_v8 = vcvt.f32.s32 %v804_v19  ;;  %v947_v19 = vshll.u32 %v946_v59, 16 }
 0x375   : > { %v808_v25 = vadd.s32 %v807_v7, %v805_v8  ;;  %v960_v7 = vcvt.f32.s32 %v6210_v55  ;;  %v974_v8 = vcvt.f32.s32 %v6212_v60 }
 0x376   : > { %v818_v15 = vpop.xlane.xlu1 %817  ;;  %v832_v32 = vpop.xlane.xlu0 %831 }
 0x377   : > { %vm1019_vm0 = vcmp.eq.s32.totalorder %v5976_v1, %v808_v25  ;;  %v819_v16 = vcvt.f32.s32 %v818_v15  ;;  %v833_v53 = vcvt.f32.s32 %v832_v32 }
 0x378   : > { %4432 = vmatprep.mubr.msk.f32.mxu1 %vm1019_vm0, %v5618_v34  ;;  %v3913_v31 = vsel %vm1019_vm0, 1.0, %v5619_v29 }
 0x379   : > { %v822_v6 = vadd.s32 %v821_v14, %v819_v16  ;;  %v836_v13 = vadd.s32 %v835_v33, %v833_v53  ;;  %v961_v14 = vshll.u32 %v960_v7, 16  ;;  %v975_v33 = vshll.u32 %v974_v8, 16 }
 0x37a   : > { %v846_v23 = vpop.xlane.xlu1 %845  ;;  %v860_v40 = vpop.xlane.xlu0 %859  ;;  %v988_v16 = vcvt.f32.s32 %v6219_v2  ;;  %v1002_v53 = vcvt.f32.s32 %v6221_v63 }
 0x37b   : > { %vm1020_vm1 = vcmp.eq.s32.totalorder %v5976_v1, %v822_v6  ;;  %vm1021_vm2 = vcmp.eq.s32.totalorder %v5976_v1, %v836_v13  ;;  %v847_v41 = vcvt.f32.s32 %v846_v23  ;;  %v861_v28 = vcvt.f32.s32 %v860_v40 }
 0x37c   : > { %v3914_v43 = vsel %vm1020_vm1, 1.0, %v5619_v29  ;;  %4433 = vmatmul.mubr.msk.f32.vlgmr.msra.gmra.mrb[0].mxu1 %vm1020_vm1, %v5618_v34  ;;  %v3915_v47 = vsel %vm1021_vm2, 1.0, %v5619_v29  ;;  %v989_v40 = vshll.u32 %v988_v16, 16 }
 0x37d   : > { %v1067_v20 = vpack.c.bf16 %v3914_v43, %v3913_v31  ;;  %v850_v48 = vadd.s32 %v849_v35, %v847_v41  ;;  %v864_v21 = vadd.s32 %v863_v22, %v861_v28  ;;  %4435 = vmatprep.mubr.msk.f32.mxu1 %vm1021_vm2, %v5618_v34  ;;  %v1003_v41 = vshll.u32 %v1002_v53, 16 }
 0x37e   : > { %v874_v39 = vpop.xlane.xlu1 %873  ;;  %v888_v44 = vpop.xlane.xlu0 %887  ;;  %v1016_v28 = vcvt.f32.s32 %v6227_v18 }
 0x37f   : > { %1079 = vst [vmem:[#allocation2] sm:$0xff] %v1067_v20  ;;  %vm1022_vm3 = vcmp.eq.s32.totalorder %v5976_v1, %v850_v48  ;;  %vm1023_vm4 = vcmp.eq.s32.totalorder %v5976_v1, %v864_v21  ;;  %v875_v50 = vcvt.f32.s32 %v874_v39  ;;  %v889_v51 = vcvt.f32.s32 %v888_v44 }
 0x380   : > { %v3916_v56 = vsel %vm1022_vm3, 1.0, %v5619_v29  ;;  %4436 = vmatmul.mubr.msk.f32.gmra.mrb[2].mxu1 %vm1022_vm3, %v5618_v34  ;;  %v3917_v4 = vsel %vm1023_vm4, 1.0, %v5619_v29  ;;  %v1017_v39 = vshll.u32 %v1016_v28, 16 }
 0x381   : > { %v1068_v30 = vpack.c.bf16 %v3916_v56, %v3915_v47  ;;  %v878_v52 = vadd.s32 %v877_v36, %v875_v50  ;;  %v892_v42 = vadd.s32 %v891_v37, %v889_v51  ;;  %4438 = vmatprep.mubr.msk.f32.mxu1 %vm1023_vm4, %v5618_v34 }
 0x382   : > { %v902_v61 = vpop.xlane.xlu1 %901  ;;  %v916_v62 = vpop.xlane.xlu0 %915 }
 0x383   : > { %1080 = vst [vmem:[#allocation2 + $0x8] sm:$0xff] %v1068_v30  ;;  %vm1024_vm5 = vcmp.eq.s32.totalorder %v5976_v1, %v878_v52  ;;  %vm1025_vm6 = vcmp.eq.s32.totalorder %v5976_v1, %v892_v42  ;;  %v903_v0 = vcvt.f32.s32 %v902_v61  ;;  %v917_v3 = vcvt.f32.s32 %v916_v62 }
 0x384   : > { %v3918_v5 = vsel %vm1024_vm5, 1.0, %v5619_v29  ;;  %4439 = vmatmul.mubr.msk.f32.gmra.mrb[4].mxu1 %vm1024_vm5, %v5618_v34  ;;  %v3919_v27 = vsel %vm1025_vm6, 1.0, %v5619_v29 }
 0x385   : > { %v1069_v45 = vpack.c.bf16 %v3918_v5, %v3917_v4  ;;  %v906_v9 = vadd.s32 %v905_v57, %v903_v0  ;;  %v920_v46 = vadd.s32 %v919_v54, %v917_v3  ;;  %4441 = vmatprep.mubr.msk.f32.mxu1 %vm1025_vm6, %v5618_v34  ;;  %v3929_v57 = vld [vmem:[%s7425_s24] ss:$0 sm:$0xff] }
 0x386   : > { %v930_v24 = vpop.xlane.xlu1 %929  ;;  %v944_v10 = vpop.xlane.xlu0 %943 }
 0x387   : > { %1081 = vst [vmem:[#allocation2 + $0x10] sm:$0xff] %v1069_v45  ;;  %vm1026_vm7 = vcmp.eq.s32.totalorder %v5976_v1, %v906_v9  ;;  %vm1027_vm8 = vcmp.eq.s32.totalorder %v5976_v1, %v920_v46  ;;  %v931_v25 = vcvt.f32.s32 %v930_v24  ;;  %v945_v26 = vcvt.f32.s32 %v944_v10 }
 0x388   : > { %v3920_v15 = vsel %vm1026_vm7, 1.0, %v5619_v29  ;;  %4442 = vmatmul.mubr.msk.f32.gmra.mrb[6].mxu1 %vm1026_vm7, %v5618_v34  ;;  %v3921_v12 = vsel %vm1027_vm8, 1.0, %v5619_v29 }
 0x389   : > { %v1070_v55 = vpack.c.bf16 %v3920_v15, %v3919_v27  ;;  %v934_v32 = vadd.s32 %v933_v17, %v931_v25  ;;  %v948_v60 = vadd.s32 %v947_v19, %v945_v26  ;;  %4444 = vmatprep.mubr.msk.f32.mxu1 %vm1027_vm8, %v5618_v34 }
 0x38a   : > { %v958_v6 = vpop.xlane.xlu1 %957  ;;  %v972_v13 = vpop.xlane.xlu0 %971 }
 0x38b   : > { %1082 = vst [vmem:[#allocation2 + $0x18] sm:$0xff] %v1070_v55  ;;  %vm1028_vm9 = vcmp.eq.s32.totalorder %v5976_v1, %v934_v32  ;;  %vm1029_vm10 = vcmp.eq.s32.totalorder %v5976_v1, %v948_v60  ;;  %v959_v35 = vcvt.f32.s32 %v958_v6  ;;  %v973_v22 = vcvt.f32.s32 %v972_v13 }
 0x38c   : > { %v3922_v11 = vsel %vm1028_vm9, 1.0, %v5619_v29  ;;  %4445 = vmatmul.mubr.msk.f32.gmra.mrb[8].mxu1 %vm1028_vm9, %v5618_v34  ;;  %v3923_v21 = vsel %vm1029_vm10, 1.0, %v5619_v29 }
 0x38d   : > { %v1071_v2 = vpack.c.bf16 %v3922_v11, %v3921_v12  ;;  %v962_v23 = vadd.s32 %v961_v14, %v959_v35  ;;  %v976_v63 = vadd.s32 %v975_v33, %v973_v22  ;;  %4447 = vmatprep.mubr.msk.f32.mxu1 %vm1029_vm10, %v5618_v34 }
 0x38e   : > { %v986_v31 = vpop.xlane.xlu1 %985  ;;  %v1000_v43 = vpop.xlane.xlu0 %999 }
 0x38f   : > { %1083 = vst [vmem:[#allocation2 + $0x20] sm:$0xff] %v1071_v2  ;;  %vm1030_vm11 = vcmp.eq.s32.totalorder %v5976_v1, %v962_v23  ;;  %vm1031_vm12 = vcmp.eq.s32.totalorder %v5976_v1, %v976_v63  ;;  %v987_v20 = vcvt.f32.s32 %v986_v31  ;;  %v1001_v48 = vcvt.f32.s32 %v1000_v43 }
 0x390   : > { %v3924_v36 = vsel %vm1030_vm11, 1.0, %v5619_v29  ;;  %4448 = vmatmul.mubr.msk.f32.gmra.mrb[10].mxu1 %vm1030_vm11, %v5618_v34  ;;  %v3925_v50 = vsel %vm1031_vm12, 1.0, %v5619_v29 }
 0x391   : > { %v1072_v37 = vpack.c.bf16 %v3924_v36, %v3923_v21  ;;  %v990_v38 = vadd.s32 %v989_v40, %v987_v20  ;;  %v1004_v18 = vadd.s32 %v1003_v41, %v1001_v48  ;;  %4450 = vmatprep.mubr.msk.f32.mxu1 %vm1031_vm12, %v5618_v34 }
 0x392   : > { %v1014_v49 = vpop.xlane.xlu1 %1013 }
 0x393   : > { %1084 = vst [vmem:[#allocation2 + $0x28] sm:$0xff] %v1072_v37  ;;  %vm1032_vm13 = vcmp.eq.s32.totalorder %v5976_v1, %v990_v38  ;;  %vm1033_vm14 = vcmp.eq.s32.totalorder %v5976_v1, %v1004_v18  ;;  %v1015_v44 = vcvt.f32.s32 %v1014_v49 }
 0x394   : > { %v3926_v51 = vsel %vm1032_vm13, 1.0, %v5619_v29  ;;  %4451 = vmatmul.mubr.msk.f32.gmra.mrb[12].mxu1 %vm1032_vm13, %v5618_v34  ;;  %v3927_v30 = vsel %vm1033_vm14, 1.0, %v5619_v29 }
 0x395   : > { %v1073_v47 = vpack.c.bf16 %v3926_v51, %v3925_v50  ;;  %v1018_v56 = vadd.s32 %v1017_v39, %v1015_v44  ;;  %4453 = vmatprep.mubr.msk.f32.mxu1 %vm1033_vm14, %v5618_v34 }
 0x397   : > { %1085 = vst [vmem:[#allocation2 + $0x30] sm:$0xff] %v1073_v47  ;;  %vm1034_vm15 = vcmp.eq.s32.totalorder %v5976_v1, %v1018_v56 }
 0x398   : > { %v3928_v52 = vsel %vm1034_vm15, 1.0, %v5619_v29  ;;  %4454 = vmatmul.mubr.msk.f32.gmra.mrb[14].mxu1 %vm1034_vm15, %v5618_v34 }
 0x399   : > { %v1074_v42 = vpack.c.bf16 %v3928_v52, %v3927_v30 }
 0x39b   : > { %1086 = vst [vmem:[#allocation2 + $0x38] sm:$0xff] %v1074_v42 }
 0x44f   : > { %v4434_v54 = vpop.f32.mrb[0].mxu1 }
 0x450   : > { %v1182_v58 = vadd.f32 %v4434_v54, %v3929_v57  ;;  %v1176_v59 = vpop.f32.mrb[1].mxu1 }
 0x451   : > { %v1177_v61 = vadd.f32 %v3929_v57, %v1176_v59 }
 0x452   : > { %1257 = vst [vmem:[#allocation4 + $0x8] sm:$0xff] %v1182_v58 }
 0x453   : > { %1256 = vst [vmem:[#allocation4] sm:$0xff] %v1177_v61  ;;  %v4437_v62 = vpop.f32.mrb[2].mxu1 }
 0x454   : > { %v1192_v0 = vadd.f32 %v4437_v62, %v3929_v57  ;;  %v1186_v3 = vpop.f32.mrb[3].mxu1 }
 0x455   : > { %v1187_v4 = vadd.f32 %v3929_v57, %v1186_v3 }
 0x456   : > { %1259 = vst [vmem:[#allocation4 + $0x18] sm:$0xff] %v1192_v0 }
 0x457   : > { %1258 = vst [vmem:[#allocation4 + $0x10] sm:$0xff] %v1187_v4  ;;  %v4440_v29 = vpop.f32.mrb[4].mxu1 }
 0x458   : > { %v1202_v34 = vadd.f32 %v4440_v29, %v3929_v57  ;;  %v1196_v5 = vpop.f32.mrb[5].mxu1 }
 0x459   : > { %v1197_v45 = vadd.f32 %v3929_v57, %v1196_v5 }
 0x45a   : > { %1261 = vst [vmem:[#allocation4 + $0x28] sm:$0xff] %v1202_v34 }
 0x45b   : > { %1260 = vst [vmem:[#allocation4 + $0x20] sm:$0xff] %v1197_v45  ;;  %v4443_v9 = vpop.f32.mrb[6].mxu1 }
 0x45c   : > { %v1212_v46 = vadd.f32 %v4443_v9, %v3929_v57  ;;  %v1206_v17 = vpop.f32.mrb[7].mxu1 }
 0x45d   : > { %v1207_v19 = vadd.f32 %v3929_v57, %v1206_v17 }
 0x45e   : > { %1263 = vst [vmem:[#allocation4 + $0x38] sm:$0xff] %v1212_v46 }
 0x45f   : > { %1262 = vst [vmem:[#allocation4 + $0x30] sm:$0xff] %v1207_v19  ;;  %v4446_v7 = vpop.f32.mrb[8].mxu1 }
 0x460   : > { %v1222_v8 = vadd.f32 %v4446_v7, %v3929_v57  ;;  %v1216_v24 = vpop.f32.mrb[9].mxu1 }
 0x461   : > { %v1217_v10 = vadd.f32 %v3929_v57, %v1216_v24 }
 0x462   : > { %1265 = vst [vmem:[#allocation4 + $0x48] sm:$0xff] %v1222_v8 }
 0x463   : > { %1264 = vst [vmem:[#allocation4 + $0x40] sm:$0xff] %v1217_v10  ;;  %v4449_v25 = vpop.f32.mrb[10].mxu1 }
 0x464   : > { %v1232_v26 = vadd.f32 %v4449_v25, %v3929_v57  ;;  %v1226_v27 = vpop.f32.mrb[11].mxu1 }
 0x465   : > { %v1227_v15 = vadd.f32 %v3929_v57, %v1226_v27 }
 0x466   : > { %1267 = vst [vmem:[#allocation4 + $0x58] sm:$0xff] %v1232_v26 }
 0x467   : > { %1266 = vst [vmem:[#allocation4 + $0x50] sm:$0xff] %v1227_v15  ;;  %v4452_v55 = vpop.f32.mrb[12].mxu1 }
 0x468   : > { %v1242_v32 = vadd.f32 %v4452_v55, %v3929_v57  ;;  %v1236_v60 = vpop.f32.mrb[13].mxu1 }
 0x469   : > { %v1237_v14 = vadd.f32 %v3929_v57, %v1236_v60 }
 0x46a   : > { %1269 = vst [vmem:[#allocation4 + $0x68] sm:$0xff] %v1242_v32 }
 0x46b   : > { %1268 = vst [vmem:[#allocation4 + $0x60] sm:$0xff] %v1237_v14  ;;  %v4455_v33 = vpop.f32.mrb[14].mxu1 }
 0x46c   : > { %v1252_v16 = vadd.f32 %v4455_v33, %v3929_v57  ;;  %v1246_v53 = vpop.f32.mrb[15].mxu1 }
 0x46d   : > { %v1247_v6 = vadd.f32 %v3929_v57, %v1246_v53 }
 0x46e   : > { %1271 = vst [vmem:[#allocation4 + $0x78] sm:$0xff] %v1252_v16 }
 0x46f   : > { %1270 = vst [vmem:[#allocation4 + $0x70] sm:$0xff] %v1247_v6 }
 0x470 PF: > { %p1273_p4 = scmp.lt.s32.totalorder %s5601_s11, 0  ;;  %s1274_s22 = ssub.s32 0, %s5601_s11 }
 0x471   : > { %s3946_s20 = smin.u32 %s5601_s11, %s1274_s22  ;;  %p1272_p2 = scmp.ge.s32.totalorder %s5601_s11, 1 }
 0x472   : > { %s1276_s18 = sand.u32 1, %s3946_s20  }
 0x473   : > { %s1277_s15 = ssub.s32 0, %s1276_s18 }
 0x474   : > { %s7450_s15 = smov (!%p1273_p4, %s1277_s15), %s1276_s18 }
 0x475   : > { %p3948_p6 = scmp.lt.s32.totalorder %s7450_s15, 0  ;;  %s1283_s7 = sadd.s32 2, %s7450_s15 }
 0x477   : > { %s7452_s7 = smov (!%p3948_p6, %s1283_s7), %s7450_s15 }
 0x478   : > { %p1285_p1 = scmp.eq.s32.totalorder %s7452_s7, 1 }
 0x47a   : > { %p1286_p3 = pnand %p1285_p1, %p1272_p2 }
 0x47b   : > { %v6335_v13 = vld [vmem:[#allocation2] sm:$0xff] (!%p1286_p3)  ;;  %v6337_v35 = vld [vmem:[#allocation2 + $0x8] sm:$0xff] (!%p1286_p3)  ;;  %v6342_v12 = vld [vmem:[#allocation2 + $0x10] sm:$0xff] (!%p1286_p3) }
 0x47c   : > { %1289 = sbr.rel (%p1286_p3) target bundleno = 2333 (0x91d), region = 80  ;;  %4456 = vmatprep.subr.bf16.mxu0 (!%p1286_p3), %v6335_v13  ;;  %v1290_v22 = vld [vmem:[#allocation8] sm:$0xff] (!%p1286_p3)  ;;  %v3950_v23 = vld [vmem:[%s5962_s21 + $0x88] sm:$0xff] (!%p1286_p3)  ;;  %v3951_v63 = vld [vmem:[%s5962_s21 + $0x90] sm:$0xff] (!%p1286_p3) }
 0x47d   : > { %4457 = vmatpush3.bf16.msra.mxu0 (!%p1286_p3), %v6335_v13  ;;  %v1294_v11 = vunpack.c.l.s8.bf16 (!%p1286_p3), %v1290_v22  ;;  %v3949_v2 = vld [vmem:[%s5962_s21 + $0x80] sm:$0xff] (!%p1286_p3)  ;;  %v3952_v41 = vld [vmem:[%s5962_s21 + $0x98] sm:$0xff] (!%p1286_p3)  ;;  %v3954_v43 = vld [vmem:[%s5962_s21 + $0xa8] sm:$0xff] (!%p1286_p3)  ;;  %v1295_v58 = vunpack.c.h.s8.bf16 (!%p1286_p3), %v1290_v22 }
 0x47e   : > { %4458 = vmatprep.subr.bf16.mxu0 (!%p1286_p3), %v6337_v35  ;;  %v4920_v40 = vpack.c.bf16 (!%p1286_p3), %v3950_v23, %v3949_v2  ;;  %v4924_v28 = vpack.c.bf16 (!%p1286_p3), %v3952_v41, %v3951_v63  ;;  %v3953_v31 = vld [vmem:[%s5962_s21 + $0xa0] sm:$0xff] (!%p1286_p3)  ;;  %v6352_v20 = vld [vmem:[#allocation2 + $0x18] sm:$0xff] (!%p1286_p3)  ;;  %v3955_v21 = vld [vmem:[%s5962_s21 + $0xb0] sm:$0xff] (!%p1286_p3) }
 0x47f   : > { %4472 = vmatprep.mubr.bf16.mxu0 (!%p1286_p3), %v1294_v11  ;;  %v4928_v48 = vpack.c.bf16 (!%p1286_p3), %v3954_v43, %v3953_v31  ;;  %v3956_v36 = vld [vmem:[%s5962_s21 + $0xb8] sm:$0xff] (!%p1286_p3)  ;;  %v6358_v37 = vld [vmem:[#allocation2 + $0x20] sm:$0xff] (!%p1286_p3)  ;;  %v3958_v49 = vld [vmem:[%s5962_s21 + $0xc8] sm:$0xff] (!%p1286_p3) }
 0x480   : > { %4921 = vmatprep.subr.bf16.mxu1 (!%p1286_p3), %v4920_v40  ;;  %v4932_v38 = vpack.c.bf16 (!%p1286_p3), %v3956_v36, %v3955_v21  ;;  %v3957_v18 = vld [vmem:[%s5962_s21 + $0xc0] sm:$0xff] (!%p1286_p3)  ;;  %v6364_v39 = vld [vmem:[#allocation2 + $0x28] sm:$0xff] (!%p1286_p3)  ;;  %v3959_v50 = vld [vmem:[%s5962_s21 + $0xd0] sm:$0xff] (!%p1286_p3) }
 0x481   : > { %4459 = vmatpush3.bf16.msra.mxu0 (!%p1286_p3), %v6337_v35  ;;  %4923 = vmatpush3.bf16.msra.mxu1 (!%p1286_p3), %v4920_v40  ;;  %v4936_v44 = vpack.c.bf16 (!%p1286_p3), %v3958_v49, %v3957_v18  ;;  %v3960_v51 = vld [vmem:[%s5962_s21 + $0xd8] sm:$0xff] (!%p1286_p3)  ;;  %v6370_v47 = vld [vmem:[#allocation2 + $0x30] sm:$0xff] (!%p1286_p3)  ;;  %v3961_v30 = vld [vmem:[%s5962_s21 + $0xe0] sm:$0xff] (!%p1286_p3) }
 0x482   : > { %4460 = vmatprep.subr.bf16.mxu0 (!%p1286_p3), %v6342_v12  ;;  %4925 = vmatprep.subr.bf16.mxu1 (!%p1286_p3), %v4924_v28  ;;  %v4940_v56 = vpack.c.bf16 (!%p1286_p3), %v3960_v51, %v3959_v50  ;;  %v3962_v52 = vld [vmem:[%s5962_s21 + $0xe8] sm:$0xff] (!%p1286_p3)  ;;  %v6376_v42 = vld [vmem:[#allocation2 + $0x38] sm:$0xff] (!%p1286_p3)  ;;  %v1292_v61 = vld [vmem:[#allocation8 + $0x10] sm:$0xff] (!%p1286_p3) }
 0x483   : > { %v4944_v57 = vpack.c.bf16 %v3962_v52, %v3961_v30  ;;  %v1291_v54 = vld [vmem:[#allocation8 + $0x8] sm:$0xff]  ;;  %v1298_v0 = vunpack.c.l.s8.bf16 %v1292_v61  ;;  %v1293_v3 = vld [vmem:[#allocation8 + $0x18] sm:$0xff]  ;;  %v1299_v4 = vunpack.c.h.s8.bf16 %v1292_v61  ;;  %v3963_v5 = vld [vmem:[%s5962_s21 + $0xf0] sm:$0xff] }
 0x484   : > { %v1296_v59 = vunpack.c.l.s8.bf16 %v1291_v54  ;;  %v1297_v62 = vunpack.c.h.s8.bf16 %v1291_v54  ;;  %v1300_v29 = vunpack.c.l.s8.bf16 %v1293_v3  ;;  %v1301_v34 = vunpack.c.h.s8.bf16 %v1293_v3  ;;  %v3964_v45 = vld [vmem:[%s5962_s21 + $0xf8] sm:$0xff]  ;;  %v1467_v46 = vld [vmem:[%s5962_s21] sm:$0xff]  ;;  %v1468_v17 = vld [vmem:[%s5962_s21 + $0x8] sm:$0xff] }
 0x485   : > { %4461 = vmatpush3.bf16.msra.mxu0 %v6342_v12  ;;  %4927 = vmatpush3.bf16.msra.mxu1 %v4924_v28  ;;  %v4948_v9 = vpack.c.bf16 %v3964_v45, %v3963_v5  ;;  %v4952_v19 = vpack.c.bf16 %v1468_v17, %v1467_v46  ;;  %v1469_v27 = vld [vmem:[%s5962_s21 + $0x10] sm:$0xff]  ;;  %v1470_v15 = vld [vmem:[%s5962_s21 + $0x18] sm:$0xff]  ;;  %v1471_v53 = vld [vmem:[%s5962_s21 + $0x20] sm:$0xff] }
 0x486   : > { %4462 = vmatprep.subr.bf16.mxu0 %v6352_v20  ;;  %4929 = vmatprep.subr.bf16.mxu1 %v4928_v48  ;;  %v4956_v33 = vpack.c.bf16 %v1470_v15, %v1469_v27  ;;  %v1472_v6 = vld [vmem:[%s5962_s21 + $0x28] sm:$0xff]  ;;  %v1473_v31 = vld [vmem:[%s5962_s21 + $0x30] sm:$0xff]  ;;  %v1474_v43 = vld [vmem:[%s5962_s21 + $0x38] sm:$0xff] }
 0x487   : > { %v4960_v40 = vpack.c.bf16 %v1472_v6, %v1471_v53  ;;  %v4964_v18 = vpack.c.bf16 %v1474_v43, %v1473_v31  ;;  %v1476_v50 = vld [vmem:[%s5962_s21 + $0x48] sm:$0xff]  ;;  %v1477_v61 = vld [vmem:[%s5962_s21 + $0x50] sm:$0xff]  ;;  %v1479_v45 = vld [vmem:[%s5962_s21 + $0x60] sm:$0xff]  ;;  %v1452_v6 = vunpack.c.h.bf16 %v6335_v13  ;;  %v1464_v31 = vunpack.c.h.bf16 %v6370_v47 }
 0x488   : > { %v1482_v27 = vld [vmem:[%s5962_s21 + $0x78] sm:$0xff]  ;;  %v1466_v43 = vunpack.c.h.bf16 %v6376_v42 }
 0x489   : > { %4463 = vmatpush3.bf16.msra.mxu0 %v6352_v20  ;;  %4931 = vmatpush3.bf16.msra.mxu1 %v4928_v48 }
 0x48a   : > { %4464 = vmatprep.subr.bf16.mxu0 %v6358_v37  ;;  %4933 = vmatprep.subr.bf16.mxu1 %v4932_v38 }
 0x48d   : > { %4465 = vmatpush3.bf16.msra.mxu0 %v6358_v37  ;;  %4935 = vmatpush3.bf16.msra.mxu1 %v4932_v38 }
 0x48e   : > { %4466 = vmatprep.subr.bf16.mxu0 %v6364_v39  ;;  %4937 = vmatprep.subr.bf16.mxu1 %v4936_v44 }
 0x491   : > { %4467 = vmatpush3.bf16.msra.mxu0 %v6364_v39  ;;  %4939 = vmatpush3.bf16.msra.mxu1 %v4936_v44  ;;  %v1475_v44 = vld [vmem:[%s5962_s21 + $0x40] sm:$0xff] }
 0x492   : > { %4468 = vmatprep.subr.bf16.mxu0 %v6370_v47  ;;  %4941 = vmatprep.subr.bf16.mxu1 %v4940_v56  ;;  %v4968_v54 = vpack.c.bf16 %v1476_v50, %v1475_v44 }
 0x495   : > { %4469 = vmatpush3.bf16.msra.mxu0 %v6370_v47  ;;  %4943 = vmatpush3.bf16.msra.mxu1 %v4940_v56 }
 0x496   : > { %4470 = vmatprep.subr.bf16.mxu0 %v6376_v42  ;;  %4945 = vmatprep.subr.bf16.mxu1 %v4944_v57 }
 0x499   : > { %4471 = vmatpush3.bf16.msra.mxu0 %v6376_v42  ;;  %4947 = vmatpush3.bf16.msra.mxu1 %v4944_v57 }
 0x49a   : > { %4949 = vmatprep.subr.bf16.mxu1 %v4948_v9 }
 0x49c   : > { %4473 = vmatmul.mubr.bf16.vlgmr.msra.gmra.mrb[0].mxu0 %v1295_v58 }
 0x49d   : > { %4476 = vmatprep.mubr.bf16.mxu0 %v1296_v59  ;;  %4951 = vmatpush3.bf16.msra.mxu1 %v4948_v9  ;;  %v1480_v9 = vld [vmem:[%s5962_s21 + $0x68] sm:$0xff] }
 0x49e   : > { %4953 = vmatprep.subr.bf16.mxu1 %v4952_v19 }
 0x4a4   : > { %4477 = vmatmul.mubr.bf16.gmra.mrb[4].mxu0 %v1297_v62  ;;  %v1478_v62 = vld [vmem:[%s5962_s21 + $0x58] sm:$0xff] }
 0x4a5   : > { %4480 = vmatprep.mubr.bf16.mxu0 %v1298_v0 }
 0x4ac   : > { %4481 = vmatmul.mubr.bf16.gmra.mrb[8].mxu0 %v1299_v4 }
 0x4ad   : > { %4484 = vmatprep.mubr.bf16.mxu0 %v1300_v29 }
 0x4b4   : > { %4485 = vmatmul.mubr.bf16.gmra.mrb[12].mxu0 %v1301_v34  ;;  %v4972_v34 = vpack.c.bf16 %v1478_v62, %v1477_v61 }
 0x56f   : > { %v4474_v7 = vpop.f32.mrb[0].mxu0 }
 0x570   : > { %v1344_v8 = vpop.f32.mrb[1].mxu0  ;;  %v1409_v25 = vmax.f32 %v4474_v7, 0.0 }
 0x571   : > { %v4475_v24 = vpop.f32.mrb[2].mxu0  ;;  %v1407_v10 = vmax.f32 %v1344_v8, 0.0 }
 0x572   : > { %v1347_v26 = vpop.f32.mrb[3].mxu0  ;;  %v1410_v60 = vmax.f32 %v4475_v24, 0.0  ;;  %v1425_v16 = vmin.f32 %v1409_v25, 5.0  ;;  %v4976_v24 = vpack.c.bf16 %v1480_v9, %v1479_v45 }
 0x573   : > { %v1408_v55 = vmax.f32 %v1347_v26, 0.0  ;;  %v1423_v32 = vmin.f32 %v1407_v10, 5.0  ;;  %v1481_v26 = vld [vmem:[%s5962_s21 + $0x70] sm:$0xff] }
 0x574   : > { %v1426_v2 = vmin.f32 %v1410_v60, 5.0 }
 0x575   : > { %v1424_v14 = vmin.f32 %v1408_v55, 5.0  ;;  %4520 = vmatprep.mubr.f32.mxu1 %v1423_v32 }
 0x577   : > { %v4478_v22 = vpop.f32.mrb[4].mxu0  ;;  %4521 = vmatmul.mubr.f32.vlgmr.msra.gmra.mrb[0].mxu1 %v1424_v14  ;;  %v4980_v14 = vpack.c.bf16 %v1482_v27, %v1481_v26 }
 0x578   : > { %4955 = vmatpush3.bf16.msra.mxu1 %v4952_v19  ;;  %v1360_v11 = vpop.f32.mrb[5].mxu0  ;;  %4523 = vmatprep.mubr.f32.mxu1 %v1425_v16  ;;  %v1413_v41 = vmax.f32 %v4478_v22, 0.0  ;;  %v1451_v16 = vunpack.c.l.bf16 %v6335_v13  ;;  %v1453_v22 = vunpack.c.l.bf16 %v6337_v35  ;;  %v1459_v13 = vunpack.c.l.bf16 %v6358_v37 }
 0x579   : > { %v1411_v23 = vmax.f32 %v1360_v11, 0.0  ;;  %v4479_v63 = vpop.f32.mrb[6].mxu0  ;;  %4957 = vmatprep.subr.bf16.mxu1 %v4956_v33  ;;  %v1454_v11 = vunpack.c.h.bf16 %v6337_v35  ;;  %v1461_v35 = vunpack.c.l.bf16 %v6364_v39 }
 0x57a   : > { %v1363_v28 = vpop.f32.mrb[7].mxu0  ;;  %v1414_v36 = vmax.f32 %v4479_v63, 0.0  ;;  %v1429_v49 = vmin.f32 %v1413_v41, 5.0  ;;  %v1457_v63 = vunpack.c.l.bf16 %v6352_v20  ;;  %v1460_v41 = vunpack.c.h.bf16 %v6358_v37  ;;  %v3965_v37 = vld [vmem:[%s5981_s26] ss:$0 sm:$0xff] }
 0x57b   : > { %v1427_v48 = vmin.f32 %v1411_v23, 5.0  ;;  %v1412_v21 = vmax.f32 %v1363_v28, 0.0  ;;  %4524 = vmatmul.mubr.f32.gmra.mrb[2].mxu1 %v1426_v2  ;;  %v1455_v2 = vunpack.c.l.bf16 %v6342_v12  ;;  %v1456_v23 = vunpack.c.h.bf16 %v6342_v12 }
 0x57c   : > { %4959 = vmatpush3.bf16.msra.mxu1 %v4956_v33  ;;  %v1430_v30 = vmin.f32 %v1414_v36, 5.0  ;;  %v1462_v28 = vunpack.c.h.bf16 %v6364_v39  ;;  %v1463_v12 = vunpack.c.l.bf16 %v6370_v47 }
 0x57d   : > { %v1428_v38 = vmin.f32 %v1412_v21, 5.0  ;;  %4526 = vmatprep.mubr.f32.mxu1 %v1427_v48  ;;  %4961 = vmatprep.subr.bf16.mxu1 %v4960_v40 }
 0x57f   : > { %v4482_v51 = vpop.f32.mrb[8].mxu0  ;;  %4527 = vmatmul.mubr.f32.gmra.mrb[4].mxu1 %v1428_v38 }
 0x580   : > { %4963 = vmatpush3.bf16.msra.mxu1 %v4960_v40  ;;  %v1376_v56 = vpop.f32.mrb[9].mxu0  ;;  %4529 = vmatprep.mubr.f32.mxu1 %v1429_v49  ;;  %v1417_v58 = vmax.f32 %v4482_v51, 0.0  ;;  %v1458_v40 = vunpack.c.h.bf16 %v6352_v20  ;;  %v1465_v20 = vunpack.c.l.bf16 %v6376_v42 }
 0x581   : > { %v1415_v52 = vmax.f32 %v1376_v56, 0.0  ;;  %v4483_v57 = vpop.f32.mrb[10].mxu0  ;;  %4965 = vmatprep.subr.bf16.mxu1 %v4964_v18 }
 0x582   : > { %v1379_v59 = vpop.f32.mrb[11].mxu0  ;;  %v1418_v4 = vmax.f32 %v4483_v57, 0.0  ;;  %v1433_v5 = vmin.f32 %v1417_v58, 5.0 }
 0x583   : > { %v1431_v0 = vmin.f32 %v1415_v52, 5.0  ;;  %v1416_v3 = vmax.f32 %v1379_v59, 0.0  ;;  %4530 = vmatmul.mubr.f32.gmra.mrb[6].mxu1 %v1430_v30 }
 0x584   : > { %4967 = vmatpush3.bf16.msra.mxu1 %v4964_v18  ;;  %v1434_v19 = vmin.f32 %v1418_v4, 5.0 }
 0x585   : > { %v1432_v29 = vmin.f32 %v1416_v3, 5.0  ;;  %4532 = vmatprep.mubr.f32.mxu1 %v1431_v0  ;;  %4969 = vmatprep.subr.bf16.mxu1 %v4968_v54 }
 0x587   : > { %v4486_v46 = vpop.f32.mrb[12].mxu0  ;;  %4533 = vmatmul.mubr.f32.gmra.mrb[8].mxu1 %v1432_v29 }
 0x588   : > { %4971 = vmatpush3.bf16.msra.mxu1 %v4968_v54  ;;  %v1392_v17 = vpop.f32.mrb[13].mxu0  ;;  %4535 = vmatprep.mubr.f32.mxu1 %v1433_v5  ;;  %v1421_v10 = vmax.f32 %v4486_v46, 0.0 }
 0x589   : > { %v1419_v7 = vmax.f32 %v1392_v17, 0.0  ;;  %v4487_v8 = vpop.f32.mrb[14].mxu0  ;;  %4973 = vmatprep.subr.bf16.mxu1 %v4972_v34 }
 0x58a   : > { %v1395_v25 = vpop.f32.mrb[15].mxu0  ;;  %v1422_v32 = vmax.f32 %v4487_v8, 0.0  ;;  %v1437_v33 = vmin.f32 %v1421_v10, 5.0 }
 0x58b   : > { %v1435_v15 = vmin.f32 %v1419_v7, 5.0  ;;  %v1420_v55 = vmax.f32 %v1395_v25, 0.0  ;;  %4536 = vmatmul.mubr.f32.gmra.mrb[10].mxu1 %v1434_v19 }
 0x58c   : > { %4975 = vmatpush3.bf16.msra.mxu1 %v4972_v34  ;;  %v1438_v53 = vmin.f32 %v1422_v32, 5.0 }
 0x58d   : > { %v1436_v60 = vmin.f32 %v1420_v55, 5.0  ;;  %4538 = vmatprep.mubr.f32.mxu1 %v1435_v15  ;;  %4977 = vmatprep.subr.bf16.mxu1 %v4976_v24 }
 0x58f   : > { %4539 = vmatmul.mubr.f32.gmra.mrb[12].mxu1 %v1436_v60 }
 0x590   : > { %4979 = vmatpush3.bf16.msra.mxu1 %v4976_v24  ;;  %4541 = vmatprep.mubr.f32.mxu1 %v1437_v33 }
 0x591   : > { %4981 = vmatprep.subr.bf16.mxu1 %v4980_v14 }
 0x593   : > { %4542 = vmatmul.mubr.f32.gmra.mrb[14].mxu1 %v1438_v53 }
 0x594   : > { %4983 = vmatpush3.bf16.msra.mxu1 %v4980_v14  ;;  %4576 = vmatprep.mubr.f32.mxu1 %v1451_v16 }
 0x597   : > { %4577 = vmatmul.mubr.f32.vlgmr.msra.gmra.mrb[0].mxu1 %v1452_v6 }
 0x598   : > { %4579 = vmatprep.mubr.f32.mxu1 %v1453_v22 }
 0x59b   : > { %4580 = vmatmul.mubr.f32.gmra.mrb[2].mxu1 %v1454_v11 }
 0x59c   : > { %4582 = vmatprep.mubr.f32.mxu1 %v1455_v2 }
 0x59f   : > { %4583 = vmatmul.mubr.f32.gmra.mrb[4].mxu1 %v1456_v23 }
 0x5a0   : > { %4585 = vmatprep.mubr.f32.mxu1 %v1457_v63 }
 0x5a3   : > { %4586 = vmatmul.mubr.f32.gmra.mrb[6].mxu1 %v1458_v40 }
 0x5a4   : > { %4588 = vmatprep.mubr.f32.mxu1 %v1459_v13 }
 0x5a7   : > { %4589 = vmatmul.mubr.f32.gmra.mrb[8].mxu1 %v1460_v41 }
 0x5a8   : > { %4591 = vmatprep.mubr.f32.mxu1 %v1461_v35 }
 0x5ab   : > { %4592 = vmatmul.mubr.f32.gmra.mrb[10].mxu1 %v1462_v28 }
 0x5ac   : > { %4594 = vmatprep.mubr.f32.mxu1 %v1463_v12 }
 0x5af   : > { %4595 = vmatmul.mubr.f32.gmra.mrb[12].mxu1 %v1464_v31 }
 0x5b0   : > { %4597 = vmatprep.mubr.f32.mxu1 %v1465_v20 }
 0x5b3   : > { %4598 = vmatmul.mubr.f32.gmra.mrb[14].mxu1 %v1466_v43 }
 0x66a   : > { %v4578_v48 = vpop.f32.mrb[0].mxu1 }
 0x66b   : > { %v1711_v21 = vpop.f32.mrb[1].mxu1  ;;  %v1798_v18 = vadd.f32 %v4578_v48, %v3965_v37 }
 0x66c   : > { %v1797_v36 = vadd.f32 %v3965_v37, %v1711_v21 }
 0x66e   : > { %1813 = vmax.xlane.f32.xlu0 %v1797_v36  ;;  %v4581_v39 = vpop.f32.mrb[2].mxu1 }
 0x66f   : > { %v1721_v38 = vpop.f32.mrb[3].mxu1  ;;  %v1800_v50 = vadd.f32 %v4581_v39, %v3965_v37 }
 0x670   : > { %v1799_v49 = vadd.f32 %v3965_v37, %v1721_v38 }
 0x672   : > { %1815 = vmax.xlane.f32.xlu0 %v1798_v18  ;;  %1817 = vmax.xlane.f32.xlu1 %v1799_v49  ;;  %v4584_v47 = vpop.f32.mrb[4].mxu1 }
 0x673   : > { %v1731_v44 = vpop.f32.mrb[5].mxu1  ;;  %v1802_v30 = vadd.f32 %v4584_v47, %v3965_v37 }
 0x674   : > { %v1801_v51 = vadd.f32 %v3965_v37, %v1731_v44 }
 0x676   : > { %1819 = vmax.xlane.f32.xlu1 %v1800_v50  ;;  %1821 = vmax.xlane.f32.xlu0 %v1801_v51  ;;  %v4587_v42 = vpop.f32.mrb[6].mxu1 }
 0x677   : > { %v1741_v56 = vpop.f32.mrb[7].mxu1  ;;  %v6416_v58 = vadd.f32 %v4587_v42, %v3965_v37 }
 0x678   : > { %v1803_v52 = vadd.f32 %v3965_v37, %v1741_v56 }
 0x67a   : > { %1823 = vmax.xlane.f32.xlu1 %v1802_v30  ;;  %1825 = vmax.xlane.f32.xlu0 %v1803_v52  ;;  %v4590_v57 = vpop.f32.mrb[8].mxu1 }
 0x67b   : > { %v1751_v54 = vpop.f32.mrb[9].mxu1  ;;  %v6422_v0 = vadd.f32 %v4590_v57, %v3965_v37 }
 0x67c   : > { %v6418_v59 = vadd.f32 %v3965_v37, %v1751_v54 }
 0x67e   : > { %1827 = vmax.xlane.f32.xlu1 %v6416_v58  ;;  %1829 = vmax.xlane.f32.xlu0 %v6418_v59  ;;  %v4593_v61 = vpop.f32.mrb[10].mxu1 }
 0x67f   : > { %v1761_v62 = vpop.f32.mrb[11].mxu1  ;;  %v6428_v34 = vadd.f32 %v4593_v61, %v3965_v37 }
 0x680   : > { %v6424_v3 = vadd.f32 %v3965_v37, %v1761_v62 }
 0x682   : > { %1831 = vmax.xlane.f32.xlu1 %v6422_v0  ;;  %1833 = vmax.xlane.f32.xlu0 %v6424_v3  ;;  %v4596_v4 = vpop.f32.mrb[12].mxu1 }
 0x683   : > { %v1771_v29 = vpop.f32.mrb[13].mxu1  ;;  %v6434_v46 = vadd.f32 %v4596_v4, %v3965_v37 }
 0x684   : > { %v6430_v5 = vadd.f32 %v3965_v37, %v1771_v29 }
 0x686   : > { %1835 = vmax.xlane.f32.xlu1 %v6428_v34  ;;  %1837 = vmax.xlane.f32.xlu0 %v6430_v5  ;;  %v4599_v45 = vpop.f32.mrb[14].mxu1 }
 0x687   : > { %v1781_v9 = vpop.f32.mrb[15].mxu1  ;;  %v6440_v19 = vadd.f32 %v4599_v45, %v3965_v37 }
 0x688   : > { %v6436_v17 = vadd.f32 %v3965_v37, %v1781_v9 }
 0x68a   : > { %1839 = vmax.xlane.f32.xlu1 %v6434_v46  ;;  %1841 = vmax.xlane.f32.xlu0 %v6436_v17 }
 0x68e   : > { %1843 = vmax.xlane.f32.xlu1 %v6440_v19 }
 0x6fb   : > { %v1814_v7 = vpop.xlane.xlu0 %1813 }
 0x6fc   : > { %vm1845_vm0 = vcmp.eq.f32.partialorder %v1797_v36, %v1814_v7 }
 0x6fd   : > { %v6444_v8 = vsel %vm1845_vm0, %v5976_v1, 1073741824 }
 0x6fe   : > { %v1878_v24 = vshra.s32 %v6444_v8, 16 }
 0x6ff   : > { %v1816_v10 = vpop.xlane.xlu0 %1815  ;;  %v1818_v25 = vpop.xlane.xlu1 %1817 }
 0x700   : > { %vm1846_vm1 = vcmp.eq.f32.partialorder %v1798_v18, %v1816_v10  ;;  %vm1847_vm2 = vcmp.eq.f32.partialorder %v1799_v49, %v1818_v25  ;;  %v6447_v26 = vcvt.s32.f32 %v1878_v24  ;;  %v2185_v10 = vld [vmem:[%s5969_s3 + $0x8] sm:$0xff]  ;;  %v2186_v25 = vld [vmem:[%s5969_s3 + $0x10] sm:$0xff] }
 0x701   : > { %v6450_v27 = vsel %vm1846_vm1, %v5976_v1, 1073741824  ;;  %v6453_v15 = vsel %vm1847_vm2, %v5976_v1, 1073741824 }
 0x702   : > { %v1892_v55 = vshra.s32 %v6450_v27, 16  ;;  %v1906_v32 = vshra.s32 %v6453_v15, 16  ;;  %1881 = vmin.xlane.f32.xlu0 %v6447_v26 }
 0x703   : > { %v1820_v60 = vpop.xlane.xlu1 %1819  ;;  %v1822_v14 = vpop.xlane.xlu0 %1821 }
 0x704   : > { %vm1848_vm3 = vcmp.eq.f32.partialorder %v1800_v50, %v1820_v60  ;;  %vm1849_vm4 = vcmp.eq.f32.partialorder %v1801_v51, %v1822_v14  ;;  %v6464_v53 = vcvt.s32.f32 %v1892_v55  ;;  %v6466_v6 = vcvt.s32.f32 %v1906_v32  ;;  %v2187_v32 = vld [vmem:[%s5969_s3 + $0x18] sm:$0xff]  ;;  %v2188_v14 = vld [vmem:[%s5969_s3 + $0x20] sm:$0xff] }
 0x705   : > { %v6459_v33 = vsel %vm1848_vm3, %v5976_v1, 1073741824  ;;  %v6462_v16 = vsel %vm1849_vm4, %v5976_v1, 1073741824  ;;  %v4988_v60 = vpack.c.bf16 %v2187_v32, %v2186_v25 }
 0x706   : > { %v1920_v22 = vshra.s32 %v6459_v33, 16  ;;  %v1934_v11 = vshra.s32 %v6462_v16, 16  ;;  %1895 = vmin.xlane.f32.xlu1 %v6464_v53  ;;  %1909 = vmin.xlane.f32.xlu0 %v6466_v6 }
 0x707   : > { %v1824_v2 = vpop.xlane.xlu1 %1823  ;;  %v1826_v23 = vpop.xlane.xlu0 %1825 }
 0x708   : > { %vm1850_vm5 = vcmp.eq.f32.partialorder %v1802_v30, %v1824_v2  ;;  %vm1851_vm6 = vcmp.eq.f32.partialorder %v1803_v52, %v1826_v23  ;;  %v6478_v13 = vcvt.s32.f32 %v1920_v22  ;;  %v6480_v41 = vcvt.s32.f32 %v1934_v11  ;;  %v2189_v22 = vld [vmem:[%s5969_s3 + $0x28] sm:$0xff]  ;;  %v2190_v2 = vld [vmem:[%s5969_s3 + $0x30] sm:$0xff]  ;;  %v2191_v23 = vld [vmem:[%s5969_s3 + $0x38] sm:$0xff] }
 0x709   : > { %v6473_v63 = vsel %vm1850_vm5, %v5976_v1, 1073741824  ;;  %v6476_v40 = vsel %vm1851_vm6, %v5976_v1, 1073741824  ;;  %v4992_v11 = vpack.c.bf16 %v2189_v22, %v2188_v14  ;;  %v2196_v14 = vld [vmem:[%s5969_s3 + $0x60] sm:$0xff] }
 0x70a   : > { %v1948_v35 = vshra.s32 %v6473_v63, 16  ;;  %v1962_v28 = vshra.s32 %v6476_v40, 16  ;;  %1923 = vmin.xlane.f32.xlu1 %v6478_v13  ;;  %1937 = vmin.xlane.f32.xlu0 %v6480_v41 }
 0x70b   : > { %v1828_v12 = vpop.xlane.xlu1 %1827  ;;  %v1830_v31 = vpop.xlane.xlu0 %1829 }
 0x70c   : > { %vm1852_vm7 = vcmp.eq.f32.partialorder %v6416_v58, %v1828_v12  ;;  %vm1853_vm8 = vcmp.eq.f32.partialorder %v6418_v59, %v1830_v31  ;;  %v6494_v37 = vcvt.s32.f32 %v1948_v35  ;;  %v6496_v48 = vcvt.s32.f32 %v1962_v28  ;;  %v2192_v28 = vld [vmem:[%s5969_s3 + $0x40] sm:$0xff]  ;;  %v2193_v12 = vld [vmem:[%s5969_s3 + $0x48] sm:$0xff] }
 0x70d   : > { %v6489_v20 = vsel %vm1852_vm7, %v5976_v1, 1073741824  ;;  %v6492_v43 = vsel %vm1853_vm8, %v5976_v1, 1073741824  ;;  %v4996_v35 = vpack.c.bf16 %v2191_v23, %v2190_v2  ;;  %v5000_v31 = vpack.c.bf16 %v2193_v12, %v2192_v28  ;;  %v2198_v28 = vld [vmem:[%s5969_s3 + $0x70] sm:$0xff]  ;;  %v2199_v12 = vld [vmem:[%s5969_s3 + $0x78] sm:$0xff] }
 0x70e   : > { %v1976_v21 = vshra.s32 %v6489_v20, 16  ;;  %v1990_v36 = vshra.s32 %v6492_v43, 16  ;;  %1951 = vmin.xlane.f32.xlu1 %v6494_v37  ;;  %1965 = vmin.xlane.f32.xlu0 %v6496_v48  ;;  %v1989_v25 = vand.u32 65535, %v6492_v43 }
 0x70f   : > { %v1832_v39 = vpop.xlane.xlu1 %1831  ;;  %v1834_v38 = vpop.xlane.xlu0 %1833 }
 0x710   : > { %vm1854_vm9 = vcmp.eq.f32.partialorder %v6422_v0, %v1832_v39  ;;  %vm1855_vm10 = vcmp.eq.f32.partialorder %v6424_v3, %v1834_v38  ;;  %v6510_v47 = vcvt.s32.f32 %v1976_v21  ;;  %v6512_v44 = vcvt.s32.f32 %v1990_v36  ;;  %v2194_v21 = vld [vmem:[%s5969_s3 + $0x50] sm:$0xff]  ;;  %v2195_v36 = vld [vmem:[%s5969_s3 + $0x58] sm:$0xff] }
 0x711   : > { %v6505_v18 = vsel %vm1854_vm9, %v5976_v1, 1073741824  ;;  %v6508_v49 = vsel %vm1855_vm10, %v5976_v1, 1073741824  ;;  %v5004_v39 = vpack.c.bf16 %v2195_v36, %v2194_v21  ;;  %v1877_v38 = vand.u32 65535, %v6444_v8 }
 0x712   : > { %v2004_v50 = vshra.s32 %v6505_v18, 16  ;;  %v2018_v51 = vshra.s32 %v6508_v49, 16  ;;  %1979 = vmin.xlane.f32.xlu1 %v6510_v47  ;;  %1993 = vmin.xlane.f32.xlu0 %v6512_v44  ;;  %v1991_v22 = vcvt.s32.f32 %v1989_v25 }
 0x713   : > { %v1836_v42 = vpop.xlane.xlu1 %1835  ;;  %v1838_v56 = vpop.xlane.xlu0 %1837 }
 0x714   : > { %vm1856_vm11 = vcmp.eq.f32.partialorder %v6428_v34, %v1836_v42  ;;  %vm1857_vm12 = vcmp.eq.f32.partialorder %v6430_v5, %v1838_v56  ;;  %v6526_v57 = vcvt.s32.f32 %v2004_v50  ;;  %v6528_v54 = vcvt.s32.f32 %v2018_v51 }
 0x715   : > { %v6521_v30 = vsel %vm1856_vm11, %v5976_v1, 1073741824  ;;  %v6524_v52 = vsel %vm1857_vm12, %v5976_v1, 1073741824  ;;  %v1879_v50 = vcvt.s32.f32 %v1877_v38  ;;  %v1891_v42 = vand.u32 65535, %v6450_v27 }
 0x716   : > { %v2032_v58 = vshra.s32 %v6521_v30, 16  ;;  %v2046_v59 = vshra.s32 %v6524_v52, 16  ;;  %2007 = vmin.xlane.f32.xlu1 %v6526_v57  ;;  %2021 = vmin.xlane.f32.xlu0 %v6528_v54  ;;  %v1905_v56 = vand.u32 65535, %v6453_v15  ;;  %v2045_v21 = vand.u32 65535, %v6524_v52 }
 0x717   : > { %v1840_v61 = vpop.xlane.xlu1 %1839  ;;  %v1842_v62 = vpop.xlane.xlu0 %1841 }
 0x718   : > { %vm1858_vm13 = vcmp.eq.f32.partialorder %v6434_v46, %v1840_v61  ;;  %vm1859_vm14 = vcmp.eq.f32.partialorder %v6436_v17, %v1842_v62  ;;  %v6542_v4 = vcvt.s32.f32 %v2032_v58  ;;  %v6544_v29 = vcvt.s32.f32 %v2046_v59 }
 0x719   : > { %v6537_v0 = vsel %vm1858_vm13, %v5976_v1, 1073741824  ;;  %v6540_v3 = vsel %vm1859_vm14, %v5976_v1, 1073741824  ;;  %v1893_v59 = vcvt.s32.f32 %v1891_v42  ;;  %v1907_v61 = vcvt.s32.f32 %v1905_v56 }
 0x71a   : > { %v2060_v34 = vshra.s32 %v6537_v0, 16  ;;  %v2074_v5 = vshra.s32 %v6540_v3, 16  ;;  %2035 = vmin.xlane.f32.xlu1 %v6542_v4  ;;  %2049 = vmin.xlane.f32.xlu0 %v6544_v29  ;;  %v1919_v62 = vand.u32 65535, %v6459_v33  ;;  %v1947_v33 = vand.u32 65535, %v6473_v63 }
 0x71b   : > { %v1844_v45 = vpop.xlane.xlu1 %1843  ;;  %v2059_v52 = vand.u32 65535, %v6537_v0  ;;  %v2073_v42 = vand.u32 65535, %v6540_v3 }
 0x71c   : > { %vm1860_vm15 = vcmp.eq.f32.partialorder %v6440_v19, %v1844_v45  ;;  %v6551_v9 = vcvt.s32.f32 %v2060_v34  ;;  %v6556_v17 = vcvt.s32.f32 %v2074_v5  ;;  %v2184_v19 = vld [vmem:[%s5969_s3] sm:$0xff]  ;;  %v1933_v34 = vand.u32 65535, %v6462_v16 }
 0x71d   : > { %v6554_v46 = vsel %vm1860_vm15, %v5976_v1, 1073741824  ;;  %v4984_v55 = vpack.c.bf16 %v2185_v10, %v2184_v19  ;;  %v1921_v15 = vcvt.s32.f32 %v1919_v62  ;;  %v1961_v16 = vand.u32 65535, %v6476_v40 }
 0x71e   : > { %v2088_v7 = vshra.s32 %v6554_v46, 16  ;;  %2063 = vmin.xlane.f32.xlu1 %v6551_v9  ;;  %2077 = vmin.xlane.f32.xlu0 %v6556_v17  ;;  %v1935_v45 = vcvt.s32.f32 %v1933_v34  ;;  %v1949_v10 = vcvt.s32.f32 %v1947_v33  ;;  %v1975_v40 = vand.u32 65535, %v6489_v20  ;;  %v2197_v20 = vld [vmem:[%s5969_s3 + $0x68] sm:$0xff] }
 0x71f   : > { %4985 = vmatprep.subr.bf16.mxu0 %v4984_v55  ;;  %v1963_v63 = vcvt.s32.f32 %v1961_v16  ;;  %v5008_v23 = vpack.c.bf16 %v2197_v20, %v2196_v14  ;;  %v2087_v0 = vand.u32 65535, %v6554_v46 }
 0x720   : > { %v6561_v24 = vcvt.s32.f32 %v2088_v7  ;;  %4987 = vmatpush3.bf16.msra.mxu0 %v4984_v55  ;;  %v1977_v43 = vcvt.s32.f32 %v1975_v40 }
 0x721   : > { %4989 = vmatprep.subr.bf16.mxu0 %v4988_v60  ;;  %v2089_v34 = vcvt.s32.f32 %v2087_v0 }
 0x722   : > { %2091 = vmin.xlane.f32.xlu1 %v6561_v24 }
 0x724   : > { %4991 = vmatpush3.bf16.msra.mxu0 %v4988_v60  ;;  %v2003_v60 = vand.u32 65535, %v6505_v18 }
 0x725   : > { %4993 = vmatprep.subr.bf16.mxu0 %v4992_v11 }
 0x728   : > { %4995 = vmatpush3.bf16.msra.mxu0 %v4992_v11  ;;  %v2017_v11 = vand.u32 65535, %v6508_v49 }
 0x729   : > { %4997 = vmatprep.subr.bf16.mxu0 %v4996_v35 }
 0x72a   : > { %v2019_v49 = vcvt.s32.f32 %v2017_v11  ;;  %v5621_v11 = vmov 0.0  }
 0x72c   : > { %4999 = vmatpush3.bf16.msra.mxu0 %v4996_v35  ;;  %v2005_v35 = vcvt.s32.f32 %v2003_v60 }
 0x72d   : > { %5001 = vmatprep.subr.bf16.mxu0 %v5000_v31 }
 0x730   : > { %5003 = vmatpush3.bf16.msra.mxu0 %v5000_v31  ;;  %v2031_v31 = vand.u32 65535, %v6521_v30 }
 0x731   : > { %5005 = vmatprep.subr.bf16.mxu0 %v5004_v39 }
 0x732   : > { %v2033_v30 = vcvt.s32.f32 %v2031_v31 }
 0x734   : > { %5007 = vmatpush3.bf16.msra.mxu0 %v5004_v39 }
 0x735   : > { %5009 = vmatprep.subr.bf16.mxu0 %v5008_v23 }
 0x738   : > { %5011 = vmatpush3.bf16.msra.mxu0 %v5008_v23 }
 0x78f   : > { %v6577_v51 = vpop.xlane.xlu0 %1881 }
 0x790   : > { %vm1883_vm0 = vcmp.eq.f32.partialorder %v6447_v26, %v6577_v51 }
 0x791   : > { %v1884_v58 = vsel %vm1883_vm0, %v1879_v50, inf  ;;  %v2047_v50 = vcvt.s32.f32 %v2045_v21 }
 0x792   : > { %1885 = vmin.xlane.f32.xlu0 %v1884_v58 }
 0x793   : > { %v6585_v5 = vpop.xlane.xlu1 %1895  ;;  %v6587_v8 = vpop.xlane.xlu0 %1909 }
 0x794   : > { %vm1897_vm1 = vcmp.eq.f32.partialorder %v6464_v53, %v6585_v5  ;;  %vm1911_vm2 = vcmp.eq.f32.partialorder %v6466_v6, %v6587_v8  ;;  %v1902_v33 = vcvt.f32.s32 %v6585_v5 }
 0x795   : > { %v1898_v27 = vsel %vm1897_vm1, %v1893_v59, inf  ;;  %v1912_v26 = vsel %vm1911_vm2, %v1907_v61, inf  ;;  %v2061_v59 = vcvt.s32.f32 %v2059_v52  ;;  %v2075_v61 = vcvt.s32.f32 %v2073_v42 }
 0x796   : > { %1899 = vmin.xlane.f32.xlu1 %v1898_v27  ;;  %1913 = vmin.xlane.f32.xlu0 %v1912_v26  ;;  %v1888_v26 = vcvt.f32.s32 %v6577_v51 }
 0x797   : > { %v6595_v7 = vpop.xlane.xlu1 %1923  ;;  %v6597_v19 = vpop.xlane.xlu0 %1937 }
 0x798   : > { %vm1925_vm3 = vcmp.eq.f32.partialorder %v6478_v13, %v6595_v7  ;;  %vm1939_vm4 = vcmp.eq.f32.partialorder %v6480_v41, %v6597_v19 }
 0x799   : > { %v1926_v53 = vsel %vm1925_vm3, %v1921_v15, inf  ;;  %v1940_v6 = vsel %vm1939_vm4, %v1935_v45, inf  ;;  %v1889_v45 = vshll.u32 %v1888_v26, 16 }
 0x79a   : > { %1927 = vmin.xlane.f32.xlu1 %v1926_v53  ;;  %1941 = vmin.xlane.f32.xlu0 %v1940_v6  ;;  %v1930_v53 = vcvt.f32.s32 %v6595_v7  ;;  %v1944_v6 = vcvt.f32.s32 %v6597_v19 }
 0x79b   : > { %v6605_v55 = vpop.xlane.xlu1 %1951  ;;  %v6607_v32 = vpop.xlane.xlu0 %1965 }
 0x79c   : > { %vm1953_vm5 = vcmp.eq.f32.partialorder %v6494_v37, %v6605_v55  ;;  %vm1967_vm6 = vcmp.eq.f32.partialorder %v6496_v48, %v6607_v32  ;;  %v1945_v60 = vshll.u32 %v1944_v6, 16  ;;  %v1958_v7 = vcvt.f32.s32 %v6605_v55 }
 0x79d   : > { %v1954_v13 = vsel %vm1953_vm5, %v1949_v10, inf  ;;  %v1968_v41 = vsel %vm1967_vm6, %v1963_v63, inf  ;;  %v1903_v63 = vshll.u32 %v1902_v33, 16  ;;  %v1972_v19 = vcvt.f32.s32 %v6607_v32 }
 0x79e   : > { %1955 = vmin.xlane.f32.xlu1 %v1954_v13  ;;  %1969 = vmin.xlane.f32.xlu0 %v1968_v41  ;;  %v5620_v13 = vmov 1.0   ;;  %v1931_v41 = vshll.u32 %v1930_v53, 16 }
 0x79f   : > { %v6617_v2 = vpop.xlane.xlu1 %1979  ;;  %v6619_v37 = vpop.xlane.xlu0 %1993 }
 0x7a0   : > { %vm1981_vm7 = vcmp.eq.f32.partialorder %v6510_v47, %v6617_v2  ;;  %vm1995_vm8 = vcmp.eq.f32.partialorder %v6512_v44, %v6619_v37  ;;  %v5012_v47 = vpack.c.bf16 %v2199_v12, %v2198_v28  ;;  %v1973_v28 = vshll.u32 %v1972_v19, 16 }
 0x7a1   : > { %v1982_v48 = vsel %vm1981_vm7, %v1977_v43, inf  ;;  %v1996_v18 = vsel %vm1995_vm8, %v1991_v22, inf  ;;  %v1986_v12 = vcvt.f32.s32 %v6617_v2 }
 0x7a2   : > { %1983 = vmin.xlane.f32.xlu1 %v1982_v48  ;;  %1997 = vmin.xlane.f32.xlu0 %v1996_v18 }
 0x7a3   : > { %v6629_v36 = vpop.xlane.xlu1 %2007  ;;  %v6631_v39 = vpop.xlane.xlu0 %2021  ;;  %5013 = vmatprep.subr.bf16.mxu0 %v5012_v47  ;;  %v1987_v52 = vshll.u32 %v1986_v12, 16 }
 0x7a4   : > { %vm2009_vm9 = vcmp.eq.f32.partialorder %v6526_v57, %v6629_v36  ;;  %vm2023_vm10 = vcmp.eq.f32.partialorder %v6528_v54, %v6631_v39  ;;  %5015 = vmatpush3.bf16.msra.mxu0 %v5012_v47 }
 0x7a5   : > { %v2010_v44 = vsel %vm2009_vm9, %v2005_v35, inf  ;;  %v2024_v38 = vsel %vm2023_vm10, %v2019_v49, inf  ;;  %v1959_v35 = vshll.u32 %v1958_v7, 16  ;;  %v2000_v49 = vcvt.f32.s32 %v6619_v37 }
 0x7a6   : > { %2011 = vmin.xlane.f32.xlu1 %v2010_v44  ;;  %2025 = vmin.xlane.f32.xlu0 %v2024_v38 }
 0x7a7   : > { %v6639_v56 = vpop.xlane.xlu1 %2035  ;;  %v6641_v58 = vpop.xlane.xlu0 %2049  ;;  %v2001_v42 = vshll.u32 %v2000_v49, 16 }
 0x7a8   : > { %vm2037_vm11 = vcmp.eq.f32.partialorder %v6542_v4, %v6639_v56  ;;  %vm2051_vm12 = vcmp.eq.f32.partialorder %v6544_v29, %v6641_v58 }
 0x7a9   : > { %v2038_v57 = vsel %vm2037_vm11, %v2033_v30, inf  ;;  %v2052_v54 = vsel %vm2051_vm12, %v2047_v50, inf }
 0x7aa   : > { %2039 = vmin.xlane.f32.xlu1 %v2038_v57  ;;  %2053 = vmin.xlane.f32.xlu0 %v2052_v54  ;;  %v2014_v57 = vcvt.f32.s32 %v6629_v36  ;;  %v2028_v54 = vcvt.f32.s32 %v6631_v39 }
 0x7ab   : > { %v6648_v3 = vpop.xlane.xlu1 %2063  ;;  %v6650_v62 = vpop.xlane.xlu0 %2077 }
 0x7ac   : > { %vm2065_vm13 = vcmp.eq.f32.partialorder %v6551_v9, %v6648_v3  ;;  %vm2079_vm14 = vcmp.eq.f32.partialorder %v6556_v17, %v6650_v62  ;;  %v1916_v17 = vcvt.f32.s32 %v6587_v8  ;;  %v2015_v26 = vshll.u32 %v2014_v57, 16 }
 0x7ad   : > { %v2066_v4 = vsel %vm2065_vm13, %v2061_v59, inf  ;;  %v2080_v29 = vsel %vm2079_vm14, %v2075_v61, inf }
 0x7ae   : > { %2067 = vmin.xlane.f32.xlu1 %v2066_v4  ;;  %2081 = vmin.xlane.f32.xlu0 %v2080_v29  ;;  %v1917_v40 = vshll.u32 %v1916_v17, 16 }
 0x7af   : > { %v6656_v27 = vpop.xlane.xlu1 %2091 }
 0x7b0   : > { %vm2093_vm15 = vcmp.eq.f32.partialorder %v6561_v24, %v6656_v27 }
 0x7b1   : > { %v2094_v46 = vsel %vm2093_vm15, %v2089_v34, inf }
 0x7b2   : > { %2095 = vmin.xlane.f32.xlu1 %v2094_v46 }
 0x81f   : > { %v1886_v15 = vpop.xlane.xlu0 %1885 }
 0x820   : > { %v1887_v9 = vcvt.f32.s32 %v1886_v15  ;;  %v2029_v15 = vshll.u32 %v2028_v54, 16 }
 0x822   : > { %v1890_v16 = vadd.s32 %v1889_v45, %v1887_v9  ;;  %v2042_v45 = vcvt.f32.s32 %v6639_v56  ;;  %v2056_v9 = vcvt.f32.s32 %v6641_v58 }
 0x823   : > { %v1900_v10 = vpop.xlane.xlu1 %1899  ;;  %v1914_v24 = vpop.xlane.xlu0 %1913 }
 0x824   : > { %vm2101_vm0 = vcmp.eq.s32.totalorder %v5976_v1, %v1890_v16  ;;  %v1901_v25 = vcvt.f32.s32 %v1900_v10  ;;  %v1915_v51 = vcvt.f32.s32 %v1914_v24 }
 0x825   : > { %4632 = vmatprep.mubr.msk.f32.mxu0 %vm2101_vm0, %v5620_v13  ;;  %v3966_v23 = vsel %vm2101_vm0, 1.0, %v5621_v11 }
 0x826   : > { %v1904_v5 = vadd.s32 %v1903_v63, %v1901_v25  ;;  %v1918_v8 = vadd.s32 %v1917_v40, %v1915_v51  ;;  %v2043_v63 = vshll.u32 %v2042_v45, 16  ;;  %v2057_v40 = vshll.u32 %v2056_v9, 16  ;;  %v2175_v9 = vld [vmem:[#allocation4 + $0x38] sm:$0xff] }
 0x827   : > { %v1928_v14 = vpop.xlane.xlu1 %1927  ;;  %v1942_v20 = vpop.xlane.xlu0 %1941  ;;  %v2070_v25 = vcvt.f32.s32 %v6648_v3  ;;  %v2084_v51 = vcvt.f32.s32 %v6650_v62 }
 0x828   : > { %vm2102_vm1 = vcmp.eq.s32.totalorder %v5976_v1, %v1904_v5  ;;  %vm2103_vm2 = vcmp.eq.s32.totalorder %v5976_v1, %v1918_v8  ;;  %v1929_v43 = vcvt.f32.s32 %v1928_v14  ;;  %v1943_v22 = vcvt.f32.s32 %v1942_v20 }
 0x829   : > { %v3967_v48 = vsel %vm2102_vm1, 1.0, %v5621_v11  ;;  %4633 = vmatmul.mubr.msk.f32.vlgmr.msra.gmra.mrb[16].mxu0 %vm2102_vm1, %v5620_v13  ;;  %v3968_v38 = vsel %vm2103_vm2, 1.0, %v5621_v11  ;;  %v2071_v20 = vshll.u32 %v2070_v25, 16  ;;  %v2179_v25 = vld [vmem:[#allocation4 + $0x58] sm:$0xff] }
 0x82a   : > { %v2149_v55 = vpack.c.bf16 %v3967_v48, %v3966_v23  ;;  %v1932_v18 = vadd.s32 %v1931_v41, %v1929_v43  ;;  %v1946_v32 = vadd.s32 %v1945_v60, %v1943_v22  ;;  %4635 = vmatprep.mubr.msk.f32.mxu0 %vm2103_vm2, %v5620_v13  ;;  %v2085_v43 = vshll.u32 %v2084_v51, 16  ;;  %v2178_v51 = vld [vmem:[#allocation4 + $0x50] sm:$0xff] }
 0x82b   : > { %v1956_v31 = vpop.xlane.xlu1 %1955  ;;  %v1970_v21 = vpop.xlane.xlu0 %1969  ;;  %v2098_v22 = vcvt.f32.s32 %v6656_v27 }
 0x82c   : > { %2159 = vst [vmem:[#allocation3] sm:$0xff] %v2149_v55  ;;  %vm2104_vm3 = vcmp.eq.s32.totalorder %v5976_v1, %v1932_v18  ;;  %vm2105_vm4 = vcmp.eq.s32.totalorder %v5976_v1, %v1946_v32  ;;  %v1957_v47 = vcvt.f32.s32 %v1956_v31  ;;  %v1971_v44 = vcvt.f32.s32 %v1970_v21 }
 0x82d   : > { %v3969_v30 = vsel %vm2104_vm3, 1.0, %v5621_v11  ;;  %4636 = vmatmul.mubr.msk.f32.gmra.mrb[18].mxu0 %vm2104_vm3, %v5620_v13  ;;  %v3970_v29 = vsel %vm2105_vm4, 1.0, %v5621_v11  ;;  %v2099_v31 = vshll.u32 %v2098_v22, 16  ;;  %v2182_v22 = vld [vmem:[#allocation4 + $0x70] sm:$0xff] }
 0x82e   : > { %v2150_v2 = vpack.c.bf16 %v3969_v30, %v3968_v38  ;;  %v1960_v50 = vadd.s32 %v1959_v35, %v1957_v47  ;;  %v1974_v37 = vadd.s32 %v1973_v28, %v1971_v44  ;;  %4638 = vmatprep.mubr.msk.f32.mxu0 %vm2105_vm4, %v5620_v13 }
 0x82f   : > { %v1984_v59 = vpop.xlane.xlu1 %1983  ;;  %v1998_v61 = vpop.xlane.xlu0 %1997 }
 0x830   : > { %2160 = vst [vmem:[#allocation3 + $0x8] sm:$0xff] %v2150_v2  ;;  %vm2106_vm5 = vcmp.eq.s32.totalorder %v5976_v1, %v1960_v50  ;;  %vm2107_vm6 = vcmp.eq.s32.totalorder %v5976_v1, %v1974_v37  ;;  %v1985_v0 = vcvt.f32.s32 %v1984_v59  ;;  %v1999_v4 = vcvt.f32.s32 %v1998_v61 }
 0x831   : > { %v3971_v34 = vsel %vm2106_vm5, 1.0, %v5621_v11  ;;  %4639 = vmatmul.mubr.msk.f32.gmra.mrb[20].mxu0 %vm2106_vm5, %v5620_v13  ;;  %v3972_v6 = vsel %vm2107_vm6, 1.0, %v5621_v11 }
 0x832   : > { %v2151_v36 = vpack.c.bf16 %v3971_v34, %v3970_v29  ;;  %v1988_v46 = vadd.s32 %v1987_v52, %v1985_v0  ;;  %v2002_v39 = vadd.s32 %v2001_v42, %v1999_v4  ;;  %4641 = vmatprep.mubr.msk.f32.mxu0 %vm2107_vm6, %v5620_v13  ;;  %v2169_v52 = vld [vmem:[#allocation4 + $0x8] sm:$0xff]  ;;  %v2168_v42 = vld [vmem:[#allocation4] sm:$0xff]  ;;  %v2171_v0 = vld [vmem:[#allocation4 + $0x18] sm:$0xff] }
 0x833   : > { %v2012_v33 = vpop.xlane.xlu1 %2011  ;;  %v2026_v17 = vpop.xlane.xlu0 %2025  ;;  %v2170_v4 = vld [vmem:[#allocation4 + $0x10] sm:$0xff] }
 0x834   : > { %2161 = vst [vmem:[#allocation3 + $0x10] sm:$0xff] %v2151_v36  ;;  %vm2108_vm7 = vcmp.eq.s32.totalorder %v5976_v1, %v1988_v46  ;;  %vm2109_vm8 = vcmp.eq.s32.totalorder %v5976_v1, %v2002_v39  ;;  %v2013_v16 = vcvt.f32.s32 %v2012_v33  ;;  %v2027_v53 = vcvt.f32.s32 %v2026_v17  ;;  %v2173_v39 = vld [vmem:[#allocation4 + $0x28] sm:$0xff]  ;;  %v2174_v33 = vld [vmem:[#allocation4 + $0x30] sm:$0xff] }
 0x835   : > { %v3973_v10 = vsel %vm2108_vm7, 1.0, %v5621_v11  ;;  %4642 = vmatmul.mubr.msk.f32.gmra.mrb[22].mxu0 %vm2108_vm7, %v5620_v13  ;;  %v3974_v7 = vsel %vm2109_vm8, 1.0, %v5621_v11 }
 0x836   : > { %v2152_v56 = vpack.c.bf16 %v3973_v10, %v3972_v6  ;;  %v2016_v24 = vadd.s32 %v2015_v26, %v2013_v16  ;;  %v2030_v58 = vadd.s32 %v2029_v15, %v2027_v53  ;;  %4644 = vmatprep.mubr.msk.f32.mxu0 %vm2109_vm8, %v5620_v13  ;;  %v2177_v10 = vld [vmem:[#allocation4 + $0x48] sm:$0xff] }
 0x837   : > { %v2040_v5 = vpop.xlane.xlu1 %2039  ;;  %v2054_v8 = vpop.xlane.xlu0 %2053 }
 0x838   : > { %2162 = vst [vmem:[#allocation3 + $0x18] sm:$0xff] %v2152_v56  ;;  %vm2110_vm9 = vcmp.eq.s32.totalorder %v5976_v1, %v2016_v24  ;;  %vm2111_vm10 = vcmp.eq.s32.totalorder %v5976_v1, %v2030_v58  ;;  %v2041_v41 = vcvt.f32.s32 %v2040_v5  ;;  %v2055_v60 = vcvt.f32.s32 %v2054_v8  ;;  %v2176_v56 = vld [vmem:[#allocation4 + $0x40] sm:$0xff] }
 0x839   : > { %v3975_v19 = vsel %vm2110_vm9, 1.0, %v5621_v11  ;;  %4645 = vmatmul.mubr.msk.f32.gmra.mrb[24].mxu0 %vm2110_vm9, %v5620_v13  ;;  %v3976_v32 = vsel %vm2111_vm10, 1.0, %v5621_v11 }
 0x83a   : > { %v2153_v3 = vpack.c.bf16 %v3975_v19, %v3974_v7  ;;  %v2044_v14 = vadd.s32 %v2043_v63, %v2041_v41  ;;  %v2058_v62 = vadd.s32 %v2057_v40, %v2055_v60  ;;  %4647 = vmatprep.mubr.msk.f32.mxu0 %vm2111_vm10, %v5620_v13  ;;  %v2181_v7 = vld [vmem:[#allocation4 + $0x68] sm:$0xff]  ;;  %v2180_v19 = vld [vmem:[#allocation4 + $0x60] sm:$0xff] }
 0x83b   : > { %v2068_v23 = vpop.xlane.xlu1 %2067  ;;  %v2082_v48 = vpop.xlane.xlu0 %2081 }
 0x83c   : > { %2163 = vst [vmem:[#allocation3 + $0x20] sm:$0xff] %v2153_v3  ;;  %vm2112_vm11 = vcmp.eq.s32.totalorder %v5976_v1, %v2044_v14  ;;  %vm2113_vm12 = vcmp.eq.s32.totalorder %v5976_v1, %v2058_v62  ;;  %v2069_v55 = vcvt.f32.s32 %v2068_v23  ;;  %v2083_v18 = vcvt.f32.s32 %v2082_v48 }
 0x83d   : > { %v3977_v35 = vsel %vm2112_vm11, 1.0, %v5621_v11  ;;  %4648 = vmatmul.mubr.msk.f32.gmra.mrb[26].mxu0 %vm2112_vm11, %v5620_v13  ;;  %v3978_v47 = vsel %vm2113_vm12, 1.0, %v5621_v11 }
 0x83e   : > { %v2154_v28 = vpack.c.bf16 %v3977_v35, %v3976_v32  ;;  %v2072_v12 = vadd.s32 %v2071_v20, %v2069_v55  ;;  %v2086_v27 = vadd.s32 %v2085_v43, %v2083_v18  ;;  %4650 = vmatprep.mubr.msk.f32.mxu0 %vm2113_vm12, %v5620_v13  ;;  %v2183_v43 = vld [vmem:[#allocation4 + $0x78] sm:$0xff] }
 0x83f   : > { %v2096_v49 = vpop.xlane.xlu1 %2095 }
 0x840   : > { %2164 = vst [vmem:[#allocation3 + $0x28] sm:$0xff] %v2154_v28  ;;  %vm2114_vm13 = vcmp.eq.s32.totalorder %v5976_v1, %v2072_v12  ;;  %vm2115_vm14 = vcmp.eq.s32.totalorder %v5976_v1, %v2086_v27  ;;  %v2097_v21 = vcvt.f32.s32 %v2096_v49 }
 0x841   : > { %v3979_v44 = vsel %vm2114_vm13, 1.0, %v5621_v11  ;;  %4651 = vmatmul.mubr.msk.f32.gmra.mrb[28].mxu0 %vm2114_vm13, %v5620_v13  ;;  %v3980_v2 = vsel %vm2115_vm14, 1.0, %v5621_v11 }
 0x842   : > { %v2155_v38 = vpack.c.bf16 %v3979_v44, %v3978_v47  ;;  %v2100_v30 = vadd.s32 %v2099_v31, %v2097_v21  ;;  %4653 = vmatprep.mubr.msk.f32.mxu0 %vm2115_vm14, %v5620_v13 }
 0x844   : > { %2165 = vst [vmem:[#allocation3 + $0x30] sm:$0xff] %v2155_v38  ;;  %vm2116_vm15 = vcmp.eq.s32.totalorder %v5976_v1, %v2100_v30 }
 0x845   : > { %v3981_v50 = vsel %vm2116_vm15, 1.0, %v5621_v11  ;;  %4654 = vmatmul.mubr.msk.f32.gmra.mrb[30].mxu0 %vm2116_vm15, %v5620_v13  ;;  %v2172_v11 = vld [vmem:[#allocation4 + $0x20] sm:$0xff] }
 0x846   : > { %v2156_v37 = vpack.c.bf16 %v3981_v50, %v3980_v2 }
 0x848   : > { %2166 = vst [vmem:[#allocation3 + $0x38] sm:$0xff] %v2156_v37 }
 0x8fc   : > { %v4634_v57 = vpop.f32.mrb[16].mxu0 }
 0x8fd   : > { %v2346_v54 = vadd.f32 %v4634_v57, %v2169_v52  ;;  %v2266_v59 = vpop.f32.mrb[17].mxu0 }
 0x8fe   : > { %v2345_v61 = vadd.f32 %v2266_v59, %v2168_v42 }
 0x8ff   : > { %2362 = vst [vmem:[#allocation4 + $0x8] sm:$0xff] %v2346_v54 }
 0x900   : > { %2361 = vst [vmem:[#allocation4] sm:$0xff] %v2345_v61  ;;  %v4637_v29 = vpop.f32.mrb[18].mxu0 }
 0x901   : > { %v2348_v34 = vadd.f32 %v4637_v29, %v2171_v0  ;;  %v2276_v36 = vpop.f32.mrb[19].mxu0 }
 0x902   : > { %v2347_v46 = vadd.f32 %v2276_v36, %v2170_v4 }
 0x903   : > { %2364 = vst [vmem:[#allocation4 + $0x18] sm:$0xff] %v2348_v34 }
 0x904   : > { %2363 = vst [vmem:[#allocation4 + $0x10] sm:$0xff] %v2347_v46  ;;  %v4640_v13 = vpop.f32.mrb[20].mxu0 }
 0x905   : > { %v2350_v26 = vadd.f32 %v4640_v13, %v2173_v39  ;;  %v2286_v15 = vpop.f32.mrb[21].mxu0 }
 0x906   : > { %v2349_v45 = vadd.f32 %v2286_v15, %v2172_v11 }
 0x907   : > { %2366 = vst [vmem:[#allocation4 + $0x28] sm:$0xff] %v2350_v26 }
 0x908   : > { %2365 = vst [vmem:[#allocation4 + $0x20] sm:$0xff] %v2349_v45  ;;  %v4643_v17 = vpop.f32.mrb[22].mxu0 }
 0x909   : > { %v2352_v16 = vadd.f32 %v4643_v17, %v2175_v9  ;;  %v2296_v53 = vpop.f32.mrb[23].mxu0 }
 0x90a   : > { %v2351_v6 = vadd.f32 %v2296_v53, %v2174_v33 }
 0x90b   : > { %2368 = vst [vmem:[#allocation4 + $0x38] sm:$0xff] %v2352_v16 }
 0x90c   : > { %2367 = vst [vmem:[#allocation4 + $0x30] sm:$0xff] %v2351_v6  ;;  %v4646_v24 = vpop.f32.mrb[24].mxu0 }
 0x90d   : > { %v2354_v58 = vadd.f32 %v4646_v24, %v2177_v10  ;;  %v2306_v63 = vpop.f32.mrb[25].mxu0 }
 0x90e   : > { %v2353_v40 = vadd.f32 %v2306_v63, %v2176_v56 }
 0x90f   : > { %2370 = vst [vmem:[#allocation4 + $0x48] sm:$0xff] %v2354_v58 }
 0x910   : > { %2369 = vst [vmem:[#allocation4 + $0x40] sm:$0xff] %v2353_v40  ;;  %v4649_v5 = vpop.f32.mrb[26].mxu0 }
 0x911   : > { %v2356_v8 = vadd.f32 %v4649_v5, %v2179_v25  ;;  %v2316_v41 = vpop.f32.mrb[27].mxu0 }
 0x912   : > { %v2355_v60 = vadd.f32 %v2316_v41, %v2178_v51 }
 0x913   : > { %2372 = vst [vmem:[#allocation4 + $0x58] sm:$0xff] %v2356_v8 }
 0x914   : > { %2371 = vst [vmem:[#allocation4 + $0x50] sm:$0xff] %v2355_v60  ;;  %v4652_v3 = vpop.f32.mrb[28].mxu0 }
 0x915   : > { %v2358_v14 = vadd.f32 %v4652_v3, %v2181_v7  ;;  %v2326_v62 = vpop.f32.mrb[29].mxu0 }
 0x916   : > { %v2357_v20 = vadd.f32 %v2326_v62, %v2180_v19 }
 0x917   : > { %2374 = vst [vmem:[#allocation4 + $0x68] sm:$0xff] %v2358_v14 }
 0x918   : > { %2373 = vst [vmem:[#allocation4 + $0x60] sm:$0xff] %v2357_v20  ;;  %v4655_v23 = vpop.f32.mrb[30].mxu0 }
 0x919   : > { %v2360_v48 = vadd.f32 %v4655_v23, %v2183_v43  ;;  %v2336_v55 = vpop.f32.mrb[31].mxu0 }
 0x91a   : > { %v2359_v18 = vadd.f32 %v2336_v55, %v2182_v22 }
 0x91b   : > { %2376 = vst [vmem:[#allocation4 + $0x78] sm:$0xff] %v2360_v48 }
 0x91c   : > { %2375 = vst [vmem:[#allocation4 + $0x70] sm:$0xff] %v2359_v18 }
 0x91d PF: > { %p2377_p8 = scmp.eq.s32.totalorder %s7452_s7, 0 }
 0x91f   : > { %p2378_p9 = pnand %p2377_p8, %p1272_p2 }
 0x920   : > { %v6755_v32 = vld [vmem:[#allocation3] sm:$0xff] (!%p2378_p9)  ;;  %v6757_v35 = vld [vmem:[#allocation3 + $0x8] sm:$0xff] (!%p2378_p9)  ;;  %v6762_v12 = vld [vmem:[#allocation3 + $0x10] sm:$0xff] (!%p2378_p9) }
 0x921   : > { %2381 = sbr.rel (%p2378_p9) target bundleno = 3522 (0xdc2), region = 84  ;;  %4656 = vmatprep.subr.bf16.mxu0 (!%p2378_p9), %v6755_v32  ;;  %v2382_v28 = vld [vmem:[#allocation8] sm:$0xff] (!%p2378_p9)  ;;  %v3999_v31 = vld [vmem:[%s5962_s21 + $0x88] sm:$0xff] (!%p2378_p9)  ;;  %v4000_v21 = vld [vmem:[%s5962_s21 + $0x90] sm:$0xff] (!%p2378_p9) }
 0x922   : > { %4657 = vmatpush3.bf16.msra.mxu0 (!%p2378_p9), %v6755_v32  ;;  %v2386_v27 = vunpack.c.l.s8.bf16 (!%p2378_p9), %v2382_v28  ;;  %v3998_v49 = vld [vmem:[%s5962_s21 + $0x80] sm:$0xff] (!%p2378_p9)  ;;  %v4001_v44 = vld [vmem:[%s5962_s21 + $0x98] sm:$0xff] (!%p2378_p9)  ;;  %v4003_v2 = vld [vmem:[%s5962_s21 + $0xa8] sm:$0xff] (!%p2378_p9)  ;;  %v2387_v45 = vunpack.c.h.s8.bf16 (!%p2378_p9), %v2382_v28 }
 0x923   : > { %4658 = vmatprep.subr.bf16.mxu0 (!%p2378_p9), %v6757_v35  ;;  %v5016_v47 = vpack.c.bf16 (!%p2378_p9), %v3999_v31, %v3998_v49  ;;  %v5020_v38 = vpack.c.bf16 (!%p2378_p9), %v4001_v44, %v4000_v21  ;;  %v4002_v30 = vld [vmem:[%s5962_s21 + $0xa0] sm:$0xff] (!%p2378_p9)  ;;  %v6772_v50 = vld [vmem:[#allocation3 + $0x18] sm:$0xff] (!%p2378_p9)  ;;  %v4004_v52 = vld [vmem:[%s5962_s21 + $0xb0] sm:$0xff] (!%p2378_p9) }
 0x924   : > { %4672 = vmatprep.mubr.bf16.mxu0 (!%p2378_p9), %v2386_v27  ;;  %v5024_v37 = vpack.c.bf16 (!%p2378_p9), %v4003_v2, %v4002_v30  ;;  %v4005_v42 = vld [vmem:[%s5962_s21 + $0xb8] sm:$0xff] (!%p2378_p9)  ;;  %v6778_v57 = vld [vmem:[#allocation3 + $0x20] sm:$0xff] (!%p2378_p9)  ;;  %v4007_v61 = vld [vmem:[%s5962_s21 + $0xc8] sm:$0xff] (!%p2378_p9) }
 0x925   : > { %5017 = vmatprep.subr.bf16.mxu1 (!%p2378_p9), %v5016_v47  ;;  %v5028_v54 = vpack.c.bf16 (!%p2378_p9), %v4005_v42, %v4004_v52  ;;  %v4006_v59 = vld [vmem:[%s5962_s21 + $0xc0] sm:$0xff] (!%p2378_p9)  ;;  %v6784_v0 = vld [vmem:[#allocation3 + $0x28] sm:$0xff] (!%p2378_p9)  ;;  %v4008_v29 = vld [vmem:[%s5962_s21 + $0xd0] sm:$0xff] (!%p2378_p9) }
 0x926   : > { %4659 = vmatpush3.bf16.msra.mxu0 (!%p2378_p9), %v6757_v35  ;;  %5019 = vmatpush3.bf16.msra.mxu1 (!%p2378_p9), %v5016_v47  ;;  %v5032_v4 = vpack.c.bf16 (!%p2378_p9), %v4007_v61, %v4006_v59  ;;  %v4009_v34 = vld [vmem:[%s5962_s21 + $0xd8] sm:$0xff] (!%p2378_p9)  ;;  %v6790_v36 = vld [vmem:[#allocation3 + $0x30] sm:$0xff] (!%p2378_p9)  ;;  %v4010_v39 = vld [vmem:[%s5962_s21 + $0xe0] sm:$0xff] (!%p2378_p9) }
 0x927   : > { %4660 = vmatprep.subr.bf16.mxu0 (!%p2378_p9), %v6762_v12  ;;  %5021 = vmatprep.subr.bf16.mxu1 (!%p2378_p9), %v5020_v38  ;;  %v5036_v46 = vpack.c.bf16 (!%p2378_p9), %v4009_v34, %v4008_v29  ;;  %v4011_v11 = vld [vmem:[%s5962_s21 + $0xe8] sm:$0xff] (!%p2378_p9)  ;;  %v6796_v13 = vld [vmem:[#allocation3 + $0x38] sm:$0xff] (!%p2378_p9)  ;;  %v2384_v33 = vld [vmem:[#allocation8 + $0x10] sm:$0xff] (!%p2378_p9) }
 0x928   : > { %v5040_v26 = vpack.c.bf16 %v4011_v11, %v4010_v39  ;;  %v2383_v15 = vld [vmem:[#allocation8 + $0x8] sm:$0xff]  ;;  %v2390_v16 = vunpack.c.l.s8.bf16 %v2384_v33  ;;  %v2385_v53 = vld [vmem:[#allocation8 + $0x18] sm:$0xff]  ;;  %v2391_v6 = vunpack.c.h.s8.bf16 %v2384_v33  ;;  %v4012_v24 = vld [vmem:[%s5962_s21 + $0xf0] sm:$0xff] }
 0x929   : > { %v2388_v9 = vunpack.c.l.s8.bf16 %v2383_v15  ;;  %v2389_v17 = vunpack.c.h.s8.bf16 %v2383_v15  ;;  %v2392_v10 = vunpack.c.l.s8.bf16 %v2385_v53  ;;  %v2393_v56 = vunpack.c.h.s8.bf16 %v2385_v53  ;;  %v4013_v58 = vld [vmem:[%s5962_s21 + $0xf8] sm:$0xff]  ;;  %v2559_v40 = vld [vmem:[%s5962_s21] sm:$0xff]  ;;  %v2560_v25 = vld [vmem:[%s5962_s21 + $0x8] sm:$0xff] }
 0x92a   : > { %4661 = vmatpush3.bf16.msra.mxu0 %v6762_v12  ;;  %5023 = vmatpush3.bf16.msra.mxu1 %v5020_v38  ;;  %v5044_v63 = vpack.c.bf16 %v4013_v58, %v4012_v24  ;;  %v5048_v51 = vpack.c.bf16 %v2560_v25, %v2559_v40  ;;  %v2561_v3 = vld [vmem:[%s5962_s21 + $0x10] sm:$0xff]  ;;  %v2562_v14 = vld [vmem:[%s5962_s21 + $0x18] sm:$0xff]  ;;  %v2563_v55 = vld [vmem:[%s5962_s21 + $0x20] sm:$0xff] }
 0x92b   : > { %4662 = vmatprep.subr.bf16.mxu0 %v6772_v50  ;;  %5025 = vmatprep.subr.bf16.mxu1 %v5024_v37  ;;  %v5052_v23 = vpack.c.bf16 %v2562_v14, %v2561_v3  ;;  %v2564_v18 = vld [vmem:[%s5962_s21 + $0x28] sm:$0xff]  ;;  %v2565_v30 = vld [vmem:[%s5962_s21 + $0x30] sm:$0xff]  ;;  %v2566_v2 = vld [vmem:[%s5962_s21 + $0x38] sm:$0xff] }
 0x92c   : > { %v5056_v47 = vpack.c.bf16 %v2564_v18, %v2563_v55  ;;  %v5060_v59 = vpack.c.bf16 %v2566_v2, %v2565_v30  ;;  %v2568_v29 = vld [vmem:[%s5962_s21 + $0x48] sm:$0xff]  ;;  %v2569_v33 = vld [vmem:[%s5962_s21 + $0x50] sm:$0xff]  ;;  %v2571_v58 = vld [vmem:[%s5962_s21 + $0x60] sm:$0xff]  ;;  %v2544_v18 = vunpack.c.h.bf16 %v6755_v32  ;;  %v2556_v30 = vunpack.c.h.bf16 %v6790_v36 }
 0x92d   : > { %v2574_v3 = vld [vmem:[%s5962_s21 + $0x78] sm:$0xff]  ;;  %v2558_v2 = vunpack.c.h.bf16 %v6796_v13 }
 0x92e   : > { %4663 = vmatpush3.bf16.msra.mxu0 %v6772_v50  ;;  %5027 = vmatpush3.bf16.msra.mxu1 %v5024_v37 }
 0x92f   : > { %4664 = vmatprep.subr.bf16.mxu0 %v6778_v57  ;;  %5029 = vmatprep.subr.bf16.mxu1 %v5028_v54 }
 0x932   : > { %4665 = vmatpush3.bf16.msra.mxu0 %v6778_v57  ;;  %5031 = vmatpush3.bf16.msra.mxu1 %v5028_v54 }
 0x933   : > { %4666 = vmatprep.subr.bf16.mxu0 %v6784_v0  ;;  %5033 = vmatprep.subr.bf16.mxu1 %v5032_v4 }
 0x936   : > { %4667 = vmatpush3.bf16.msra.mxu0 %v6784_v0  ;;  %5035 = vmatpush3.bf16.msra.mxu1 %v5032_v4  ;;  %v2567_v4 = vld [vmem:[%s5962_s21 + $0x40] sm:$0xff] }
 0x937   : > { %4668 = vmatprep.subr.bf16.mxu0 %v6790_v36  ;;  %5037 = vmatprep.subr.bf16.mxu1 %v5036_v46  ;;  %v5064_v15 = vpack.c.bf16 %v2568_v29, %v2567_v4 }
 0x93a   : > { %4669 = vmatpush3.bf16.msra.mxu0 %v6790_v36  ;;  %5039 = vmatpush3.bf16.msra.mxu1 %v5036_v46 }
 0x93b   : > { %4670 = vmatprep.subr.bf16.mxu0 %v6796_v13  ;;  %5041 = vmatprep.subr.bf16.mxu1 %v5040_v26 }
 0x93e   : > { %4671 = vmatpush3.bf16.msra.mxu0 %v6796_v13  ;;  %5043 = vmatpush3.bf16.msra.mxu1 %v5040_v26 }
 0x93f   : > { %5045 = vmatprep.subr.bf16.mxu1 %v5044_v63 }
 0x941   : > { %4673 = vmatmul.mubr.bf16.vlgmr.msra.gmra.mrb[0].mxu0 %v2387_v45 }
 0x942   : > { %4676 = vmatprep.mubr.bf16.mxu0 %v2388_v9  ;;  %5047 = vmatpush3.bf16.msra.mxu1 %v5044_v63  ;;  %v2572_v63 = vld [vmem:[%s5962_s21 + $0x68] sm:$0xff] }
 0x943   : > { %5049 = vmatprep.subr.bf16.mxu1 %v5048_v51 }
 0x949   : > { %4677 = vmatmul.mubr.bf16.gmra.mrb[4].mxu0 %v2389_v17  ;;  %v2570_v17 = vld [vmem:[%s5962_s21 + $0x58] sm:$0xff] }
 0x94a   : > { %4680 = vmatprep.mubr.bf16.mxu0 %v2390_v16 }
 0x951   : > { %4681 = vmatmul.mubr.bf16.gmra.mrb[8].mxu0 %v2391_v6 }
 0x952   : > { %4684 = vmatprep.mubr.bf16.mxu0 %v2392_v10 }
 0x959   : > { %4685 = vmatmul.mubr.bf16.gmra.mrb[12].mxu0 %v2393_v56  ;;  %v5068_v56 = vpack.c.bf16 %v2570_v17, %v2569_v33 }
 0xa14   : > { %v4674_v5 = vpop.f32.mrb[0].mxu0 }
 0xa15   : > { %v2436_v8 = vpop.f32.mrb[1].mxu0  ;;  %v2501_v7 = vmax.f32 %v4674_v5, 0.0 }
 0xa16   : > { %v4675_v41 = vpop.f32.mrb[2].mxu0  ;;  %v2499_v60 = vmax.f32 %v2436_v8, 0.0 }
 0xa17   : > { %v2439_v19 = vpop.f32.mrb[3].mxu0  ;;  %v2502_v43 = vmax.f32 %v4675_v41, 0.0  ;;  %v2517_v48 = vmin.f32 %v2501_v7, 5.0  ;;  %v5072_v41 = vpack.c.bf16 %v2572_v63, %v2571_v58 }
 0xa18   : > { %v2500_v62 = vmax.f32 %v2439_v19, 0.0  ;;  %v2515_v20 = vmin.f32 %v2499_v60, 5.0  ;;  %v2573_v19 = vld [vmem:[%s5962_s21 + $0x70] sm:$0xff] }
 0xa19   : > { %v2518_v49 = vmin.f32 %v2502_v43, 5.0 }
 0xa1a   : > { %v2516_v22 = vmin.f32 %v2500_v62, 5.0  ;;  %4720 = vmatprep.mubr.f32.mxu1 %v2515_v20 }
 0xa1c   : > { %v4678_v28 = vpop.f32.mrb[4].mxu0  ;;  %4721 = vmatmul.mubr.f32.vlgmr.msra.gmra.mrb[0].mxu1 %v2516_v22  ;;  %v5076_v22 = vpack.c.bf16 %v2574_v3, %v2573_v19 }
 0xa1d   : > { %5051 = vmatpush3.bf16.msra.mxu1 %v5048_v51  ;;  %v2452_v27 = vpop.f32.mrb[5].mxu0  ;;  %4723 = vmatprep.mubr.f32.mxu1 %v2517_v48  ;;  %v2505_v44 = vmax.f32 %v4678_v28, 0.0  ;;  %v2543_v48 = vunpack.c.l.bf16 %v6755_v32  ;;  %v2545_v28 = vunpack.c.l.bf16 %v6757_v35  ;;  %v2551_v32 = vunpack.c.l.bf16 %v6778_v57 }
 0xa1e   : > { %v2503_v31 = vmax.f32 %v2452_v27, 0.0  ;;  %v4679_v21 = vpop.f32.mrb[6].mxu0  ;;  %5053 = vmatprep.subr.bf16.mxu1 %v5052_v23  ;;  %v2546_v27 = vunpack.c.h.bf16 %v6757_v35  ;;  %v2553_v35 = vunpack.c.l.bf16 %v6784_v0 }
 0xa1f   : > { %v2455_v38 = vpop.f32.mrb[7].mxu0  ;;  %v2506_v42 = vmax.f32 %v4679_v21, 0.0  ;;  %v2521_v61 = vmin.f32 %v2505_v44, 5.0  ;;  %v2549_v21 = vunpack.c.l.bf16 %v6772_v50  ;;  %v2552_v44 = vunpack.c.h.bf16 %v6778_v57  ;;  %v4014_v57 = vld [vmem:[%s5981_s26] ss:$0 sm:$0xff] }
 0xa20   : > { %v2519_v37 = vmin.f32 %v2503_v31, 5.0  ;;  %v2504_v52 = vmax.f32 %v2455_v38, 0.0  ;;  %4724 = vmatmul.mubr.f32.gmra.mrb[2].mxu1 %v2518_v49  ;;  %v2547_v49 = vunpack.c.l.bf16 %v6762_v12  ;;  %v2548_v31 = vunpack.c.h.bf16 %v6762_v12 }
 0xa21   : > { %5055 = vmatpush3.bf16.msra.mxu1 %v5052_v23  ;;  %v2522_v39 = vmin.f32 %v2506_v42, 5.0  ;;  %v2554_v38 = vunpack.c.h.bf16 %v6784_v0  ;;  %v2555_v12 = vunpack.c.l.bf16 %v6790_v36 }
 0xa22   : > { %v2520_v54 = vmin.f32 %v2504_v52, 5.0  ;;  %4726 = vmatprep.mubr.f32.mxu1 %v2519_v37  ;;  %5057 = vmatprep.subr.bf16.mxu1 %v5056_v47 }
 0xa24   : > { %v4682_v34 = vpop.f32.mrb[8].mxu0  ;;  %4727 = vmatmul.mubr.f32.gmra.mrb[4].mxu1 %v2520_v54 }
 0xa25   : > { %5059 = vmatpush3.bf16.msra.mxu1 %v5056_v47  ;;  %v2468_v46 = vpop.f32.mrb[9].mxu0  ;;  %4729 = vmatprep.mubr.f32.mxu1 %v2521_v61  ;;  %v2509_v45 = vmax.f32 %v4682_v34, 0.0  ;;  %v2550_v47 = vunpack.c.h.bf16 %v6772_v50  ;;  %v2557_v50 = vunpack.c.l.bf16 %v6796_v13 }
 0xa26   : > { %v2507_v11 = vmax.f32 %v2468_v46, 0.0  ;;  %v4683_v26 = vpop.f32.mrb[10].mxu0  ;;  %5061 = vmatprep.subr.bf16.mxu1 %v5060_v59 }
 0xa27   : > { %v2471_v9 = vpop.f32.mrb[11].mxu0  ;;  %v2510_v6 = vmax.f32 %v4683_v26, 0.0  ;;  %v2525_v24 = vmin.f32 %v2509_v45, 5.0 }
 0xa28   : > { %v2523_v16 = vmin.f32 %v2507_v11, 5.0  ;;  %v2508_v53 = vmax.f32 %v2471_v9, 0.0  ;;  %4730 = vmatmul.mubr.f32.gmra.mrb[6].mxu1 %v2522_v39 }
 0xa29   : > { %5063 = vmatpush3.bf16.msra.mxu1 %v5060_v59  ;;  %v2526_v51 = vmin.f32 %v2510_v6, 5.0 }
 0xa2a   : > { %v2524_v10 = vmin.f32 %v2508_v53, 5.0  ;;  %4732 = vmatprep.mubr.f32.mxu1 %v2523_v16  ;;  %5065 = vmatprep.subr.bf16.mxu1 %v5064_v15 }
 0xa2c   : > { %v4686_v40 = vpop.f32.mrb[12].mxu0  ;;  %4733 = vmatmul.mubr.f32.gmra.mrb[8].mxu1 %v2524_v10 }
 0xa2d   : > { %5067 = vmatpush3.bf16.msra.mxu1 %v5064_v15  ;;  %v2484_v25 = vpop.f32.mrb[13].mxu0  ;;  %4735 = vmatprep.mubr.f32.mxu1 %v2525_v24  ;;  %v2513_v60 = vmax.f32 %v4686_v40, 0.0 }
 0xa2e   : > { %v2511_v5 = vmax.f32 %v2484_v25, 0.0  ;;  %v4687_v8 = vpop.f32.mrb[14].mxu0  ;;  %5069 = vmatprep.subr.bf16.mxu1 %v5068_v56 }
 0xa2f   : > { %v2487_v7 = vpop.f32.mrb[15].mxu0  ;;  %v2514_v20 = vmax.f32 %v4687_v8, 0.0  ;;  %v2529_v23 = vmin.f32 %v2513_v60, 5.0 }
 0xa30   : > { %v2527_v14 = vmin.f32 %v2511_v5, 5.0  ;;  %v2512_v62 = vmax.f32 %v2487_v7, 0.0  ;;  %4736 = vmatmul.mubr.f32.gmra.mrb[10].mxu1 %v2526_v51 }
 0xa31   : > { %5071 = vmatpush3.bf16.msra.mxu1 %v5068_v56  ;;  %v2530_v55 = vmin.f32 %v2514_v20, 5.0 }
 0xa32   : > { %v2528_v43 = vmin.f32 %v2512_v62, 5.0  ;;  %4738 = vmatprep.mubr.f32.mxu1 %v2527_v14  ;;  %5073 = vmatprep.subr.bf16.mxu1 %v5072_v41 }
 0xa34   : > { %4739 = vmatmul.mubr.f32.gmra.mrb[12].mxu1 %v2528_v43 }
 0xa35   : > { %5075 = vmatpush3.bf16.msra.mxu1 %v5072_v41  ;;  %4741 = vmatprep.mubr.f32.mxu1 %v2529_v23 }
 0xa36   : > { %5077 = vmatprep.subr.bf16.mxu1 %v5076_v22 }
 0xa38   : > { %4742 = vmatmul.mubr.f32.gmra.mrb[14].mxu1 %v2530_v55 }
 0xa39   : > { %5079 = vmatpush3.bf16.msra.mxu1 %v5076_v22  ;;  %4776 = vmatprep.mubr.f32.mxu1 %v2543_v48 }
 0xa3c   : > { %4777 = vmatmul.mubr.f32.vlgmr.msra.gmra.mrb[0].mxu1 %v2544_v18 }
 0xa3d   : > { %4779 = vmatprep.mubr.f32.mxu1 %v2545_v28 }
 0xa40   : > { %4780 = vmatmul.mubr.f32.gmra.mrb[2].mxu1 %v2546_v27 }
 0xa41   : > { %4782 = vmatprep.mubr.f32.mxu1 %v2547_v49 }
 0xa44   : > { %4783 = vmatmul.mubr.f32.gmra.mrb[4].mxu1 %v2548_v31 }
 0xa45   : > { %4785 = vmatprep.mubr.f32.mxu1 %v2549_v21 }
 0xa48   : > { %4786 = vmatmul.mubr.f32.gmra.mrb[6].mxu1 %v2550_v47 }
 0xa49   : > { %4788 = vmatprep.mubr.f32.mxu1 %v2551_v32 }
 0xa4c   : > { %4789 = vmatmul.mubr.f32.gmra.mrb[8].mxu1 %v2552_v44 }
 0xa4d   : > { %4791 = vmatprep.mubr.f32.mxu1 %v2553_v35 }
 0xa50   : > { %4792 = vmatmul.mubr.f32.gmra.mrb[10].mxu1 %v2554_v38 }
 0xa51   : > { %4794 = vmatprep.mubr.f32.mxu1 %v2555_v12 }
 0xa54   : > { %4795 = vmatmul.mubr.f32.gmra.mrb[12].mxu1 %v2556_v30 }
 0xa55   : > { %4797 = vmatprep.mubr.f32.mxu1 %v2557_v50 }
 0xa58   : > { %4798 = vmatmul.mubr.f32.gmra.mrb[14].mxu1 %v2558_v2 }
 0xb0f   : > { %v4778_v37 = vpop.f32.mrb[0].mxu1 }
 0xb10   : > { %v2803_v52 = vpop.f32.mrb[1].mxu1  ;;  %v2890_v59 = vadd.f32 %v4778_v37, %v4014_v57 }
 0xb11   : > { %v2889_v42 = vadd.f32 %v4014_v57, %v2803_v52 }
 0xb13   : > { %2905 = vmax.xlane.f32.xlu0 %v2889_v42  ;;  %v4781_v0 = vpop.f32.mrb[2].mxu1 }
 0xb14   : > { %v2813_v54 = vpop.f32.mrb[3].mxu1  ;;  %v2892_v29 = vadd.f32 %v4781_v0, %v4014_v57 }
 0xb15   : > { %v2891_v61 = vadd.f32 %v4014_v57, %v2813_v54 }
 0xb17   : > { %2907 = vmax.xlane.f32.xlu0 %v2890_v59  ;;  %2909 = vmax.xlane.f32.xlu1 %v2891_v61  ;;  %v4784_v36 = vpop.f32.mrb[4].mxu1 }
 0xb18   : > { %v2823_v4 = vpop.f32.mrb[5].mxu1  ;;  %v2894_v39 = vadd.f32 %v4784_v36, %v4014_v57 }
 0xb19   : > { %v2893_v34 = vadd.f32 %v4014_v57, %v2823_v4 }
 0xb1b   : > { %2911 = vmax.xlane.f32.xlu1 %v2892_v29  ;;  %2913 = vmax.xlane.f32.xlu0 %v2893_v34  ;;  %v4787_v13 = vpop.f32.mrb[6].mxu1 }
 0xb1c   : > { %v2833_v46 = vpop.f32.mrb[7].mxu1  ;;  %v6836_v45 = vadd.f32 %v4787_v13, %v4014_v57 }
 0xb1d   : > { %v2895_v11 = vadd.f32 %v4014_v57, %v2833_v46 }
 0xb1f   : > { %2915 = vmax.xlane.f32.xlu1 %v2894_v39  ;;  %2917 = vmax.xlane.f32.xlu0 %v2895_v11  ;;  %v4790_v26 = vpop.f32.mrb[8].mxu1 }
 0xb20   : > { %v2843_v15 = vpop.f32.mrb[9].mxu1  ;;  %v6842_v16 = vadd.f32 %v4790_v26, %v4014_v57 }
 0xb21   : > { %v6838_v9 = vadd.f32 %v4014_v57, %v2843_v15 }
 0xb23   : > { %2919 = vmax.xlane.f32.xlu1 %v6836_v45  ;;  %2921 = vmax.xlane.f32.xlu0 %v6838_v9  ;;  %v4793_v33 = vpop.f32.mrb[10].mxu1 }
 0xb24   : > { %v2853_v17 = vpop.f32.mrb[11].mxu1  ;;  %v6848_v56 = vadd.f32 %v4793_v33, %v4014_v57 }
 0xb25   : > { %v6844_v53 = vadd.f32 %v4014_v57, %v2853_v17 }
 0xb27   : > { %2923 = vmax.xlane.f32.xlu1 %v6842_v16  ;;  %2925 = vmax.xlane.f32.xlu0 %v6844_v53  ;;  %v4796_v6 = vpop.f32.mrb[12].mxu1 }
 0xb28   : > { %v2863_v10 = vpop.f32.mrb[13].mxu1  ;;  %v6854_v40 = vadd.f32 %v4796_v6, %v4014_v57 }
 0xb29   : > { %v6850_v24 = vadd.f32 %v4014_v57, %v2863_v10 }
 0xb2b   : > { %2927 = vmax.xlane.f32.xlu1 %v6848_v56  ;;  %2929 = vmax.xlane.f32.xlu0 %v6850_v24  ;;  %v4799_v58 = vpop.f32.mrb[14].mxu1 }
 0xb2c   : > { %v2873_v63 = vpop.f32.mrb[15].mxu1  ;;  %v6860_v51 = vadd.f32 %v4799_v58, %v4014_v57 }
 0xb2d   : > { %v6856_v25 = vadd.f32 %v4014_v57, %v2873_v63 }
 0xb2f   : > { %2931 = vmax.xlane.f32.xlu1 %v6854_v40  ;;  %2933 = vmax.xlane.f32.xlu0 %v6856_v25 }
 0xb33   : > { %2935 = vmax.xlane.f32.xlu1 %v6860_v51 }
 0xba0   : > { %v2906_v5 = vpop.xlane.xlu0 %2905 }
 0xba1   : > { %vm2937_vm0 = vcmp.eq.f32.partialorder %v2889_v42, %v2906_v5 }
 0xba2   : > { %v6864_v8 = vsel %vm2937_vm0, %v5976_v1, 1073741824 }
 0xba3   : > { %v2970_v41 = vshra.s32 %v6864_v8, 16 }
 0xba4   : > { %v2908_v60 = vpop.xlane.xlu0 %2907  ;;  %v2910_v7 = vpop.xlane.xlu1 %2909 }
 0xba5   : > { %vm2938_vm1 = vcmp.eq.f32.partialorder %v2890_v59, %v2908_v60  ;;  %vm2939_vm2 = vcmp.eq.f32.partialorder %v2891_v61, %v2910_v7  ;;  %v6867_v19 = vcvt.s32.f32 %v2970_v41  ;;  %v3277_v60 = vld [vmem:[%s5969_s3 + $0x8] sm:$0xff]  ;;  %v3278_v7 = vld [vmem:[%s5969_s3 + $0x10] sm:$0xff] }
 0xba6   : > { %v6870_v3 = vsel %vm2938_vm1, %v5976_v1, 1073741824  ;;  %v6873_v14 = vsel %vm2939_vm2, %v5976_v1, 1073741824 }
 0xba7   : > { %v2984_v62 = vshra.s32 %v6870_v3, 16  ;;  %v2998_v20 = vshra.s32 %v6873_v14, 16  ;;  %2973 = vmin.xlane.f32.xlu0 %v6867_v19 }
 0xba8   : > { %v2912_v43 = vpop.xlane.xlu1 %2911  ;;  %v2914_v22 = vpop.xlane.xlu0 %2913 }
 0xba9   : > { %vm2940_vm3 = vcmp.eq.f32.partialorder %v2892_v29, %v2912_v43  ;;  %vm2941_vm4 = vcmp.eq.f32.partialorder %v2893_v34, %v2914_v22  ;;  %v6884_v55 = vcvt.s32.f32 %v2984_v62  ;;  %v6886_v18 = vcvt.s32.f32 %v2998_v20  ;;  %v3279_v20 = vld [vmem:[%s5969_s3 + $0x18] sm:$0xff]  ;;  %v3280_v22 = vld [vmem:[%s5969_s3 + $0x20] sm:$0xff] }
 0xbaa   : > { %v6879_v23 = vsel %vm2940_vm3, %v5976_v1, 1073741824  ;;  %v6882_v48 = vsel %vm2941_vm4, %v5976_v1, 1073741824  ;;  %v5084_v43 = vpack.c.bf16 %v3279_v20, %v3278_v7 }
 0xbab   : > { %v3012_v28 = vshra.s32 %v6879_v23, 16  ;;  %v3026_v27 = vshra.s32 %v6882_v48, 16  ;;  %2987 = vmin.xlane.f32.xlu1 %v6884_v55  ;;  %3001 = vmin.xlane.f32.xlu0 %v6886_v18 }
 0xbac   : > { %v2916_v49 = vpop.xlane.xlu1 %2915  ;;  %v2918_v31 = vpop.xlane.xlu0 %2917 }
 0xbad   : > { %vm2942_vm5 = vcmp.eq.f32.partialorder %v2894_v39, %v2916_v49  ;;  %vm2943_vm6 = vcmp.eq.f32.partialorder %v2895_v11, %v2918_v31  ;;  %v6898_v32 = vcvt.s32.f32 %v3012_v28  ;;  %v6900_v44 = vcvt.s32.f32 %v3026_v27  ;;  %v3281_v28 = vld [vmem:[%s5969_s3 + $0x28] sm:$0xff]  ;;  %v3282_v49 = vld [vmem:[%s5969_s3 + $0x30] sm:$0xff]  ;;  %v3283_v31 = vld [vmem:[%s5969_s3 + $0x38] sm:$0xff] }
 0xbae   : > { %v6893_v21 = vsel %vm2942_vm5, %v5976_v1, 1073741824  ;;  %v6896_v47 = vsel %vm2943_vm6, %v5976_v1, 1073741824  ;;  %v5088_v27 = vpack.c.bf16 %v3281_v28, %v3280_v22  ;;  %v3288_v22 = vld [vmem:[%s5969_s3 + $0x60] sm:$0xff] }
 0xbaf   : > { %v3040_v35 = vshra.s32 %v6893_v21, 16  ;;  %v3054_v38 = vshra.s32 %v6896_v47, 16  ;;  %3015 = vmin.xlane.f32.xlu1 %v6898_v32  ;;  %3029 = vmin.xlane.f32.xlu0 %v6900_v44 }
 0xbb0   : > { %v2920_v12 = vpop.xlane.xlu1 %2919  ;;  %v2922_v30 = vpop.xlane.xlu0 %2921 }
 0xbb1   : > { %vm2944_vm7 = vcmp.eq.f32.partialorder %v6836_v45, %v2920_v12  ;;  %vm2945_vm8 = vcmp.eq.f32.partialorder %v6838_v9, %v2922_v30  ;;  %v6914_v57 = vcvt.s32.f32 %v3040_v35  ;;  %v6916_v37 = vcvt.s32.f32 %v3054_v38  ;;  %v3284_v38 = vld [vmem:[%s5969_s3 + $0x40] sm:$0xff]  ;;  %v3285_v12 = vld [vmem:[%s5969_s3 + $0x48] sm:$0xff] }
 0xbb2   : > { %v6909_v50 = vsel %vm2944_vm7, %v5976_v1, 1073741824  ;;  %v6912_v2 = vsel %vm2945_vm8, %v5976_v1, 1073741824  ;;  %v5092_v35 = vpack.c.bf16 %v3283_v31, %v3282_v49  ;;  %v5096_v30 = vpack.c.bf16 %v3285_v12, %v3284_v38  ;;  %v3290_v38 = vld [vmem:[%s5969_s3 + $0x70] sm:$0xff]  ;;  %v3291_v12 = vld [vmem:[%s5969_s3 + $0x78] sm:$0xff] }
 0xbb3   : > { %v3068_v52 = vshra.s32 %v6909_v50, 16  ;;  %v3082_v42 = vshra.s32 %v6912_v2, 16  ;;  %3043 = vmin.xlane.f32.xlu1 %v6914_v57  ;;  %3057 = vmin.xlane.f32.xlu0 %v6916_v37  ;;  %v3081_v7 = vand.u32 65535, %v6912_v2 }
 0xbb4   : > { %v2924_v0 = vpop.xlane.xlu1 %2923  ;;  %v2926_v54 = vpop.xlane.xlu0 %2925 }
 0xbb5   : > { %vm2946_vm9 = vcmp.eq.f32.partialorder %v6842_v16, %v2924_v0  ;;  %vm2947_vm10 = vcmp.eq.f32.partialorder %v6844_v53, %v2926_v54  ;;  %v6930_v36 = vcvt.s32.f32 %v3068_v52  ;;  %v6932_v4 = vcvt.s32.f32 %v3082_v42  ;;  %v3286_v52 = vld [vmem:[%s5969_s3 + $0x50] sm:$0xff]  ;;  %v3287_v42 = vld [vmem:[%s5969_s3 + $0x58] sm:$0xff] }
 0xbb6   : > { %v6925_v59 = vsel %vm2946_vm9, %v5976_v1, 1073741824  ;;  %v6928_v61 = vsel %vm2947_vm10, %v5976_v1, 1073741824  ;;  %v5100_v0 = vpack.c.bf16 %v3287_v42, %v3286_v52  ;;  %v2969_v54 = vand.u32 65535, %v6864_v8 }
 0xbb7   : > { %v3096_v29 = vshra.s32 %v6925_v59, 16  ;;  %v3110_v34 = vshra.s32 %v6928_v61, 16  ;;  %3071 = vmin.xlane.f32.xlu1 %v6930_v36  ;;  %3085 = vmin.xlane.f32.xlu0 %v6932_v4  ;;  %v3083_v28 = vcvt.s32.f32 %v3081_v7 }
 0xbb8   : > { %v2928_v13 = vpop.xlane.xlu1 %2927  ;;  %v2930_v46 = vpop.xlane.xlu0 %2929 }
 0xbb9   : > { %vm2948_vm11 = vcmp.eq.f32.partialorder %v6848_v56, %v2928_v13  ;;  %vm2949_vm12 = vcmp.eq.f32.partialorder %v6850_v24, %v2930_v46  ;;  %v6946_v26 = vcvt.s32.f32 %v3096_v29  ;;  %v6948_v15 = vcvt.s32.f32 %v3110_v34 }
 0xbba   : > { %v6941_v39 = vsel %vm2948_vm11, %v5976_v1, 1073741824  ;;  %v6944_v11 = vsel %vm2949_vm12, %v5976_v1, 1073741824  ;;  %v2971_v29 = vcvt.s32.f32 %v2969_v54  ;;  %v2983_v13 = vand.u32 65535, %v6870_v3 }
 0xbbb   : > { %v3124_v45 = vshra.s32 %v6941_v39, 16  ;;  %v3138_v9 = vshra.s32 %v6944_v11, 16  ;;  %3099 = vmin.xlane.f32.xlu1 %v6946_v26  ;;  %3113 = vmin.xlane.f32.xlu0 %v6948_v15  ;;  %v2997_v46 = vand.u32 65535, %v6873_v14  ;;  %v3137_v52 = vand.u32 65535, %v6944_v11 }
 0xbbc   : > { %v2932_v33 = vpop.xlane.xlu1 %2931  ;;  %v2934_v17 = vpop.xlane.xlu0 %2933 }
 0xbbd   : > { %vm2950_vm13 = vcmp.eq.f32.partialorder %v6854_v40, %v2932_v33  ;;  %vm2951_vm14 = vcmp.eq.f32.partialorder %v6856_v25, %v2934_v17  ;;  %v6962_v6 = vcvt.s32.f32 %v3124_v45  ;;  %v6964_v10 = vcvt.s32.f32 %v3138_v9 }
 0xbbe   : > { %v6957_v16 = vsel %vm2950_vm13, %v5976_v1, 1073741824  ;;  %v6960_v53 = vsel %vm2951_vm14, %v5976_v1, 1073741824  ;;  %v2985_v9 = vcvt.s32.f32 %v2983_v13  ;;  %v2999_v33 = vcvt.s32.f32 %v2997_v46 }
 0xbbf   : > { %v3152_v56 = vshra.s32 %v6957_v16, 16  ;;  %v3166_v24 = vshra.s32 %v6960_v53, 16  ;;  %3127 = vmin.xlane.f32.xlu1 %v6962_v6  ;;  %3141 = vmin.xlane.f32.xlu0 %v6964_v10  ;;  %v3011_v17 = vand.u32 65535, %v6879_v23  ;;  %v3039_v23 = vand.u32 65535, %v6893_v21 }
 0xbc0   : > { %v2936_v58 = vpop.xlane.xlu1 %2935  ;;  %v3151_v11 = vand.u32 65535, %v6957_v16  ;;  %v3165_v13 = vand.u32 65535, %v6960_v53 }
 0xbc1   : > { %vm2952_vm15 = vcmp.eq.f32.partialorder %v6860_v51, %v2936_v58  ;;  %v6971_v63 = vcvt.s32.f32 %v3152_v56  ;;  %v6976_v25 = vcvt.s32.f32 %v3166_v24  ;;  %v3276_v51 = vld [vmem:[%s5969_s3] sm:$0xff]  ;;  %v3025_v56 = vand.u32 65535, %v6882_v48 }
 0xbc2   : > { %v6974_v40 = vsel %vm2952_vm15, %v5976_v1, 1073741824  ;;  %v5080_v62 = vpack.c.bf16 %v3277_v60, %v3276_v51  ;;  %v3013_v14 = vcvt.s32.f32 %v3011_v17  ;;  %v3053_v48 = vand.u32 65535, %v6896_v47 }
 0xbc3   : > { %v3180_v5 = vshra.s32 %v6974_v40, 16  ;;  %3155 = vmin.xlane.f32.xlu1 %v6971_v63  ;;  %3169 = vmin.xlane.f32.xlu0 %v6976_v25  ;;  %v3027_v58 = vcvt.s32.f32 %v3025_v56  ;;  %v3041_v60 = vcvt.s32.f32 %v3039_v23  ;;  %v3067_v47 = vand.u32 65535, %v6909_v50  ;;  %v3289_v50 = vld [vmem:[%s5969_s3 + $0x68] sm:$0xff] }
 0xbc4   : > { %5081 = vmatprep.subr.bf16.mxu0 %v5080_v62  ;;  %v3055_v21 = vcvt.s32.f32 %v3053_v48  ;;  %v5104_v31 = vpack.c.bf16 %v3289_v50, %v3288_v22  ;;  %v3179_v16 = vand.u32 65535, %v6974_v40 }
 0xbc5   : > { %v6981_v41 = vcvt.s32.f32 %v3180_v5  ;;  %5083 = vmatpush3.bf16.msra.mxu0 %v5080_v62  ;;  %v3069_v2 = vcvt.s32.f32 %v3067_v47 }
 0xbc6   : > { %5085 = vmatprep.subr.bf16.mxu0 %v5084_v43  ;;  %v3181_v56 = vcvt.s32.f32 %v3179_v16 }
 0xbc7   : > { %3183 = vmin.xlane.f32.xlu1 %v6981_v41 }
 0xbc9   : > { %5087 = vmatpush3.bf16.msra.mxu0 %v5084_v43  ;;  %v3095_v43 = vand.u32 65535, %v6925_v59 }
 0xbca   : > { %5089 = vmatprep.subr.bf16.mxu0 %v5088_v27 }
 0xbcd   : > { %5091 = vmatpush3.bf16.msra.mxu0 %v5088_v27  ;;  %v3109_v27 = vand.u32 65535, %v6928_v61 }
 0xbce   : > { %5093 = vmatprep.subr.bf16.mxu0 %v5092_v35 }
 0xbcf   : > { %v3111_v61 = vcvt.s32.f32 %v3109_v27  ;;  %v5623_v27 = vmov 0.0  }
 0xbd1   : > { %5095 = vmatpush3.bf16.msra.mxu0 %v5092_v35  ;;  %v3097_v35 = vcvt.s32.f32 %v3095_v43 }
 0xbd2   : > { %5097 = vmatprep.subr.bf16.mxu0 %v5096_v30 }
 0xbd5   : > { %5099 = vmatpush3.bf16.msra.mxu0 %v5096_v30  ;;  %v3123_v30 = vand.u32 65535, %v6941_v39 }
 0xbd6   : > { %5101 = vmatprep.subr.bf16.mxu0 %v5100_v0 }
 0xbd7   : > { %v3125_v39 = vcvt.s32.f32 %v3123_v30 }
 0xbd9   : > { %5103 = vmatpush3.bf16.msra.mxu0 %v5100_v0 }
 0xbda   : > { %5105 = vmatprep.subr.bf16.mxu0 %v5104_v31 }
 0xbdd   : > { %5107 = vmatpush3.bf16.msra.mxu0 %v5104_v31 }
 0xc34   : > { %v6997_v34 = vpop.xlane.xlu0 %2973 }
 0xc35   : > { %vm2975_vm0 = vcmp.eq.f32.partialorder %v6867_v19, %v6997_v34 }
 0xc36   : > { %v2976_v45 = vsel %vm2975_vm0, %v2971_v29, inf  ;;  %v3139_v29 = vcvt.s32.f32 %v3137_v52 }
 0xc37   : > { %2977 = vmin.xlane.f32.xlu0 %v2976_v45 }
 0xc38   : > { %v7005_v24 = vpop.xlane.xlu1 %2987  ;;  %v7007_v8 = vpop.xlane.xlu0 %3001 }
 0xc39   : > { %vm2989_vm1 = vcmp.eq.f32.partialorder %v6884_v55, %v7005_v24  ;;  %vm3003_vm2 = vcmp.eq.f32.partialorder %v6886_v18, %v7007_v8  ;;  %v2994_v23 = vcvt.f32.s32 %v7005_v24 }
 0xc3a   : > { %v2990_v3 = vsel %vm2989_vm1, %v2985_v9, inf  ;;  %v3004_v19 = vsel %vm3003_vm2, %v2999_v33, inf  ;;  %v3153_v9 = vcvt.s32.f32 %v3151_v11  ;;  %v3167_v33 = vcvt.s32.f32 %v3165_v13 }
 0xc3b   : > { %2991 = vmin.xlane.f32.xlu1 %v2990_v3  ;;  %3005 = vmin.xlane.f32.xlu0 %v3004_v19  ;;  %v2980_v19 = vcvt.f32.s32 %v6997_v34 }
 0xc3c   : > { %v7015_v5 = vpop.xlane.xlu1 %3015  ;;  %v7017_v51 = vpop.xlane.xlu0 %3029 }
 0xc3d   : > { %vm3017_vm3 = vcmp.eq.f32.partialorder %v6898_v32, %v7015_v5  ;;  %vm3031_vm4 = vcmp.eq.f32.partialorder %v6900_v44, %v7017_v51 }
 0xc3e   : > { %v3018_v55 = vsel %vm3017_vm3, %v3013_v14, inf  ;;  %v3032_v18 = vsel %vm3031_vm4, %v3027_v58, inf  ;;  %v2981_v58 = vshll.u32 %v2980_v19, 16 }
 0xc3f   : > { %3019 = vmin.xlane.f32.xlu1 %v3018_v55  ;;  %3033 = vmin.xlane.f32.xlu0 %v3032_v18  ;;  %v3022_v55 = vcvt.f32.s32 %v7015_v5  ;;  %v3036_v18 = vcvt.f32.s32 %v7017_v51 }
 0xc40   : > { %v7025_v62 = vpop.xlane.xlu1 %3043  ;;  %v7027_v20 = vpop.xlane.xlu0 %3057 }
 0xc41   : > { %vm3045_vm5 = vcmp.eq.f32.partialorder %v6914_v57, %v7025_v62  ;;  %vm3059_vm6 = vcmp.eq.f32.partialorder %v6916_v37, %v7027_v20  ;;  %v3037_v43 = vshll.u32 %v3036_v18, 16  ;;  %v3050_v5 = vcvt.f32.s32 %v7025_v62 }
 0xc42   : > { %v3046_v32 = vsel %vm3045_vm5, %v3041_v60, inf  ;;  %v3060_v44 = vsel %vm3059_vm6, %v3055_v21, inf  ;;  %v2995_v21 = vshll.u32 %v2994_v23, 16  ;;  %v3064_v51 = vcvt.f32.s32 %v7027_v20 }
 0xc43   : > { %3047 = vmin.xlane.f32.xlu1 %v3046_v32  ;;  %3061 = vmin.xlane.f32.xlu0 %v3060_v44  ;;  %v5622_v32 = vmov 1.0   ;;  %v3023_v44 = vshll.u32 %v3022_v55, 16 }
 0xc44   : > { %v7037_v49 = vpop.xlane.xlu1 %3071  ;;  %v7039_v57 = vpop.xlane.xlu0 %3085 }
 0xc45   : > { %vm3073_vm7 = vcmp.eq.f32.partialorder %v6930_v36, %v7037_v49  ;;  %vm3087_vm8 = vcmp.eq.f32.partialorder %v6932_v4, %v7039_v57  ;;  %v5108_v36 = vpack.c.bf16 %v3291_v12, %v3290_v38  ;;  %v3065_v38 = vshll.u32 %v3064_v51, 16 }
 0xc46   : > { %v3074_v37 = vsel %vm3073_vm7, %v3069_v2, inf  ;;  %v3088_v59 = vsel %vm3087_vm8, %v3083_v28, inf  ;;  %v3078_v12 = vcvt.f32.s32 %v7037_v49 }
 0xc47   : > { %3075 = vmin.xlane.f32.xlu1 %v3074_v37  ;;  %3089 = vmin.xlane.f32.xlu0 %v3088_v59 }
 0xc48   : > { %v7049_v42 = vpop.xlane.xlu1 %3099  ;;  %v7051_v0 = vpop.xlane.xlu0 %3113  ;;  %5109 = vmatprep.subr.bf16.mxu0 %v5108_v36  ;;  %v3079_v11 = vshll.u32 %v3078_v12, 16 }
 0xc49   : > { %vm3101_vm9 = vcmp.eq.f32.partialorder %v6946_v26, %v7049_v42  ;;  %vm3115_vm10 = vcmp.eq.f32.partialorder %v6948_v15, %v7051_v0  ;;  %5111 = vmatpush3.bf16.msra.mxu0 %v5108_v36 }
 0xc4a   : > { %v3102_v4 = vsel %vm3101_vm9, %v3097_v35, inf  ;;  %v3116_v54 = vsel %vm3115_vm10, %v3111_v61, inf  ;;  %v3051_v35 = vshll.u32 %v3050_v5, 16  ;;  %v3092_v61 = vcvt.f32.s32 %v7039_v57 }
 0xc4b   : > { %3103 = vmin.xlane.f32.xlu1 %v3102_v4  ;;  %3117 = vmin.xlane.f32.xlu0 %v3116_v54 }
 0xc4c   : > { %v7059_v46 = vpop.xlane.xlu1 %3127  ;;  %v7061_v45 = vpop.xlane.xlu0 %3141  ;;  %v3093_v13 = vshll.u32 %v3092_v61, 16 }
 0xc4d   : > { %vm3129_vm11 = vcmp.eq.f32.partialorder %v6962_v6, %v7059_v46  ;;  %vm3143_vm12 = vcmp.eq.f32.partialorder %v6964_v10, %v7061_v45 }
 0xc4e   : > { %v3130_v26 = vsel %vm3129_vm11, %v3125_v39, inf  ;;  %v3144_v15 = vsel %vm3143_vm12, %v3139_v29, inf }
 0xc4f   : > { %3131 = vmin.xlane.f32.xlu1 %v3130_v26  ;;  %3145 = vmin.xlane.f32.xlu0 %v3144_v15  ;;  %v3106_v26 = vcvt.f32.s32 %v7049_v42  ;;  %v3120_v15 = vcvt.f32.s32 %v7051_v0 }
 0xc50   : > { %v7068_v53 = vpop.xlane.xlu1 %3155  ;;  %v7070_v17 = vpop.xlane.xlu0 %3169 }
 0xc51   : > { %vm3157_vm13 = vcmp.eq.f32.partialorder %v6971_v63, %v7068_v53  ;;  %vm3171_vm14 = vcmp.eq.f32.partialorder %v6976_v25, %v7070_v17  ;;  %v3008_v25 = vcvt.f32.s32 %v7007_v8  ;;  %v3107_v19 = vshll.u32 %v3106_v26, 16 }
 0xc52   : > { %v3158_v6 = vsel %vm3157_vm13, %v3153_v9, inf  ;;  %v3172_v10 = vsel %vm3171_vm14, %v3167_v33, inf }
 0xc53   : > { %3159 = vmin.xlane.f32.xlu1 %v3158_v6  ;;  %3173 = vmin.xlane.f32.xlu0 %v3172_v10  ;;  %v3009_v47 = vshll.u32 %v3008_v25, 16 }
 0xc54   : > { %v7076_v3 = vpop.xlane.xlu1 %3183 }
 0xc55   : > { %vm3185_vm15 = vcmp.eq.f32.partialorder %v6981_v41, %v7076_v3 }
 0xc56   : > { %v3186_v40 = vsel %vm3185_vm15, %v3181_v56, inf }
 0xc57   : > { %3187 = vmin.xlane.f32.xlu1 %v3186_v40 }
 0xcc4   : > { %v2978_v14 = vpop.xlane.xlu0 %2977 }
 0xcc5   : > { %v2979_v63 = vcvt.f32.s32 %v2978_v14  ;;  %v3121_v14 = vshll.u32 %v3120_v15, 16 }
 0xcc7   : > { %v2982_v48 = vadd.s32 %v2981_v58, %v2979_v63  ;;  %v3134_v58 = vcvt.f32.s32 %v7059_v46  ;;  %v3148_v63 = vcvt.f32.s32 %v7061_v45 }
 0xcc8   : > { %v2992_v60 = vpop.xlane.xlu1 %2991  ;;  %v3006_v41 = vpop.xlane.xlu0 %3005 }
 0xcc9   : > { %vm3193_vm0 = vcmp.eq.s32.totalorder %v5976_v1, %v2982_v48  ;;  %v2993_v7 = vcvt.f32.s32 %v2992_v60  ;;  %v3007_v34 = vcvt.f32.s32 %v3006_v41 }
 0xcca   : > { %4832 = vmatprep.mubr.msk.f32.mxu0 %vm3193_vm0, %v5622_v32  ;;  %v4015_v31 = vsel %vm3193_vm0, 1.0, %v5623_v27 }
 0xccb   : > { %v2996_v24 = vadd.s32 %v2995_v21, %v2993_v7  ;;  %v3010_v8 = vadd.s32 %v3009_v47, %v3007_v34  ;;  %v3135_v21 = vshll.u32 %v3134_v58, 16  ;;  %v3149_v47 = vshll.u32 %v3148_v63, 16  ;;  %v3267_v58 = vld [vmem:[#allocation4 + $0x38] sm:$0xff]  ;;  %v3266_v63 = vld [vmem:[#allocation4 + $0x30] sm:$0xff] }
 0xccc   : > { %v3020_v22 = vpop.xlane.xlu1 %3019  ;;  %v3034_v50 = vpop.xlane.xlu0 %3033  ;;  %v3162_v7 = vcvt.f32.s32 %v7068_v53  ;;  %v3176_v34 = vcvt.f32.s32 %v7070_v17 }
 0xccd   : > { %vm3194_vm1 = vcmp.eq.s32.totalorder %v5976_v1, %v2996_v24  ;;  %vm3195_vm2 = vcmp.eq.s32.totalorder %v5976_v1, %v3010_v8  ;;  %v3021_v2 = vcvt.f32.s32 %v3020_v22  ;;  %v3035_v28 = vcvt.f32.s32 %v3034_v50 }
 0xcce   : > { %v4016_v37 = vsel %vm3194_vm1, 1.0, %v5623_v27  ;;  %4833 = vmatmul.mubr.msk.f32.vlgmr.msra.gmra.mrb[16].mxu0 %vm3194_vm1, %v5622_v32  ;;  %v4017_v54 = vsel %vm3195_vm2, 1.0, %v5623_v27  ;;  %v3163_v50 = vshll.u32 %v3162_v7, 16  ;;  %v3270_v7 = vld [vmem:[#allocation4 + $0x50] sm:$0xff] }
 0xccf   : > { %v3241_v62 = vpack.c.bf16 %v4016_v37, %v4015_v31  ;;  %v3024_v59 = vadd.s32 %v3023_v44, %v3021_v2  ;;  %v3038_v20 = vadd.s32 %v3037_v43, %v3035_v28  ;;  %4835 = vmatprep.mubr.msk.f32.mxu0 %vm3195_vm2, %v5622_v32  ;;  %v3177_v2 = vshll.u32 %v3176_v34, 16 }
 0xcd0   : > { %v3048_v30 = vpop.xlane.xlu1 %3047  ;;  %v3062_v52 = vpop.xlane.xlu0 %3061  ;;  %v3190_v28 = vcvt.f32.s32 %v7076_v3 }
 0xcd1   : > { %3251 = vst [vmem:[#allocation2] sm:$0xff] %v3241_v62  ;;  %vm3196_vm3 = vcmp.eq.s32.totalorder %v5976_v1, %v3024_v59  ;;  %vm3197_vm4 = vcmp.eq.s32.totalorder %v5976_v1, %v3038_v20  ;;  %v3049_v36 = vcvt.f32.s32 %v3048_v30  ;;  %v3063_v4 = vcvt.f32.s32 %v3062_v52 }
 0xcd2   : > { %v4018_v39 = vsel %vm3196_vm3, 1.0, %v5623_v27  ;;  %4836 = vmatmul.mubr.msk.f32.gmra.mrb[18].mxu0 %vm3196_vm3, %v5622_v32  ;;  %v4019_v10 = vsel %vm3197_vm4, 1.0, %v5623_v27  ;;  %v3191_v30 = vshll.u32 %v3190_v28, 16 }
 0xcd3   : > { %v3242_v49 = vpack.c.bf16 %v4018_v39, %v4017_v54  ;;  %v3052_v29 = vadd.s32 %v3051_v35, %v3049_v36  ;;  %v3066_v57 = vadd.s32 %v3065_v38, %v3063_v4  ;;  %4838 = vmatprep.mubr.msk.f32.mxu0 %vm3197_vm4, %v5622_v32 }
 0xcd4   : > { %v3076_v9 = vpop.xlane.xlu1 %3075  ;;  %v3090_v33 = vpop.xlane.xlu0 %3089 }
 0xcd5   : > { %3252 = vst [vmem:[#allocation2 + $0x8] sm:$0xff] %v3242_v49  ;;  %vm3198_vm5 = vcmp.eq.s32.totalorder %v5976_v1, %v3052_v29  ;;  %vm3199_vm6 = vcmp.eq.s32.totalorder %v5976_v1, %v3066_v57  ;;  %v3077_v16 = vcvt.f32.s32 %v3076_v9  ;;  %v3091_v6 = vcvt.f32.s32 %v3090_v33 }
 0xcd6   : > { %v4020_v56 = vsel %vm3198_vm5, 1.0, %v5623_v27  ;;  %4839 = vmatmul.mubr.msk.f32.gmra.mrb[20].mxu0 %vm3198_vm5, %v5622_v32  ;;  %v4021_v18 = vsel %vm3199_vm6, 1.0, %v5623_v27 }
 0xcd7   : > { %v3243_v42 = vpack.c.bf16 %v4020_v56, %v4019_v10  ;;  %v3080_v40 = vadd.s32 %v3079_v11, %v3077_v16  ;;  %v3094_v0 = vadd.s32 %v3093_v13, %v3091_v6  ;;  %4841 = vmatprep.mubr.msk.f32.mxu0 %vm3199_vm6, %v5622_v32  ;;  %v3261_v11 = vld [vmem:[#allocation4 + $0x8] sm:$0xff]  ;;  %v3260_v13 = vld [vmem:[#allocation4] sm:$0xff]  ;;  %v3263_v16 = vld [vmem:[#allocation4 + $0x18] sm:$0xff] }
 0xcd8   : > { %v3104_v23 = vpop.xlane.xlu1 %3103  ;;  %v3118_v25 = vpop.xlane.xlu0 %3117  ;;  %v3262_v6 = vld [vmem:[#allocation4 + $0x10] sm:$0xff] }
 0xcd9   : > { %3253 = vst [vmem:[#allocation2 + $0x10] sm:$0xff] %v3243_v42  ;;  %vm3200_vm7 = vcmp.eq.s32.totalorder %v5976_v1, %v3080_v40  ;;  %vm3201_vm8 = vcmp.eq.s32.totalorder %v5976_v1, %v3094_v0  ;;  %v3105_v48 = vcvt.f32.s32 %v3104_v23  ;;  %v3119_v55 = vcvt.f32.s32 %v3118_v25  ;;  %v3265_v40 = vld [vmem:[#allocation4 + $0x28] sm:$0xff] }
 0xcda   : > { %v4022_v60 = vsel %vm3200_vm7, 1.0, %v5623_v27  ;;  %4842 = vmatmul.mubr.msk.f32.gmra.mrb[22].mxu0 %vm3200_vm7, %v5622_v32  ;;  %v4023_v5 = vsel %vm3201_vm8, 1.0, %v5623_v27 }
 0xcdb   : > { %v3244_v46 = vpack.c.bf16 %v4022_v60, %v4021_v18  ;;  %v3108_v41 = vadd.s32 %v3107_v19, %v3105_v48  ;;  %v3122_v45 = vadd.s32 %v3121_v14, %v3119_v55  ;;  %4844 = vmatprep.mubr.msk.f32.mxu0 %vm3201_vm8, %v5622_v32  ;;  %v3269_v18 = vld [vmem:[#allocation4 + $0x48] sm:$0xff]  ;;  %v3268_v60 = vld [vmem:[#allocation4 + $0x40] sm:$0xff] }
 0xcdc   : > { %v3132_v24 = vpop.xlane.xlu1 %3131  ;;  %v3146_v8 = vpop.xlane.xlu0 %3145 }
 0xcdd   : > { %3254 = vst [vmem:[#allocation2 + $0x18] sm:$0xff] %v3244_v46  ;;  %vm3202_vm9 = vcmp.eq.s32.totalorder %v5976_v1, %v3108_v41  ;;  %vm3203_vm10 = vcmp.eq.s32.totalorder %v5976_v1, %v3122_v45  ;;  %v3133_v44 = vcvt.f32.s32 %v3132_v24  ;;  %v3147_v43 = vcvt.f32.s32 %v3146_v8 }
 0xcde   : > { %v4024_v51 = vsel %vm3202_vm9, 1.0, %v5623_v27  ;;  %4845 = vmatmul.mubr.msk.f32.gmra.mrb[24].mxu0 %vm3202_vm9, %v5622_v32  ;;  %v4025_v20 = vsel %vm3203_vm10, 1.0, %v5623_v27 }
 0xcdf   : > { %v3245_v53 = vpack.c.bf16 %v4024_v51, %v4023_v5  ;;  %v3136_v22 = vadd.s32 %v3135_v21, %v3133_v44  ;;  %v3150_v17 = vadd.s32 %v3149_v47, %v3147_v43  ;;  %4847 = vmatprep.mubr.msk.f32.mxu0 %vm3203_vm10, %v5622_v32  ;;  %v3271_v47 = vld [vmem:[#allocation4 + $0x58] sm:$0xff]  ;;  %v3273_v43 = vld [vmem:[#allocation4 + $0x68] sm:$0xff]  ;;  %v3272_v5 = vld [vmem:[#allocation4 + $0x60] sm:$0xff] }
 0xce0   : > { %v3160_v31 = vpop.xlane.xlu1 %3159  ;;  %v3174_v37 = vpop.xlane.xlu0 %3173 }
 0xce1   : > { %3255 = vst [vmem:[#allocation2 + $0x20] sm:$0xff] %v3245_v53  ;;  %vm3204_vm11 = vcmp.eq.s32.totalorder %v5976_v1, %v3136_v22  ;;  %vm3205_vm12 = vcmp.eq.s32.totalorder %v5976_v1, %v3150_v17  ;;  %v3161_v62 = vcvt.f32.s32 %v3160_v31  ;;  %v3175_v59 = vcvt.f32.s32 %v3174_v37 }
 0xce2   : > { %v4026_v35 = vsel %vm3204_vm11, 1.0, %v5623_v27  ;;  %4848 = vmatmul.mubr.msk.f32.gmra.mrb[26].mxu0 %vm3204_vm11, %v5622_v32  ;;  %v4027_v36 = vsel %vm3205_vm12, 1.0, %v5623_v27 }
 0xce3   : > { %v3246_v38 = vpack.c.bf16 %v4026_v35, %v4025_v20  ;;  %v3164_v12 = vadd.s32 %v3163_v50, %v3161_v62  ;;  %v3178_v3 = vadd.s32 %v3177_v2, %v3175_v59  ;;  %4850 = vmatprep.mubr.msk.f32.mxu0 %vm3205_vm12, %v5622_v32  ;;  %v3275_v50 = vld [vmem:[#allocation4 + $0x78] sm:$0xff]  ;;  %v3274_v2 = vld [vmem:[#allocation4 + $0x70] sm:$0xff] }
 0xce4   : > { %v3188_v61 = vpop.xlane.xlu1 %3187 }
 0xce5   : > { %3256 = vst [vmem:[#allocation2 + $0x28] sm:$0xff] %v3246_v38  ;;  %vm3206_vm13 = vcmp.eq.s32.totalorder %v5976_v1, %v3164_v12  ;;  %vm3207_vm14 = vcmp.eq.s32.totalorder %v5976_v1, %v3178_v3  ;;  %v3189_v52 = vcvt.f32.s32 %v3188_v61 }
 0xce6   : > { %v4028_v4 = vsel %vm3206_vm13, 1.0, %v5623_v27  ;;  %4851 = vmatmul.mubr.msk.f32.gmra.mrb[28].mxu0 %vm3206_vm13, %v5622_v32  ;;  %v4029_v49 = vsel %vm3207_vm14, 1.0, %v5623_v27 }
 0xce7   : > { %v3247_v54 = vpack.c.bf16 %v4028_v4, %v4027_v36  ;;  %v3192_v39 = vadd.s32 %v3191_v30, %v3189_v52  ;;  %4853 = vmatprep.mubr.msk.f32.mxu0 %vm3207_vm14, %v5622_v32 }
 0xce9   : > { %3257 = vst [vmem:[#allocation2 + $0x30] sm:$0xff] %v3247_v54  ;;  %vm3208_vm15 = vcmp.eq.s32.totalorder %v5976_v1, %v3192_v39 }
 0xcea   : > { %v4030_v29 = vsel %vm3208_vm15, 1.0, %v5623_v27  ;;  %4854 = vmatmul.mubr.msk.f32.gmra.mrb[30].mxu0 %vm3208_vm15, %v5622_v32  ;;  %v3264_v27 = vld [vmem:[#allocation4 + $0x20] sm:$0xff] }
 0xceb   : > { %v3248_v57 = vpack.c.bf16 %v4030_v29, %v4029_v49 }
 0xced   : > { %3258 = vst [vmem:[#allocation2 + $0x38] sm:$0xff] %v3248_v57 }
 0xda1   : > { %v4834_v26 = vpop.f32.mrb[16].mxu0 }
 0xda2   : > { %v3438_v15 = vadd.f32 %v4834_v26, %v3261_v11  ;;  %v3358_v9 = vpop.f32.mrb[17].mxu0 }
 0xda3   : > { %v3437_v33 = vadd.f32 %v3358_v9, %v3260_v13 }
 0xda4   : > { %3454 = vst [vmem:[#allocation4 + $0x8] sm:$0xff] %v3438_v15 }
 0xda5   : > { %3453 = vst [vmem:[#allocation4] sm:$0xff] %v3437_v33  ;;  %v4837_v10 = vpop.f32.mrb[18].mxu0 }
 0xda6   : > { %v3440_v1 = vadd.f32 %v4837_v10, %v3263_v16  ;;  %v3368_v56 = vpop.f32.mrb[19].mxu0 }
 0xda7   : > { %v3439_v42 = vadd.f32 %v3368_v56, %v3262_v6 }
 0xda8   : > { %3456 = vst [vmem:[#allocation4 + $0x18] sm:$0xff] %v3440_v1 }
 0xda9   : > { %3455 = vst [vmem:[#allocation4 + $0x10] sm:$0xff] %v3439_v42  ;;  %v4840_v32 = vpop.f32.mrb[20].mxu0 }
 0xdaa   : > { %v3442_v0 = vadd.f32 %v4840_v32, %v3265_v40  ;;  %v3378_v19 = vpop.f32.mrb[21].mxu0 }
 0xdab   : > { %v3441_v14 = vadd.f32 %v3378_v19, %v3264_v27 }
 0xdac   : > { %3458 = vst [vmem:[#allocation4 + $0x28] sm:$0xff] %v3442_v0 }
 0xdad   : > { %3457 = vst [vmem:[#allocation4 + $0x20] sm:$0xff] %v3441_v14  ;;  %v4843_v23 = vpop.f32.mrb[22].mxu0 }
 0xdae   : > { %v3444_v25 = vadd.f32 %v4843_v23, %v3267_v58  ;;  %v3388_v48 = vpop.f32.mrb[23].mxu0 }
 0xdaf   : > { %v3443_v55 = vadd.f32 %v3388_v48, %v3266_v63 }
 0xdb0   : > { %3460 = vst [vmem:[#allocation4 + $0x38] sm:$0xff] %v3444_v25 }
 0xdb1   : > { %3459 = vst [vmem:[#allocation4 + $0x30] sm:$0xff] %v3443_v55  ;;  %v4846_v46 = vpop.f32.mrb[24].mxu0 }
 0xdb2   : > { %v3446_v41 = vadd.f32 %v4846_v46, %v3269_v18  ;;  %v3398_v45 = vpop.f32.mrb[25].mxu0 }
 0xdb3   : > { %v3445_v21 = vadd.f32 %v3398_v45, %v3268_v60 }
 0xdb4   : > { %3462 = vst [vmem:[#allocation4 + $0x48] sm:$0xff] %v3446_v41 }
 0xdb5   : > { %3461 = vst [vmem:[#allocation4 + $0x40] sm:$0xff] %v3445_v21  ;;  %v4849_v34 = vpop.f32.mrb[26].mxu0 }
 0xdb6   : > { %v3448_v24 = vadd.f32 %v4849_v34, %v3271_v47  ;;  %v3408_v8 = vpop.f32.mrb[27].mxu0 }
 0xdb7   : > { %v3447_v44 = vadd.f32 %v3408_v8, %v3270_v7 }
 0xdb8   : > { %3464 = vst [vmem:[#allocation4 + $0x58] sm:$0xff] %v3448_v24 }
 0xdb9   : > { %3463 = vst [vmem:[#allocation4 + $0x50] sm:$0xff] %v3447_v44  ;;  %v4852_v51 = vpop.f32.mrb[28].mxu0 }
 0xdba   : > { %v3450_v53 = vadd.f32 %v4852_v51, %v3273_v43  ;;  %v3418_v22 = vpop.f32.mrb[29].mxu0 }
 0xdbb   : > { %v3449_v17 = vadd.f32 %v3418_v22, %v3272_v5 }
 0xdbc   : > { %3466 = vst [vmem:[#allocation4 + $0x68] sm:$0xff] %v3450_v53 }
 0xdbd   : > { %3465 = vst [vmem:[#allocation4 + $0x60] sm:$0xff] %v3449_v17  ;;  %v4855_v28 = vpop.f32.mrb[30].mxu0 }
 0xdbe   : > { %v3452_v31 = vadd.f32 %v4855_v28, %v3275_v50  ;;  %v3428_v37 = vpop.f32.mrb[31].mxu0 }
 0xdbf   : > { %v3451_v62 = vadd.f32 %v3428_v37, %v3274_v2 }
 0xdc0   : > { %3468 = vst [vmem:[#allocation4 + $0x78] sm:$0xff] %v3452_v31 }
 0xdc1   : > { %3467 = vst [vmem:[#allocation4 + $0x70] sm:$0xff] %v3451_v62 }
 0xdc2 PF: > { %p4047_p11 = scmp.ne.s32.totalorder %s5601_s11, 2 }
 0xdc3   : > { %v7173_v59 = vld [vmem:[#allocation4] sm:$0xff] (!%p4047_p11)  ;;  %v7175_v20 = vld [vmem:[#allocation4 + $0x10] sm:$0xff] (!%p4047_p11)  ;;  %v7179_v35 = vld [vmem:[#allocation4 + $0x8] sm:$0xff] (!%p4047_p11) }
 0xdc4   : > { %3472 = sbr.rel (%p4047_p11) target bundleno = 3873 (0xf21), region = 88  ;;  %3490 = vmax.xlane.f32.xlu0 (!%p4047_p11), %v7173_v59  ;;  %3494 = vmax.xlane.f32.xlu1 (!%p4047_p11), %v7175_v20  ;;  %v7181_v38 = vld [vmem:[#allocation4 + $0x18] sm:$0xff] (!%p4047_p11)  ;;  %v7185_v12 = vld [vmem:[#allocation4 + $0x20] sm:$0xff] (!%p4047_p11)  ;;  %v7187_v3 = vld [vmem:[#allocation4 + $0x28] sm:$0xff] (!%p4047_p11) }
 0xdc5   : > { %v7191_v61 = vld [vmem:[#allocation4 + $0x30] sm:$0xff] (!%p4047_p11)  ;;  %v7193_v30 = vld [vmem:[#allocation4 + $0x38] sm:$0xff] (!%p4047_p11)  ;;  %v7197_v52 = vld [vmem:[#allocation4 + $0x40] sm:$0xff] (!%p4047_p11) }
 0xdc6   : > { %v7199_v36 = vld [vmem:[#allocation4 + $0x48] sm:$0xff] (!%p4047_p11)  ;;  %v7203_v4 = vld [vmem:[#allocation4 + $0x50] sm:$0xff] (!%p4047_p11)  ;;  %v7205_v54 = vld [vmem:[#allocation4 + $0x58] sm:$0xff] (!%p4047_p11) }
 0xdc7   : > { %v7209_v39 = vld [vmem:[#allocation4 + $0x60] sm:$0xff] (!%p4047_p11)  ;;  %v7211_v49 = vld [vmem:[#allocation4 + $0x68] sm:$0xff] (!%p4047_p11)  ;;  %v7217_v57 = vld [vmem:[#allocation4 + $0x78] sm:$0xff] (!%p4047_p11) }
 0xdc8   : > { %3492 = vmax.xlane.f32.xlu0 (!%p4047_p11), %v7179_v35  ;;  %3496 = vmax.xlane.f32.xlu1 (!%p4047_p11), %v7181_v38  ;;  %v7215_v29 = vld [vmem:[#allocation4 + $0x70] sm:$0xff] (!%p4047_p11) }
 0xdcc   : > { %3498 = vmax.xlane.f32.xlu0 %v7185_v12  ;;  %3500 = vmax.xlane.f32.xlu1 %v7187_v3 }
 0xdd0   : > { %3502 = vmax.xlane.f32.xlu0 %v7191_v61  ;;  %3504 = vmax.xlane.f32.xlu1 %v7193_v30 }
 0xdd4   : > { %3506 = vmax.xlane.f32.xlu0 %v7197_v52  ;;  %3508 = vmax.xlane.f32.xlu1 %v7199_v36 }
 0xdd8   : > { %3510 = vmax.xlane.f32.xlu0 %v7203_v4  ;;  %3512 = vmax.xlane.f32.xlu1 %v7205_v54 }
 0xddc   : > { %3514 = vmax.xlane.f32.xlu0 %v7209_v39  ;;  %3516 = vmax.xlane.f32.xlu1 %v7211_v49 }
 0xde0   : > { %3518 = vmax.xlane.f32.xlu0 %v7215_v29  ;;  %3520 = vmax.xlane.f32.xlu1 %v7217_v57 }
 0xe51   : > { %v7221_v11 = vpop.xlane.xlu0 %3490  ;;  %v7223_v13 = vpop.xlane.xlu1 %3494 }
 0xe52   : > { %v3522_v26 = vsub.f32 %v7173_v59, %v7221_v11  ;;  %v3524_v15 = vsub.f32 %v7175_v20, %v7223_v13 }
 0xe54   : > { %v3538_v9 = vmul.f32 1.442695, %v3522_v26  ;;  %v3542_v33 = vmul.f32 1.442695, %v3524_v15 }
 0xe55   : > { %v7229_v16 = vpop.xlane.xlu0 %3492  ;;  %v7231_v6 = vpop.xlane.xlu1 %3496 }
 0xe56   : > { %5281 = vpow2.f32 %v3538_v9  ;;  %v3523_v10 = vsub.f32 %v7179_v35, %v7229_v16  ;;  %v3525_v1 = vsub.f32 %v7181_v38, %v7231_v6 }
 0xe57   : > { %5283 = vpow2.f32 %v3542_v33 }
 0xe58   : > { %v3540_v56 = vmul.f32 1.442695, %v3523_v10  ;;  %v3544_v42 = vmul.f32 1.442695, %v3525_v1 }
 0xe59   : > { %v7237_v40 = vpop.xlane.xlu0 %3498  ;;  %v7239_v27 = vpop.xlane.xlu1 %3500 }
 0xe5a   : > { %5285 = vpow2.f32 %v3540_v56  ;;  %v3526_v32 = vsub.f32 %v7185_v12, %v7237_v40  ;;  %v3527_v0 = vsub.f32 %v7187_v3, %v7239_v27 }
 0xe5b   : > { %5287 = vpow2.f32 %v3544_v42 }
 0xe5c   : > { %v3546_v19 = vmul.f32 1.442695, %v3526_v32  ;;  %v3548_v14 = vmul.f32 1.442695, %v3527_v0 }
 0xe5d   : > { %v7245_v58 = vpop.xlane.xlu0 %3502  ;;  %v7247_v63 = vpop.xlane.xlu1 %3504 }
 0xe5e   : > { %5289 = vpow2.f32 %v3546_v19  ;;  %v3528_v23 = vsub.f32 %v7191_v61, %v7245_v58  ;;  %v3529_v25 = vsub.f32 %v7193_v30, %v7247_v63 }
 0xe5f   : > { %5291 = vpow2.f32 %v3548_v14 }
 0xe60   : > { %v5282_v48 = vpop.eup %5281  ;;  %v3550_v55 = vmul.f32 1.442695, %v3528_v23  ;;  %v3552_v18 = vmul.f32 1.442695, %v3529_v25 }
 0xe61   : > { %3570 = vadd.xlane.f32.xlu0 %v5282_v48  ;;  %v7253_v60 = vpop.xlane.xlu0 %3506  ;;  %v7255_v46 = vpop.xlane.xlu1 %3508 }
 0xe62   : > { %v5284_v41 = vpop.eup %5283  ;;  %5293 = vpow2.f32 %v3550_v55  ;;  %v3530_v45 = vsub.f32 %v7197_v52, %v7253_v60  ;;  %v3531_v21 = vsub.f32 %v7199_v36, %v7255_v46 }
 0xe63   : > { %5295 = vpow2.f32 %v3552_v18 }
 0xe64   : > { %v5286_v47 = vpop.eup %5285  ;;  %v3554_v7 = vmul.f32 1.442695, %v3530_v45  ;;  %v3556_v34 = vmul.f32 1.442695, %v3531_v21 }
 0xe65   : > { %3574 = vadd.xlane.f32.xlu0 %v5284_v41  ;;  %3572 = vadd.xlane.f32.xlu1 %v5286_v47  ;;  %v7261_v24 = vpop.xlane.xlu0 %3510  ;;  %v7263_v8 = vpop.xlane.xlu1 %3512 }
 0xe66   : > { %v5288_v44 = vpop.eup %5287  ;;  %5297 = vpow2.f32 %v3554_v7  ;;  %v3532_v43 = vsub.f32 %v7203_v4, %v7261_v24  ;;  %v3533_v5 = vsub.f32 %v7205_v54, %v7263_v8 }
 0xe67   : > { %5299 = vpow2.f32 %v3556_v34 }
 0xe68   : > { %v5290_v51 = vpop.eup %5289  ;;  %v3558_v53 = vmul.f32 1.442695, %v3532_v43  ;;  %v3560_v22 = vmul.f32 1.442695, %v3533_v5 }
 0xe69   : > { %3576 = vadd.xlane.f32.xlu1 %v5288_v44  ;;  %3578 = vadd.xlane.f32.xlu0 %v5290_v51  ;;  %v7269_v17 = vpop.xlane.xlu0 %3514  ;;  %v7271_v50 = vpop.xlane.xlu1 %3516 }
 0xe6a   : > { %v5292_v2 = vpop.eup %5291  ;;  %5301 = vpow2.f32 %v3558_v53  ;;  %v3534_v28 = vsub.f32 %v7209_v39, %v7269_v17  ;;  %v3535_v31 = vsub.f32 %v7211_v49, %v7271_v50 }
 0xe6b   : > { %5303 = vpow2.f32 %v3560_v22 }
 0xe6c   : > { %v5294_v37 = vpop.eup %5293  ;;  %v3562_v62 = vmul.f32 1.442695, %v3534_v28  ;;  %v3564_v26 = vmul.f32 1.442695, %v3535_v31 }
 0xe6d   : > { %3580 = vadd.xlane.f32.xlu1 %v5292_v2  ;;  %3582 = vadd.xlane.f32.xlu0 %v5294_v37  ;;  %v7277_v15 = vpop.xlane.xlu0 %3518  ;;  %v7279_v9 = vpop.xlane.xlu1 %3520 }
 0xe6e   : > { %v5296_v33 = vpop.eup %5295  ;;  %5305 = vpow2.f32 %v3562_v62  ;;  %v3536_v10 = vsub.f32 %v7215_v29, %v7277_v15  ;;  %v3537_v1 = vsub.f32 %v7217_v57, %v7279_v9 }
 0xe6f   : > { %5307 = vpow2.f32 %v3564_v26 }
 0xe70   : > { %v5298_v56 = vpop.eup %5297  ;;  %v3566_v42 = vmul.f32 1.442695, %v3536_v10  ;;  %v3568_v32 = vmul.f32 1.442695, %v3537_v1 }
 0xe71   : > { %3584 = vadd.xlane.f32.xlu1 %v5296_v33  ;;  %3586 = vadd.xlane.f32.xlu0 %v5298_v56  ;;  %v5300_v0 = vpop.eup %5299 }
 0xe72   : > { %5309 = vpow2.f32 %v3566_v42 }
 0xe73   : > { %5311 = vpow2.f32 %v3568_v32 }
 0xe74   : > { %v5302_v19 = vpop.eup %5301 }
 0xe75   : > { %3588 = vadd.xlane.f32.xlu1 %v5300_v0  ;;  %3590 = vadd.xlane.f32.xlu0 %v5302_v19  ;;  %v5304_v14 = vpop.eup %5303 }
 0xe78   : > { %v5306_v23 = vpop.eup %5305 }
 0xe79   : > { %3592 = vadd.xlane.f32.xlu1 %v5304_v14  ;;  %3594 = vadd.xlane.f32.xlu0 %v5306_v23  ;;  %v5308_v25 = vpop.eup %5307 }
 0xe7c   : > { %v5310_v48 = vpop.eup %5309 }
 0xe7d   : > { %3596 = vadd.xlane.f32.xlu1 %v5308_v25  ;;  %3598 = vadd.xlane.f32.xlu0 %v5310_v48  ;;  %v5312_v55 = vpop.eup %5311 }
 0xe81   : > { %3600 = vadd.xlane.f32.xlu1 %v5312_v55 }
 0xeee   : > { %v3571_v18 = vpop.xlane.xlu0 %3570 }
 0xeef   : > { %5313 = vlog2.f32 %v3571_v18 }
 0xef2   : > { %v3573_v41 = vpop.xlane.xlu1 %3572  ;;  %v3575_v45 = vpop.xlane.xlu0 %3574 }
 0xef3   : > { %5315 = vlog2.f32 %v3573_v41 }
 0xef4   : > { %5317 = vlog2.f32 %v3575_v45 }
 0xef6   : > { %v3577_v21 = vpop.xlane.xlu1 %3576  ;;  %v3579_v47 = vpop.xlane.xlu0 %3578 }
 0xef7   : > { %5319 = vlog2.f32 %v3577_v21 }
 0xef8   : > { %5321 = vlog2.f32 %v3579_v47 }
 0xef9   : > { %v5314_v7 = vpop.eup %5313 }
 0xefa   : > { %v3603_v34 = vmul.f32 0.6931472, %v5314_v7  ;;  %v3581_v44 = vpop.xlane.xlu1 %3580  ;;  %v3583_v43 = vpop.xlane.xlu0 %3582 }
 0xefb   : > { %5323 = vlog2.f32 %v3581_v44 }
 0xefc   : > { %v3634_v5 = vadd.f32 %v3603_v34, %v7221_v11  ;;  %5325 = vlog2.f32 %v3583_v43 }
 0xefd   : > { %v5316_v51 = vpop.eup %5315 }
 0xefe   : > { %v5318_v53 = vpop.eup %5317  ;;  %v3650_v22 = vsub.f32 %v7173_v59, %v3634_v5  ;;  %v3605_v2 = vmul.f32 0.6931472, %v5316_v51  ;;  %v3585_v28 = vpop.xlane.xlu1 %3584 }
 0xeff   : > { %v3587_v31 = vpop.xlane.xlu0 %3586  ;;  %v3607_v37 = vmul.f32 0.6931472, %v5318_v53  ;;  %5327 = vlog2.f32 %v3585_v28 }
 0xf00   : > { %3666 = vst [vmem:[#allocation14] sm:$0xff] %v3650_v22  ;;  %v3635_v62 = vadd.f32 %v3605_v2, %v7229_v16  ;;  %5329 = vlog2.f32 %v3587_v31 }
 0xf01   : > { %v5320_v26 = vpop.eup %5319  ;;  %v3636_v33 = vadd.f32 %v3607_v37, %v7223_v13 }
 0xf02   : > { %v5322_v10 = vpop.eup %5321  ;;  %v3651_v11 = vsub.f32 %v7179_v35, %v3635_v62  ;;  %v3609_v1 = vmul.f32 0.6931472, %v5320_v26  ;;  %v3589_v56 = vpop.xlane.xlu1 %3588 }
 0xf03   : > { %v3591_v42 = vpop.xlane.xlu0 %3590  ;;  %v3652_v59 = vsub.f32 %v7175_v20, %v3636_v33  ;;  %v3611_v32 = vmul.f32 0.6931472, %v5322_v10  ;;  %5331 = vlog2.f32 %v3589_v56 }
 0xf04   : > { %3667 = vst [vmem:[#allocation14 + $0x8] sm:$0xff] %v3651_v11  ;;  %v3637_v0 = vadd.f32 %v3609_v1, %v7231_v6  ;;  %5333 = vlog2.f32 %v3591_v42 }
 0xf05   : > { %v5324_v19 = vpop.eup %5323  ;;  %3668 = vst [vmem:[#allocation14 + $0x10] sm:$0xff] %v3652_v59  ;;  %v3638_v16 = vadd.f32 %v3611_v32, %v7237_v40 }
 0xf06   : > { %v5326_v14 = vpop.eup %5325  ;;  %v3653_v13 = vsub.f32 %v7181_v38, %v3637_v0  ;;  %v3613_v23 = vmul.f32 0.6931472, %v5324_v19  ;;  %v3593_v35 = vpop.xlane.xlu1 %3592 }
 0xf07   : > { %v3595_v25 = vpop.xlane.xlu0 %3594  ;;  %v3654_v48 = vsub.f32 %v7185_v12, %v3638_v16  ;;  %v3615_v55 = vmul.f32 0.6931472, %v5326_v14  ;;  %5335 = vlog2.f32 %v3593_v35 }
 0xf08   : > { %3669 = vst [vmem:[#allocation14 + $0x18] sm:$0xff] %v3653_v13  ;;  %v3639_v20 = vadd.f32 %v3613_v23, %v7239_v27  ;;  %5337 = vlog2.f32 %v3595_v25 }
 0xf09   : > { %v5328_v6 = vpop.eup %5327  ;;  %3670 = vst [vmem:[#allocation14 + $0x20] sm:$0xff] %v3654_v48  ;;  %v3640_v18 = vadd.f32 %v3615_v55, %v7245_v58 }
 0xf0a   : > { %v5330_v41 = vpop.eup %5329  ;;  %v3655_v40 = vsub.f32 %v7187_v3, %v3639_v20  ;;  %v3617_v45 = vmul.f32 0.6931472, %v5328_v6  ;;  %v3597_v38 = vpop.xlane.xlu1 %3596 }
 0xf0b   : > { %v3599_v21 = vpop.xlane.xlu0 %3598  ;;  %v3656_v47 = vsub.f32 %v7191_v61, %v3640_v18  ;;  %v3619_v7 = vmul.f32 0.6931472, %v5330_v41  ;;  %5339 = vlog2.f32 %v3597_v38 }
 0xf0c   : > { %3671 = vst [vmem:[#allocation14 + $0x28] sm:$0xff] %v3655_v40  ;;  %v3641_v12 = vadd.f32 %v3617_v45, %v7247_v63  ;;  %5341 = vlog2.f32 %v3599_v21 }
 0xf0d   : > { %v5332_v27 = vpop.eup %5331  ;;  %3672 = vst [vmem:[#allocation14 + $0x30] sm:$0xff] %v3656_v47  ;;  %v3642_v34 = vadd.f32 %v3619_v7, %v7253_v60 }
 0xf0e   : > { %v5334_v44 = vpop.eup %5333  ;;  %v3657_v58 = vsub.f32 %v7193_v30, %v3641_v12  ;;  %v3621_v43 = vmul.f32 0.6931472, %v5332_v27  ;;  %v3601_v3 = vpop.xlane.xlu1 %3600 }
 0xf0f   : > { %v3658_v5 = vsub.f32 %v7197_v52, %v3642_v34  ;;  %v3623_v51 = vmul.f32 0.6931472, %v5334_v44  ;;  %5343 = vlog2.f32 %v3601_v3 }
 0xf10   : > { %3673 = vst [vmem:[#allocation14 + $0x38] sm:$0xff] %v3657_v58  ;;  %v3643_v61 = vadd.f32 %v3621_v43, %v7255_v46 }
 0xf11   : > { %v5336_v53 = vpop.eup %5335  ;;  %3674 = vst [vmem:[#allocation14 + $0x40] sm:$0xff] %v3658_v5  ;;  %v3644_v63 = vadd.f32 %v3623_v51, %v7261_v24 }
 0xf12   : > { %v5338_v22 = vpop.eup %5337  ;;  %v3659_v2 = vsub.f32 %v7199_v36, %v3643_v61  ;;  %v3625_v60 = vmul.f32 0.6931472, %v5336_v53 }
 0xf13   : > { %v3660_v28 = vsub.f32 %v7203_v4, %v3644_v63  ;;  %v3627_v30 = vmul.f32 0.6931472, %v5338_v22 }
 0xf14   : > { %3675 = vst [vmem:[#allocation14 + $0x48] sm:$0xff] %v3659_v2  ;;  %v3645_v31 = vadd.f32 %v3625_v60, %v7263_v8 }
 0xf15   : > { %v5340_v52 = vpop.eup %5339  ;;  %3676 = vst [vmem:[#allocation14 + $0x50] sm:$0xff] %v3660_v28  ;;  %v3646_v37 = vadd.f32 %v3627_v30, %v7269_v17 }
 0xf16   : > { %v5342_v62 = vpop.eup %5341  ;;  %v3661_v46 = vsub.f32 %v7205_v54, %v3645_v31  ;;  %v3629_v26 = vmul.f32 0.6931472, %v5340_v52 }
 0xf17   : > { %v3662_v24 = vsub.f32 %v7209_v39, %v3646_v37  ;;  %v3631_v33 = vmul.f32 0.6931472, %v5342_v62 }
 0xf18   : > { %3677 = vst [vmem:[#allocation14 + $0x58] sm:$0xff] %v3661_v46  ;;  %v3647_v36 = vadd.f32 %v3629_v26, %v7271_v50 }
 0xf19   : > { %v5344_v10 = vpop.eup %5343  ;;  %3678 = vst [vmem:[#allocation14 + $0x60] sm:$0xff] %v3662_v24  ;;  %v3648_v4 = vadd.f32 %v3631_v33, %v7277_v15 }
 0xf1a   : > { %v3663_v8 = vsub.f32 %v7211_v49, %v3647_v36  ;;  %v3633_v11 = vmul.f32 0.6931472, %v5344_v10 }
 0xf1b   : > { %v3664_v1 = vsub.f32 %v7215_v29, %v3648_v4 }
 0xf1c   : > { %3679 = vst [vmem:[#allocation14 + $0x68] sm:$0xff] %v3663_v8  ;;  %v3649_v17 = vadd.f32 %v3633_v11, %v7279_v9 }
 0xf1d   : > { %3680 = vst [vmem:[#allocation14 + $0x70] sm:$0xff] %v3664_v1 }
 0xf1e   : > { %v3665_v54 = vsub.f32 %v7217_v57, %v3649_v17 }
 0xf20   : > { %3681 = vst [vmem:[#allocation14 + $0x78] sm:$0xff] %v3665_v54 }
 0xf21 PF: > { %p5192_p12 = scmp.eq.s32.totalorder %s5714_s14, 2  ;;  %s5624_s11 = smov [#allocation14]  }
 0xf22   : > { %s3698_s21 = sshll.u32 %s5624_s11, 4  ;;  %s3699_s21 = int_to_ptr.vmem [resolvable:$true] %s3698_s21 }
 0xf23   : > { %s5489_s8 = scalar_lea.vmem %s3699_s21, 2048  ;;  %s5495_s30 = scalar_lea.vmem %s3699_s21, 4096 }
 0xf24   : > { %p5490_p10 = scmp.ne.s32.totalorder %s3699_s21, %s5489_s8  ;;  %p5496_p13 = scmp.lt.s32.totalorder %s3699_s21, %s3699_s21 }
 0xf25   : > { %p5497_p5 = scmp.lt.s32.totalorder %s5495_s30, %s5489_s8 }
 0xf26   : > { %p5491_p0 = pnand %p5490_p10, %p5192_p12 }
 0xf27   : > { %p5498_p4 = por %p5497_p5, %p5496_p13 }
 0xf28   : > { %p5492_p7 = pneg %p5491_p0 }
 0xf2a   : > { %p5499_p6 = pnand %p5498_p4, %p5492_p7 }
 0xf2c   : > { %5502 = shalt.err (!%p5499_p6)
}
 0xf2d   : > { %s7426_s16 = sld [smem:[#allocation28_spill]] }
 0xf33   : > { %s5503_s23 = scalar_lea.hbm %s7426_s16, 2048 }
 0xf34   : > { %p5504_p2 = scmp.ne.s32.totalorder %s7426_s16, %s5503_s23  ;;  %p5509_p8 = scmp.lt.u32.totalorder %s5503_s23, %s7426_s16 }
 0xf36   : > { %p5505_p1 = pnand %p5504_p2, %p5192_p12 }
 0xf38   : > { %p5506_p3 = pneg %p5505_p1 }
 0xf3a   : > { %p5511_p9 = pnand %p5509_p8, %p5506_p3 }
 0xf3c   : > { %5514 = shalt.err (!%p5511_p9)
}
 0xf3d   : > { %s5625_s25 = smov 128   ;;  %s5626_s19 = smov 8  }
 0xf3e   : > { %5161 = dma.vmem_to_hbm [thread:$0]  (%p5192_p12), %s3699_s21, 2048, %s7426_s16, [#allocation7], %s5625_s25, %s5625_s25, %s5626_s19  }
 0xf3f PF: > { %p5193_p11 = scmp.ge.s32.totalorder %s5609_s13, 2  ;;  %s7427_s20 = sadd.s32 4294967294, %s5609_s13  }
 0xf40   : > { %p5194_p10 = scmp.eq.s32.totalorder %s7427_s20, 2 }
 0xf42   : > { %p5182_p0 = pnand %p5194_p10, %p5193_p11 }
 0xf44   : > { %5572 = dma.done.wait (!%p5182_p0), [#allocation7], 2048  }
 0xf45   : > { %5574 = vsyncadd (!%p5182_p0), [#allocation7], 4294965248  ;;  %s30_s13 = sadd.s32 1, %s5609_s13   ;;  %s7428_s18 = smov %s5898_s27 }
 0xf46   : > { %p27_p7 = scmp.ge.s32.totalorder %s30_s13, 5   ;;  %s7429_s14 = sld [smem:[#allocation21_spill]] }
 0xf47   : > { %s7430_s10 = sld [smem:[#allocation23_spill]]  ;;  %s7431_s15 = sld [smem:[#allocation22_spill]] }
 0xf48   : > { %s7432_s27 = smov %s5581_s28  ;;  %s7433_s28 = smov %s5585_s29 }
 0xf49   : > { %s7434_s29 = smov %s7428_s18  ;;  %s7435_s30 = smov %s5593_s9 }
 0xf4a   : > { %s7437_s11 = smov %s5605_s12  ;;  %29 = sbr.rel (!%p27_p7) target bundleno = 18 (0x12), region = 168 }
 0xf4c   : > { %s7436_s9 = smov %s7429_s14 }
 0xf4d   : > { %s7438_s12 = smov %s7431_s15 }
 0xf51   :  { %3719 = vsyncpa [#allocation6], 1 }
 0xf52   :  { %3721 = vsyncpa [#allocation6 + $0x1], 1 }
 0xf53   :  { %3722 = vsyncpa [#allocation9], 1 }
 0xf54   :  { %3724 = vsyncpa [#allocation9 + $0x1], 1 }
 0xf55   :  { %3725 = vsyncpa [#allocation12], 1 }
 0xf56   :  { %3727 = vsyncpa [#allocation12 + $0x1], 1 }
 0xf57   :  { %3728 = vsyncpa [#allocation7], 1 }
 0xf58   :  { %3730 = vsyncpa [#allocation7 + $0x1], 1 }

</bundles_post_ra>
